<compile_context>
chip_gen: v6e
topology: v6e:2x2x1
jax: 0.10.0
libtpu: 0.0.40
codegen_flags: <defaults>
</compile_context>

<pallas_src>
import functools

import jax
import jax.numpy as jnp
from jax import lax
from jax.experimental import pallas as pl
from jax.experimental.pallas import tpu as pltpu

EPS = 1e-5
LANES = 128
VMEM_LIMIT = 32 * 1024 * 1024  # explicit scoped-VMEM budget; safe on v5e/v6e/v7x


def _round_up(x, m):
    return ((x + m - 1) // m) * m


def _pick_rows(h, cap):
    """Largest row-block size <= cap that divides h (keeps BN stats exact)."""
    th = min(cap, h)
    while h % th:
        th -= 1
    return th


# ----------------------------- Pallas kernels ------------------------------

def matmul_stats_kernel(x_ref, w_ref, y_ref, s_ref):
    """Deconv core: y = x @ w (bf16 x bf16 -> f32) + per-tile column sum / sumsq."""
    y = jnp.dot(x_ref[...], w_ref[...], preferred_element_type=jnp.float32)
    y_ref[...] = y
    s = jnp.sum(y, axis=0, keepdims=True)
    sq = jnp.sum(y * y, axis=0, keepdims=True)
    s_ref[0] = jnp.concatenate([s, sq], axis=0)          # (2, Ncols)


def conv3x3_block_kernel(x_ref, w_ref, y_ref, s_ref, *, th, w_out):
    """TH output rows of a 3x3 'same' conv (no im2col): 9 shifted MXU dots over
    a (TH+2, W+2, Ct) bf16 halo block, plus per-block (sum, sumsq) for BN."""
    ct = x_ref.shape[3]
    co = w_ref.shape[2]
    acc = jnp.zeros((th * w_out, co), jnp.float32)
    for dh in range(3):
        for dw in range(3):
            lhs = x_ref[0, dh:dh + th, dw:dw + w_out, :].reshape(th * w_out, ct)
            acc += jnp.dot(lhs, w_ref[3 * dh + dw],
                           preferred_element_type=jnp.float32)
    y_ref[0] = acc
    s = jnp.sum(acc, axis=0, keepdims=True)
    sq = jnp.sum(acc * acc, axis=0, keepdims=True)
    s_ref[0] = jnp.concatenate([s, sq], axis=0)          # (2, Co)


def scale_shift_relu_kernel(y_ref, sc_ref, sh_ref, o_ref):
    """BN(affine, precomputed scale/shift) + ReLU, tiled over rows."""
    o_ref[...] = jnp.maximum(
        y_ref[...] * sc_ref[...] + sh_ref[...], 0.0).astype(o_ref.dtype)


# ----------------------------- pallas_call wrappers -------------------------

def matmul_stats(x_bf16, w_bf16, *, tile_m):
    """x:(M,K) bf16 @ w:(K,Nc) bf16 -> y:(Mp,Nc) f32 and summed stats (2,Nc)."""
    M, K = x_bf16.shape
    Nc = w_bf16.shape[1]
    tm = min(tile_m, _round_up(M, 8))
    Mp = _round_up(M, tm)
    if Mp != M:  # zero rows contribute 0 to sums -> stats stay exact
        x_bf16 = jnp.pad(x_bf16, ((0, Mp - M), (0, 0)))
    G = Mp // tm
    y, st = pl.pallas_call(
        matmul_stats_kernel,
        grid=(G,),
        in_specs=[pl.BlockSpec((tm, K), lambda i: (i, 0)),
                  pl.BlockSpec((K, Nc), lambda i: (0, 0))],
        out_specs=[pl.BlockSpec((tm, Nc), lambda i: (i, 0)),
                   pl.BlockSpec((1, 2, Nc), lambda i: (i, 0, 0))],
        out_shape=[jax.ShapeDtypeStruct((Mp, Nc), jnp.float32),
                   jax.ShapeDtypeStruct((G, 2, Nc), jnp.float32)],
        compiler_params=pltpu.CompilerParams(
            dimension_semantics=("parallel",),
            vmem_limit_bytes=VMEM_LIMIT),
    )(x_bf16, w_bf16)
    return y, st.sum(axis=0)


def conv3x3_stats(xblk, wflat, *, th, w_out):
    """xblk:  (NB, TH+2, W+2, Ct) bf16 halo row-blocks.
       wflat: (9, Ct, Co) bf16, tap-major (kh*3+kw).
       Returns y: (NB, TH*W, Co) f32 pre-BN conv output and stats (2, Co)."""
    NB, THp2, Wp2, Ct = xblk.shape
    Co = wflat.shape[2]
    kern = functools.partial(conv3x3_block_kernel, th=th, w_out=w_out)
    y, st = pl.pallas_call(
        kern,
        grid=(NB,),
        in_specs=[
            pl.BlockSpec((1, THp2, Wp2, Ct), lambda i: (i, 0, 0, 0)),
            # all 9 taps resident in VMEM (constant index map -> fetched once)
            pl.BlockSpec((9, Ct, Co), lambda i: (0, 0, 0)),
        ],
        out_specs=[
            pl.BlockSpec((1, th * w_out, Co), lambda i: (i, 0, 0)),
            pl.BlockSpec((1, 2, Co), lambda i: (i, 0, 0)),
        ],
        out_shape=[
            jax.ShapeDtypeStruct((NB, th * w_out, Co), jnp.float32),
            jax.ShapeDtypeStruct((NB, 2, Co), jnp.float32),
        ],
        compiler_params=pltpu.CompilerParams(
            dimension_semantics=("parallel",),
            vmem_limit_bytes=VMEM_LIMIT),
    )(xblk, wflat)
    return y, st.sum(axis=0)


def scale_shift_relu(y, scale, shift, *, out_dtype, tile_m):
    M, C = y.shape
    tm = min(tile_m, _round_up(M, 8))
    Mp = _round_up(M, tm)
    if Mp != M:
        y = jnp.pad(y, ((0, Mp - M), (0, 0)))
    out = pl.pallas_call(
        scale_shift_relu_kernel,
        grid=(Mp // tm,),
        in_specs=[pl.BlockSpec((tm, C), lambda i: (i, 0)),
                  pl.BlockSpec((1, C), lambda i: (0, 0)),
                  pl.BlockSpec((1, C), lambda i: (0, 0))],
        out_specs=pl.BlockSpec((tm, C), lambda i: (i, 0)),
        out_shape=jax.ShapeDtypeStruct((Mp, C), out_dtype),
        compiler_params=pltpu.CompilerParams(
            dimension_semantics=("parallel",),
            vmem_limit_bytes=VMEM_LIMIT),
    )(y, scale, shift)
    return out[:M]


# ----------------------------- Up forward (Pallas) --------------------------

def up_forward(x1, x2, p, *, tile_m=256, row_block=8):
    """x1: (N, Cin, H1, W1), x2: (N, C2, H2, W2) NCHW. Returns NCHW (N, Cout, H2, W2)."""
    N, Cin, H1, W1 = x1.shape
    _, C2, H2, W2 = x2.shape
    Cout = p["wt"].shape[1]

    # lane-dense padded channel counts
    Cp = _round_up(Cout, LANES // 4)      # per-tap channels so that 4*Cp % 128 == 0
    Nd = 4 * Cp                           # deconv matmul output columns
    Co = _round_up(Cout, LANES)           # conv matmul output columns

    # ---------- up path: ConvTranspose2d(k=2, s=2) [bias dropped] + BN + ReLU -------
    x1f = jnp.transpose(x1, (0, 2, 3, 1)).reshape(N * H1 * W1, Cin).astype(jnp.bfloat16)
    M1 = N * H1 * W1
    # weight (Cin, Cout, 2, 2) -> columns ordered (kh, kw, c), channel-padded to Cp
    wt = jnp.transpose(p["wt"], (0, 2, 3, 1))                       # (Cin, 2, 2, Cout)
    wt = jnp.pad(wt, ((0, 0), (0, 0), (0, 0), (0, Cp - Cout)))
    wtm = wt.reshape(Cin, Nd).astype(jnp.bfloat16)

    y1, st1 = matmul_stats(x1f, wtm, tile_m=tile_m)                 # y1: (M1p, Nd) f32

    # fold training-mode BN into per-channel scale/shift (stats combine the 4 taps)
    cnt1 = float(N * (2 * H1) * (2 * W1))
    sum1 = st1[0].reshape(4, Cp).sum(axis=0)
    sq1 = st1[1].reshape(4, Cp).sum(axis=0)
    mean1 = sum1 / cnt1
    var1 = jnp.maximum(sq1 / cnt1 - mean1 * mean1, 0.0)             # biased variance
    g1 = jnp.pad(p["g1"].reshape(-1).astype(jnp.float32), (0, Cp - Cout))
    b1 = jnp.pad(p["b1"].reshape(-1).astype(jnp.float32), (0, Cp - Cout))
    sc1 = g1 * lax.rsqrt(var1 + EPS)
    sh1 = b1 - mean1 * sc1
    scale1 = jnp.tile(sc1, 4).reshape(1, Nd)
    shift1 = jnp.tile(sh1, 4).reshape(1, Nd)

    # normalize + ReLU straight to bf16 (the 3x3 conv consumes bf16 operands anyway)
    up = scale_shift_relu(y1, scale1, shift1, out_dtype=jnp.bfloat16, tile_m=tile_m)
    up = up[:M1].reshape(N, H1, W1, 2, 2, Cp)
    up = jnp.transpose(up, (0, 1, 3, 2, 4, 5)).reshape(N, 2 * H1, 2 * W1, Cp)

    # ---------- F.pad to x2 spatial size, concat([x2, up]) along channels (bf16) ----
    diffY = H2 - 2 * H1
    diffX = W2 - 2 * W1
    up = jnp.pad(up, ((0, 0), (diffY // 2, diffY - diffY // 2),
                      (diffX // 2, diffX - diffX // 2), (0, 0)))
    x2_nhwc = jnp.transpose(x2, (0, 2, 3, 1)).astype(jnp.bfloat16)
    xcat = jnp.concatenate([x2_nhwc, up], axis=-1)                  # (N, H2, W2, Ct)
    Ct = C2 + Cp
    xpad = jnp.pad(xcat, ((0, 0), (1, 1), (1, 1), (0, 0)))          # conv padding=1

    # ---------- halo row-blocks for the 3x3 conv (XLA gather, 2 dup rows / TH rows) -
    TH = _pick_rows(H2, row_block)
    nb = H2 // TH
    ridx = jnp.arange(nb)[:, None] * TH + jnp.arange(TH + 2)[None, :]
    xblk = xpad[:, ridx]                                            # (N, nb, TH+2, W2+2, Ct)
    xblk = xblk.reshape(N * nb, TH + 2, W2 + 2, Ct)

    # ---------- Conv2d 3x3 pad=1 (no bias) + BN + ReLU --------------------------------
    # weights (Cout, C2+Cout, 3, 3) -> (9, Ct, Co), tap-major, padded channels get 0
    wc = jnp.transpose(p["wc"], (2, 3, 1, 0)).astype(jnp.float32)   # (3,3,C2+Cout,Cout)
    w_x2 = wc[:, :, :C2, :]
    w_up = jnp.pad(wc[:, :, C2:, :], ((0, 0), (0, 0), (0, Cp - Cout), (0, 0)))
    wfull = jnp.concatenate([w_x2, w_up], axis=2)                   # (3,3,Ct,Cout)
    wfull = jnp.pad(wfull, ((0, 0), (0, 0), (0, 0), (0, Co - Cout)))
    wflat = wfull.reshape(9, Ct, Co).astype(jnp.bfloat16)

    y2, st2 = conv3x3_stats(xblk, wflat, th=TH, w_out=W2)           # (N*nb, TH*W2, Co)

    cnt2 = float(N * H2 * W2)
    mean2 = st2[0] / cnt2
    var2 = jnp.maximum(st2[1] / cnt2 - mean2 * mean2, 0.0)
    g2 = jnp.pad(p["g2"].reshape(-1).astype(jnp.float32), (0, Co - Cout))
    b2 = jnp.pad(p["b2"].reshape(-1).astype(jnp.float32), (0, Co - Cout))
    sc2 = (g2 * lax.rsqrt(var2 + EPS)).reshape(1, Co)
    sh2 = (b2.reshape(1, Co) - mean2.reshape(1, Co) * sc2)

    out = scale_shift_relu(y2.reshape(N * H2 * W2, Co), sc2, sh2,
                           out_dtype=jnp.float32, tile_m=tile_m)
    out = out.reshape(N, H2, W2, Co)[..., :Cout]
    return jnp.transpose(out, (0, 3, 1, 2))                         # back to NCHW


# ----------------------------- pure-JAX reference ---------------------------

def _b16(x):
    # mirror the kernel's bf16 matmul-operand policy (f32 accumulation)
    return x.astype(jnp.bfloat16).astype(jnp.float32)


def _bn_relu_ref(x_nchw, gamma, beta):
    mean = jnp.mean(x_nchw, axis=(0, 2, 3), keepdims=True)
    var = jnp.mean((x_nchw - mean) ** 2, axis=(0, 2, 3), keepdims=True)
    xn = (x_nchw - mean) * lax.rsqrt(var + EPS)
    return jnp.maximum(xn * gamma.reshape(1, -1, 1, 1) + beta.reshape(1, -1, 1, 1), 0.0)


def up_forward_ref(x1, x2, p):
    N, Cin, H1, W1 = x1.shape
    _, C2, H2, W2 = x2.shape
    Cout = p["wt"].shape[1]
    up = jnp.zeros((N, Cout, 2 * H1, 2 * W1), jnp.float32)
    x1b, wtb = _b16(x1), _b16(p["wt"])
    for kh in range(2):
        for kw in range(2):
            contrib = jnp.einsum("nchw,cd->ndhw", x1b, wtb[:, :, kh, kw],
                                 precision=lax.Precision.HIGHEST)
            up = up.at[:, :, kh::2, kw::2].set(contrib)
    up = up + p["bt"].reshape(1, -1, 1, 1)   # bias kept here; BN cancels it exactly
    up = _bn_relu_ref(up, p["g1"].ravel(), p["b1"].ravel())
    diffY = H2 - 2 * H1
    diffX = W2 - 2 * W1
    up = jnp.pad(up, ((0, 0), (0, 0),
                      (diffY // 2, diffY - diffY // 2),
                      (diffX // 2, diffX - diffX // 2)))
    xcat = jnp.concatenate([x2, up], axis=1)
    conv = lax.conv_general_dilated(_b16(xcat), _b16(p["wc"]), (1, 1), ((1, 1), (1, 1)),
                                    dimension_numbers=("NCHW", "OIHW", "NCHW"),
                                    precision=lax.Precision.HIGHEST)
    return _bn_relu_ref(conv, p["g2"].ravel(), p["b2"].ravel())


# ----------------------------- main ------------------------------------------

if __name__ == "__main__":
    # in_channels = 8, out_channels = 4; x2 carries in_channels - out_channels = 4
    # channels so the post-concat tensor has in_channels channels, as the 3x3 conv expects.
    N, Cin, Cout = 2, 8, 4
    H1 = W1 = 8           # x1 spatial (gets upsampled x2)
    H2 = W2 = 16          # x2 spatial

    key = jax.random.PRNGKey(0)
    ks = jax.random.split(key, 10)

    x1 = jax.random.normal(ks[0], (N, Cin, H1, W1), jnp.float32)
    x2 = jax.random.normal(ks[1], (N, Cin - Cout, H2, W2), jnp.float32)

    params = {
        # ConvTranspose2d(Cin, Cout, k=2, s=2): weight (Cin, Cout, 2, 2), bias (Cout,)
        "wt": jax.random.normal(ks[2], (Cin, Cout, 2, 2), jnp.float32) * 0.5,
        "bt": jax.random.normal(ks[3], (Cout,), jnp.float32) * 0.1,
        # BatchNorm2d(Cout) of the up path
        "g1": 1.0 + 0.1 * jax.random.normal(ks[4], (Cout,), jnp.float32),
        "b1": 0.1 * jax.random.normal(ks[5], (Cout,), jnp.float32),
        # Conv2d(Cin, Cout, k=3, pad=1, bias=False): weight (Cout, Cin, 3, 3)
        "wc": jax.random.normal(ks[6], (Cout, Cin, 3, 3), jnp.float32) * 0.5,
        # BatchNorm2d(Cout) of the conv path
        "g2": 1.0 + 0.1 * jax.random.normal(ks[7], (Cout,), jnp.float32),
        "b2": 0.1 * jax.random.normal(ks[8], (Cout,), jnp.float32),
    }

    up_fn = jax.jit(up_forward)
    out = jax.block_until_ready(up_fn(x1, x2, params))
    assert out.shape == (N, Cout, H2, W2), out.shape

    ref = jax.block_until_ready(up_forward_ref(x1, x2, params))
    err = float(jnp.max(jnp.abs(out - ref)))
    assert jnp.allclose(out, ref, rtol=1e-2, atol=1e-2), err

    print("KERNEL_OK")
</pallas_src>

<mosaic_0001>
module attributes {stable_mosaic.version = 11 : i64} {
  func.func @matmul_stats_kernel(%arg0: i32, %arg1: memref<128x8xbf16, #tpu.memory_space<vmem>>, %arg2: memref<8x128xbf16, #tpu.memory_space<vmem>>, %arg3: memref<128x128xf32, #tpu.memory_space<vmem>>, %arg4: memref<1x2x128xf32, #tpu.memory_space<vmem>>) attributes {dimension_semantics = [#tpu.dimension_semantics<parallel>], iteration_bounds = array<i64: 1>, scalar_prefetch = 0 : i64, scratch_operands = 0 : i64, tpu.core_type = #tpu.core_type<tc>, window_params = [{transform_indices = @transform_0, window_bounds = array<i64: 128, 8>}, {pipeline_mode = #tpu.pipeline_mode<synchronous>, transform_indices = @transform_1, window_bounds = array<i64: 8, 128>}, {transform_indices = @transform_2, window_bounds = array<i64: 128, 128>}, {transform_indices = @transform_3, window_bounds = array<i64: 1, 2, 128>}]} {
    %c0 = arith.constant 0 : index
    %c0_0 = arith.constant 0 : index
    %0 = vector.load %arg1[%c0, %c0_0] : memref<128x8xbf16, #tpu.memory_space<vmem>>, vector<128x8xbf16>
    %c0_1 = arith.constant 0 : index
    %c0_2 = arith.constant 0 : index
    %1 = vector.load %arg2[%c0_1, %c0_2] : memref<8x128xbf16, #tpu.memory_space<vmem>>, vector<8x128xbf16>
    %cst = arith.constant dense<0.000000e+00> : vector<128x128xf32>
    %2 = tpu.matmul %0, %1, %cst {dimension_numbers = #tpu.dot_dimension_numbers<[1], [0], [0], [1], [0, 0, 1, 1], [], []>} : vector<128x8xbf16>, vector<8x128xbf16>, vector<128x128xf32> -> vector<128x128xf32>
    %c0_3 = arith.constant 0 : index
    %c0_4 = arith.constant 0 : index
    %3 = vector.load %arg3[%c0_3, %c0_4] : memref<128x128xf32, #tpu.memory_space<vmem>>, vector<128x128xf32>
    tpu.vector_store %arg3[%c0_3, %c0_4], %2 {strides = array<i32>} : memref<128x128xf32, #tpu.memory_space<vmem>>, vector<128x128xf32>,
    %cst_5 = arith.constant dense<0.000000e+00> : vector<128xf32>
    %4 = vector.multi_reduction <add>, %2, %cst_5 [0] : vector<128x128xf32> to vector<128xf32>
    %5 = vector.shape_cast %4 : vector<128xf32> to vector<1x128xf32>
    %6 = arith.mulf %2, %2 : vector<128x128xf32>
    %cst_6 = arith.constant dense<0.000000e+00> : vector<128xf32>
    %7 = vector.multi_reduction <add>, %6, %cst_6 [0] : vector<128x128xf32> to vector<128xf32>
    %8 = vector.shape_cast %7 : vector<128xf32> to vector<1x128xf32>
    %9 = tpu.concatenate %5, %8 in 0 : vector<1x128xf32>, vector<1x128xf32> -> vector<2x128xf32>
    %c0_7 = arith.constant 0 : index
    %c0_8 = arith.constant 0 : index
    %c0_9 = arith.constant 0 : index
    %10 = vector.load %arg4[%c0_7, %c0_8, %c0_9] : memref<1x2x128xf32, #tpu.memory_space<vmem>>, vector<1x2x128xf32>
    %11 = vector.shape_cast %10 : vector<1x2x128xf32> to vector<2x128xf32>
    %12 = vector.shape_cast %9 : vector<2x128xf32> to vector<1x2x128xf32>
    tpu.vector_store %arg4[%c0_7, %c0_8, %c0_9], %12 {strides = array<i32>} : memref<1x2x128xf32, #tpu.memory_space<vmem>>, vector<1x2x128xf32>,
    return
  }
  func.func @transform_0(%arg0: i32) -> (i32, i32) {
    %c0_i32 = arith.constant 0 : i32
    %c0_i32_0 = arith.constant 0 : i32
    return %arg0, %c0_i32 : i32, i32
  }
  func.func @transform_1(%arg0: i32) -> (i32, i32) {
    %c0_i32 = arith.constant 0 : i32
    %c0_i32_0 = arith.constant 0 : i32
    %c0_i32_1 = arith.constant 0 : i32
    return %c0_i32, %c0_i32_0 : i32, i32
  }
  func.func @transform_2(%arg0: i32) -> (i32, i32) {
    %c0_i32 = arith.constant 0 : i32
    %c0_i32_0 = arith.constant 0 : i32
    return %arg0, %c0_i32 : i32, i32
  }
  func.func @transform_3(%arg0: i32) -> (i32, i32, i32) {
    %c0_i32 = arith.constant 0 : i32
    %c0_i32_0 = arith.constant 0 : i32
    %c0_i32_1 = arith.constant 0 : i32
    return %arg0, %c0_i32, %c0_i32_0 : i32, i32, i32
  }
}

module attributes {stable_mosaic.version = 11 : i64} {
  func.func @scale_shift_relu_kernel(%arg0: i32, %arg1: memref<128x128xf32, #tpu.memory_space<vmem>>, %arg2: memref<1x128xf32, #tpu.memory_space<vmem>>, %arg3: memref<1x128xf32, #tpu.memory_space<vmem>>, %arg4: memref<128x128xbf16, #tpu.memory_space<vmem>>) attributes {dimension_semantics = [#tpu.dimension_semantics<parallel>], iteration_bounds = array<i64: 1>, scalar_prefetch = 0 : i64, scratch_operands = 0 : i64, tpu.core_type = #tpu.core_type<tc>, window_params = [{transform_indices = @transform_0, window_bounds = array<i64: 128, 128>}, {pipeline_mode = #tpu.pipeline_mode<synchronous>, transform_indices = @transform_1, window_bounds = array<i64: 1, 128>}, {pipeline_mode = #tpu.pipeline_mode<synchronous>, transform_indices = @transform_2, window_bounds = array<i64: 1, 128>}, {transform_indices = @transform_3, window_bounds = array<i64: 128, 128>}]} {
    %c0 = arith.constant 0 : index
    %c0_0 = arith.constant 0 : index
    %0 = vector.load %arg1[%c0, %c0_0] : memref<128x128xf32, #tpu.memory_space<vmem>>, vector<128x128xf32>
    %c0_1 = arith.constant 0 : index
    %c0_2 = arith.constant 0 : index
    %1 = vector.load %arg2[%c0_1, %c0_2] : memref<1x128xf32, #tpu.memory_space<vmem>>, vector<1x128xf32>
    %2 = vector.broadcast %1 : vector<1x128xf32> to vector<128x128xf32>
    %3 = arith.mulf %0, %2 : vector<128x128xf32>
    %c0_3 = arith.constant 0 : index
    %c0_4 = arith.constant 0 : index
    %4 = vector.load %arg3[%c0_3, %c0_4] : memref<1x128xf32, #tpu.memory_space<vmem>>, vector<1x128xf32>
    %5 = vector.broadcast %4 : vector<1x128xf32> to vector<128x128xf32>
    %6 = arith.addf %3, %5 : vector<128x128xf32>
    %cst = arith.constant 0.000000e+00 : f32
    %7 = vector.broadcast %cst : f32 to vector<128x128xf32>
    %8 = arith.maximumf %6, %7 : vector<128x128xf32>
    %9 = arith.truncf %8 : vector<128x128xf32> to vector<128x128xbf16>
    %c0_5 = arith.constant 0 : index
    %c0_6 = arith.constant 0 : index
    %10 = vector.load %arg4[%c0_5, %c0_6] : memref<128x128xbf16, #tpu.memory_space<vmem>>, vector<128x128xbf16>
    tpu.vector_store %arg4[%c0_5, %c0_6], %9 {strides = array<i32>} : memref<128x128xbf16, #tpu.memory_space<vmem>>, vector<128x128xbf16>,
    return
  }
  func.func @transform_0(%arg0: i32) -> (i32, i32) {
    %c0_i32 = arith.constant 0 : i32
    %c0_i32_0 = arith.constant 0 : i32
    return %arg0, %c0_i32 : i32, i32
  }
  func.func @transform_1(%arg0: i32) -> (i32, i32) {
    %c0_i32 = arith.constant 0 : i32
    %c0_i32_0 = arith.constant 0 : i32
    %c0_i32_1 = arith.constant 0 : i32
    return %c0_i32, %c0_i32_0 : i32, i32
  }
  func.func @transform_2(%arg0: i32) -> (i32, i32) {
    %c0_i32 = arith.constant 0 : i32
    %c0_i32_0 = arith.constant 0 : i32
    %c0_i32_1 = arith.constant 0 : i32
    return %c0_i32, %c0_i32_0 : i32, i32
  }
  func.func @transform_3(%arg0: i32) -> (i32, i32) {
    %c0_i32 = arith.constant 0 : i32
    %c0_i32_0 = arith.constant 0 : i32
    return %arg0, %c0_i32 : i32, i32
  }
}

module attributes {stable_mosaic.version = 11 : i64} {
  func.func @scale_shift_relu_kernel(%arg0: i32, %arg1: memref<256x128xf32, #tpu.memory_space<vmem>>, %arg2: memref<1x128xf32, #tpu.memory_space<vmem>>, %arg3: memref<1x128xf32, #tpu.memory_space<vmem>>, %arg4: memref<256x128xf32, #tpu.memory_space<vmem>>) attributes {dimension_semantics = [#tpu.dimension_semantics<parallel>], iteration_bounds = array<i64: 2>, scalar_prefetch = 0 : i64, scratch_operands = 0 : i64, tpu.core_type = #tpu.core_type<tc>, window_params = [{transform_indices = @transform_0, window_bounds = array<i64: 256, 128>}, {pipeline_mode = #tpu.pipeline_mode<synchronous>, transform_indices = @transform_1, window_bounds = array<i64: 1, 128>}, {pipeline_mode = #tpu.pipeline_mode<synchronous>, transform_indices = @transform_2, window_bounds = array<i64: 1, 128>}, {transform_indices = @transform_3, window_bounds = array<i64: 256, 128>}]} {
    %c0 = arith.constant 0 : index
    %c0_0 = arith.constant 0 : index
    %0 = vector.load %arg1[%c0, %c0_0] : memref<256x128xf32, #tpu.memory_space<vmem>>, vector<256x128xf32>
    %c0_1 = arith.constant 0 : index
    %c0_2 = arith.constant 0 : index
    %1 = vector.load %arg2[%c0_1, %c0_2] : memref<1x128xf32, #tpu.memory_space<vmem>>, vector<1x128xf32>
    %2 = vector.broadcast %1 : vector<1x128xf32> to vector<256x128xf32>
    %3 = arith.mulf %0, %2 : vector<256x128xf32>
    %c0_3 = arith.constant 0 : index
    %c0_4 = arith.constant 0 : index
    %4 = vector.load %arg3[%c0_3, %c0_4] : memref<1x128xf32, #tpu.memory_space<vmem>>, vector<1x128xf32>
    %5 = vector.broadcast %4 : vector<1x128xf32> to vector<256x128xf32>
    %6 = arith.addf %3, %5 : vector<256x128xf32>
    %cst = arith.constant 0.000000e+00 : f32
    %7 = vector.broadcast %cst : f32 to vector<256x128xf32>
    %8 = arith.maximumf %6, %7 : vector<256x128xf32>
    %c0_5 = arith.constant 0 : index
    %c0_6 = arith.constant 0 : index
    %9 = vector.load %arg4[%c0_5, %c0_6] : memref<256x128xf32, #tpu.memory_space<vmem>>, vector<256x128xf32>
    tpu.vector_store %arg4[%c0_5, %c0_6], %8 {strides = array<i32>} : memref<256x128xf32, #tpu.memory_space<vmem>>, vector<256x128xf32>,
    return
  }
  func.func @transform_0(%arg0: i32) -> (i32, i32) {
    %c0_i32 = arith.constant 0 : i32
    %c0_i32_0 = arith.constant 0 : i32
    return %arg0, %c0_i32 : i32, i32
  }
  func.func @transform_1(%arg0: i32) -> (i32, i32) {
    %c0_i32 = arith.constant 0 : i32
    %c0_i32_0 = arith.constant 0 : i32
    %c0_i32_1 = arith.constant 0 : i32
    return %c0_i32, %c0_i32_0 : i32, i32
  }
  func.func @transform_2(%arg0: i32) -> (i32, i32) {
    %c0_i32 = arith.constant 0 : i32
    %c0_i32_0 = arith.constant 0 : i32
    %c0_i32_1 = arith.constant 0 : i32
    return %c0_i32, %c0_i32_0 : i32, i32
  }
  func.func @transform_3(%arg0: i32) -> (i32, i32) {
    %c0_i32 = arith.constant 0 : i32
    %c0_i32_0 = arith.constant 0 : i32
    return %arg0, %c0_i32 : i32, i32
  }
}

module attributes {stable_mosaic.version = 11 : i64} {
  func.func @conv3x3_block_kernel(%arg0: i32, %arg1: memref<1x10x18x36xbf16, #tpu.memory_space<vmem>>, %arg2: memref<9x36x128xbf16, #tpu.memory_space<vmem>>, %arg3: memref<1x128x128xf32, #tpu.memory_space<vmem>>, %arg4: memref<1x2x128xf32, #tpu.memory_space<vmem>>) attributes {dimension_semantics = [#tpu.dimension_semantics<parallel>], iteration_bounds = array<i64: 4>, scalar_prefetch = 0 : i64, scratch_operands = 0 : i64, tpu.core_type = #tpu.core_type<tc>, window_params = [{transform_indices = @transform_0, window_bounds = array<i64: 1, 10, 18, 36>}, {pipeline_mode = #tpu.pipeline_mode<synchronous>, transform_indices = @transform_1, window_bounds = array<i64: 9, 36, 128>}, {transform_indices = @transform_2, window_bounds = array<i64: 1, 128, 128>}, {transform_indices = @transform_3, window_bounds = array<i64: 1, 2, 128>}]} {
    %cst = arith.constant 0.000000e+00 : f32
    %0 = vector.broadcast %cst : f32 to vector<128x128xf32>
    %c0 = arith.constant 0 : index
    %c0_0 = arith.constant 0 : index
    %c0_1 = arith.constant 0 : index
    %c0_2 = arith.constant 0 : index
    %1 = vector.load %arg1[%c0, %c0_0, %c0_1, %c0_2] : memref<1x10x18x36xbf16, #tpu.memory_space<vmem>>, vector<1x8x16x36xbf16>
    %2 = vector.shape_cast %1 : vector<1x8x16x36xbf16> to vector<8x16x36xbf16>
    %3 = vector.shape_cast %2 : vector<8x16x36xbf16> to vector<128x36xbf16>
    %c0_3 = arith.constant 0 : index
    %c0_4 = arith.constant 0 : index
    %c0_5 = arith.constant 0 : index
    %4 = vector.load %arg2[%c0_3, %c0_4, %c0_5] : memref<9x36x128xbf16, #tpu.memory_space<vmem>>, vector<1x36x128xbf16>
    %5 = vector.shape_cast %4 : vector<1x36x128xbf16> to vector<36x128xbf16>
    %cst_6 = arith.constant dense<0.000000e+00> : vector<128x128xf32>
    %6 = tpu.matmul %3, %5, %cst_6 {dimension_numbers = #tpu.dot_dimension_numbers<[1], [0], [0], [1], [0, 0, 1, 1], [], []>} : vector<128x36xbf16>, vector<36x128xbf16>, vector<128x128xf32> -> vector<128x128xf32>
    %7 = arith.addf %0, %6 : vector<128x128xf32>
    %c0_7 = arith.constant 0 : index
    %c0_8 = arith.constant 0 : index
    %c1 = arith.constant 1 : index
    %c0_9 = arith.constant 0 : index
    %8 = vector.load %arg1[%c0_7, %c0_8, %c1, %c0_9] : memref<1x10x18x36xbf16, #tpu.memory_space<vmem>>, vector<1x8x16x36xbf16>
    %9 = vector.shape_cast %8 : vector<1x8x16x36xbf16> to vector<8x16x36xbf16>
    %10 = vector.shape_cast %9 : vector<8x16x36xbf16> to vector<128x36xbf16>
    %c1_10 = arith.constant 1 : index
    %c0_11 = arith.constant 0 : index
    %c0_12 = arith.constant 0 : index
    %11 = vector.load %arg2[%c1_10, %c0_11, %c0_12] : memref<9x36x128xbf16, #tpu.memory_space<vmem>>, vector<1x36x128xbf16>
    %12 = vector.shape_cast %11 : vector<1x36x128xbf16> to vector<36x128xbf16>
    %cst_13 = arith.constant dense<0.000000e+00> : vector<128x128xf32>
    %13 = tpu.matmul %10, %12, %cst_13 {dimension_numbers = #tpu.dot_dimension_numbers<[1], [0], [0], [1], [0, 0, 1, 1], [], []>} : vector<128x36xbf16>, vector<36x128xbf16>, vector<128x128xf32> -> vector<128x128xf32>
    %14 = arith.addf %7, %13 : vector<128x128xf32>
    %c0_14 = arith.constant 0 : index
    %c0_15 = arith.constant 0 : index
    %c2 = arith.constant 2 : index
    %c0_16 = arith.constant 0 : index
    %15 = vector.load %arg1[%c0_14, %c0_15, %c2, %c0_16] : memref<1x10x18x36xbf16, #tpu.memory_space<vmem>>, vector<1x8x16x36xbf16>
    %16 = vector.shape_cast %15 : vector<1x8x16x36xbf16> to vector<8x16x36xbf16>
    %17 = vector.shape_cast %16 : vector<8x16x36xbf16> to vector<128x36xbf16>
    %c2_17 = arith.constant 2 : index
    %c0_18 = arith.constant 0 : index
    %c0_19 = arith.constant 0 : index
    %18 = vector.load %arg2[%c2_17, %c0_18, %c0_19] : memref<9x36x128xbf16, #tpu.memory_space<vmem>>, vector<1x36x128xbf16>
    %19 = vector.shape_cast %18 : vector<1x36x128xbf16> to vector<36x128xbf16>
    %cst_20 = arith.constant dense<0.000000e+00> : vector<128x128xf32>
    %20 = tpu.matmul %17, %19, %cst_20 {dimension_numbers = #tpu.dot_dimension_numbers<[1], [0], [0], [1], [0, 0, 1, 1], [], []>} : vector<128x36xbf16>, vector<36x128xbf16>, vector<128x128xf32> -> vector<128x128xf32>
    %21 = arith.addf %14, %20 : vector<128x128xf32>
    %c0_21 = arith.constant 0 : index
    %c1_22 = arith.constant 1 : index
    %c0_23 = arith.constant 0 : index
    %c0_24 = arith.constant 0 : index
    %22 = vector.load %arg1[%c0_21, %c1_22, %c0_23, %c0_24] : memref<1x10x18x36xbf16, #tpu.memory_space<vmem>>, vector<1x8x16x36xbf16>
    %23 = vector.shape_cast %22 : vector<1x8x16x36xbf16> to vector<8x16x36xbf16>
    %24 = vector.shape_cast %23 : vector<8x16x36xbf16> to vector<128x36xbf16>
    %c3 = arith.constant 3 : index
    %c0_25 = arith.constant 0 : index
    %c0_26 = arith.constant 0 : index
    %25 = vector.load %arg2[%c3, %c0_25, %c0_26] : memref<9x36x128xbf16, #tpu.memory_space<vmem>>, vector<1x36x128xbf16>
    %26 = vector.shape_cast %25 : vector<1x36x128xbf16> to vector<36x128xbf16>
    %cst_27 = arith.constant dense<0.000000e+00> : vector<128x128xf32>
    %27 = tpu.matmul %24, %26, %cst_27 {dimension_numbers = #tpu.dot_dimension_numbers<[1], [0], [0], [1], [0, 0, 1, 1], [], []>} : vector<128x36xbf16>, vector<36x128xbf16>, vector<128x128xf32> -> vector<128x128xf32>
    %28 = arith.addf %21, %27 : vector<128x128xf32>
    %c0_28 = arith.constant 0 : index
    %c1_29 = arith.constant 1 : index
    %c1_30 = arith.constant 1 : index
    %c0_31 = arith.constant 0 : index
    %29 = vector.load %arg1[%c0_28, %c1_29, %c1_30, %c0_31] : memref<1x10x18x36xbf16, #tpu.memory_space<vmem>>, vector<1x8x16x36xbf16>
    %30 = vector.shape_cast %29 : vector<1x8x16x36xbf16> to vector<8x16x36xbf16>
    %31 = vector.shape_cast %30 : vector<8x16x36xbf16> to vector<128x36xbf16>
    %c4 = arith.constant 4 : index
    %c0_32 = arith.constant 0 : index
    %c0_33 = arith.constant 0 : index
    %32 = vector.load %arg2[%c4, %c0_32, %c0_33] : memref<9x36x128xbf16, #tpu.memory_space<vmem>>, vector<1x36x128xbf16>
    %33 = vector.shape_cast %32 : vector<1x36x128xbf16> to vector<36x128xbf16>
    %cst_34 = arith.constant dense<0.000000e+00> : vector<128x128xf32>
    %34 = tpu.matmul %31, %33, %cst_34 {dimension_numbers = #tpu.dot_dimension_numbers<[1], [0], [0], [1], [0, 0, 1, 1], [], []>} : vector<128x36xbf16>, vector<36x128xbf16>, vector<128x128xf32> -> vector<128x128xf32>
    %35 = arith.addf %28, %34 : vector<128x128xf32>
    %c0_35 = arith.constant 0 : index
    %c1_36 = arith.constant 1 : index
    %c2_37 = arith.constant 2 : index
    %c0_38 = arith.constant 0 : index
    %36 = vector.load %arg1[%c0_35, %c1_36, %c2_37, %c0_38] : memref<1x10x18x36xbf16, #tpu.memory_space<vmem>>, vector<1x8x16x36xbf16>
    %37 = vector.shape_cast %36 : vector<1x8x16x36xbf16> to vector<8x16x36xbf16>
    %38 = vector.shape_cast %37 : vector<8x16x36xbf16> to vector<128x36xbf16>
    %c5 = arith.constant 5 : index
    %c0_39 = arith.constant 0 : index
    %c0_40 = arith.constant 0 : index
    %39 = vector.load %arg2[%c5, %c0_39, %c0_40] : memref<9x36x128xbf16, #tpu.memory_space<vmem>>, vector<1x36x128xbf16>
    %40 = vector.shape_cast %39 : vector<1x36x128xbf16> to vector<36x128xbf16>
    %cst_41 = arith.constant dense<0.000000e+00> : vector<128x128xf32>
    %41 = tpu.matmul %38, %40, %cst_41 {dimension_numbers = #tpu.dot_dimension_numbers<[1], [0], [0], [1], [0, 0, 1, 1], [], []>} : vector<128x36xbf16>, vector<36x128xbf16>, vector<128x128xf32> -> vector<128x128xf32>
    %42 = arith.addf %35, %41 : vector<128x128xf32>
    %c0_42 = arith.constant 0 : index
    %c2_43 = arith.constant 2 : index
    %c0_44 = arith.constant 0 : index
    %c0_45 = arith.constant 0 : index
    %43 = vector.load %arg1[%c0_42, %c2_43, %c0_44, %c0_45] : memref<1x10x18x36xbf16, #tpu.memory_space<vmem>>, vector<1x8x16x36xbf16>
    %44 = vector.shape_cast %43 : vector<1x8x16x36xbf16> to vector<8x16x36xbf16>
    %45 = vector.shape_cast %44 : vector<8x16x36xbf16> to vector<128x36xbf16>
    %c6 = arith.constant 6 : index
    %c0_46 = arith.constant 0 : index
    %c0_47 = arith.constant 0 : index
    %46 = vector.load %arg2[%c6, %c0_46, %c0_47] : memref<9x36x128xbf16, #tpu.memory_space<vmem>>, vector<1x36x128xbf16>
    %47 = vector.shape_cast %46 : vector<1x36x128xbf16> to vector<36x128xbf16>
    %cst_48 = arith.constant dense<0.000000e+00> : vector<128x128xf32>
    %48 = tpu.matmul %45, %47, %cst_48 {dimension_numbers = #tpu.dot_dimension_numbers<[1], [0], [0], [1], [0, 0, 1, 1], [], []>} : vector<128x36xbf16>, vector<36x128xbf16>, vector<128x128xf32> -> vector<128x128xf32>
    %49 = arith.addf %42, %48 : vector<128x128xf32>
    %c0_49 = arith.constant 0 : index
    %c2_50 = arith.constant 2 : index
    %c1_51 = arith.constant 1 : index
    %c0_52 = arith.constant 0 : index
    %50 = vector.load %arg1[%c0_49, %c2_50, %c1_51, %c0_52] : memref<1x10x18x36xbf16, #tpu.memory_space<vmem>>, vector<1x8x16x36xbf16>
    %51 = vector.shape_cast %50 : vector<1x8x16x36xbf16> to vector<8x16x36xbf16>
    %52 = vector.shape_cast %51 : vector<8x16x36xbf16> to vector<128x36xbf16>
    %c7 = arith.constant 7 : index
    %c0_53 = arith.constant 0 : index
    %c0_54 = arith.constant 0 : index
    %53 = vector.load %arg2[%c7, %c0_53, %c0_54] : memref<9x36x128xbf16, #tpu.memory_space<vmem>>, vector<1x36x128xbf16>
    %54 = vector.shape_cast %53 : vector<1x36x128xbf16> to vector<36x128xbf16>
    %cst_55 = arith.constant dense<0.000000e+00> : vector<128x128xf32>
    %55 = tpu.matmul %52, %54, %cst_55 {dimension_numbers = #tpu.dot_dimension_numbers<[1], [0], [0], [1], [0, 0, 1, 1], [], []>} : vector<128x36xbf16>, vector<36x128xbf16>, vector<128x128xf32> -> vector<128x128xf32>
    %56 = arith.addf %49, %55 : vector<128x128xf32>
    %c0_56 = arith.constant 0 : index
    %c2_57 = arith.constant 2 : index
    %c2_58 = arith.constant 2 : index
    %c0_59 = arith.constant 0 : index
    %57 = vector.load %arg1[%c0_56, %c2_57, %c2_58, %c0_59] : memref<1x10x18x36xbf16, #tpu.memory_space<vmem>>, vector<1x8x16x36xbf16>
    %58 = vector.shape_cast %57 : vector<1x8x16x36xbf16> to vector<8x16x36xbf16>
    %59 = vector.shape_cast %58 : vector<8x16x36xbf16> to vector<128x36xbf16>
    %c8 = arith.constant 8 : index
    %c0_60 = arith.constant 0 : index
    %c0_61 = arith.constant 0 : index
    %60 = vector.load %arg2[%c8, %c0_60, %c0_61] : memref<9x36x128xbf16, #tpu.memory_space<vmem>>, vector<1x36x128xbf16>
    %61 = vector.shape_cast %60 : vector<1x36x128xbf16> to vector<36x128xbf16>
    %cst_62 = arith.constant dense<0.000000e+00> : vector<128x128xf32>
    %62 = tpu.matmul %59, %61, %cst_62 {dimension_numbers = #tpu.dot_dimension_numbers<[1], [0], [0], [1], [0, 0, 1, 1], [], []>} : vector<128x36xbf16>, vector<36x128xbf16>, vector<128x128xf32> -> vector<128x128xf32>
    %63 = arith.addf %56, %62 : vector<128x128xf32>
    %c0_63 = arith.constant 0 : index
    %c0_64 = arith.constant 0 : index
    %c0_65 = arith.constant 0 : index
    %64 = vector.load %arg3[%c0_63, %c0_64, %c0_65] : memref<1x128x128xf32, #tpu.memory_space<vmem>>, vector<1x128x128xf32>
    %65 = vector.shape_cast %64 : vector<1x128x128xf32> to vector<128x128xf32>
    %66 = vector.shape_cast %63 : vector<128x128xf32> to vector<1x128x128xf32>
    tpu.vector_store %arg3[%c0_63, %c0_64, %c0_65], %66 {strides = array<i32>} : memref<1x128x128xf32, #tpu.memory_space<vmem>>, vector<1x128x128xf32>,
    %cst_66 = arith.constant dense<0.000000e+00> : vector<128xf32>
    %67 = vector.multi_reduction <add>, %63, %cst_66 [0] : vector<128x128xf32> to vector<128xf32>
    %68 = vector.shape_cast %67 : vector<128xf32> to vector<1x128xf32>
    %69 = arith.mulf %63, %63 : vector<128x128xf32>
    %cst_67 = arith.constant dense<0.000000e+00> : vector<128xf32>
    %70 = vector.multi_reduction <add>, %69, %cst_67 [0] : vector<128x128xf32> to vector<128xf32>
    %71 = vector.shape_cast %70 : vector<128xf32> to vector<1x128xf32>
    %72 = tpu.concatenate %68, %71 in 0 : vector<1x128xf32>, vector<1x128xf32> -> vector<2x128xf32>
    %c0_68 = arith.constant 0 : index
    %c0_69 = arith.constant 0 : index
    %c0_70 = arith.constant 0 : index
    %73 = vector.load %arg4[%c0_68, %c0_69, %c0_70] : memref<1x2x128xf32, #tpu.memory_space<vmem>>, vector<1x2x128xf32>
    %74 = vector.shape_cast %73 : vector<1x2x128xf32> to vector<2x128xf32>
    %75 = vector.shape_cast %72 : vector<2x128xf32> to vector<1x2x128xf32>
    tpu.vector_store %arg4[%c0_68, %c0_69, %c0_70], %75 {strides = array<i32>} : memref<1x2x128xf32, #tpu.memory_space<vmem>>, vector<1x2x128xf32>,
    return
  }
  func.func @transform_0(%arg0: i32) -> (i32, i32, i32, i32) {
    %c0_i32 = arith.constant 0 : i32
    %c0_i32_0 = arith.constant 0 : i32
    %c0_i32_1 = arith.constant 0 : i32
    %c0_i32_2 = arith.constant 0 : i32
    return %arg0, %c0_i32, %c0_i32_0, %c0_i32_1 : i32, i32, i32, i32
  }
  func.func @transform_1(%arg0: i32) -> (i32, i32, i32) {
    %c0_i32 = arith.constant 0 : i32
    %c0_i32_0 = arith.constant 0 : i32
    %c0_i32_1 = arith.constant 0 : i32
    %c0_i32_2 = arith.constant 0 : i32
    return %c0_i32, %c0_i32_0, %c0_i32_1 : i32, i32, i32
  }
  func.func @transform_2(%arg0: i32) -> (i32, i32, i32) {
    %c0_i32 = arith.constant 0 : i32
    %c0_i32_0 = arith.constant 0 : i32
    %c0_i32_1 = arith.constant 0 : i32
    return %arg0, %c0_i32, %c0_i32_0 : i32, i32, i32
  }
  func.func @transform_3(%arg0: i32) -> (i32, i32, i32) {
    %c0_i32 = arith.constant 0 : i32
    %c0_i32_0 = arith.constant 0 : i32
    %c0_i32_1 = arith.constant 0 : i32
    return %arg0, %c0_i32, %c0_i32_0 : i32, i32, i32
  }
}

</mosaic_0001>

<bundles_post_ra>
// kernel: squeeze.4
= control target key start
LH: loop header
LB: loop body
LE: loop exit
PB: predicated region body
PF: predicated region fallthrough
CT: control target
= control target key end

     0   :  { %s40_s8 = smov 32   ;;  %vm8_vm0 = vcmask 261120   ;;  %s41_s9 = smov 64   ;;  %s58_s0 = inlined_call_operand.vmem [shape: f32[128], index: 0, kind: input, shape index: {}]   ;;  %s59_s1 = inlined_call_operand.vmem [shape: f32[4,32], index: 1, kind: output, shape index: {}]  }
   0x1   :  { %v5_v0 = vld [vmem:[%s58_s0] sm:$0x1]  ;;  %s39_s0 = smov 96  }
   0x2   :  { %6 = vst [vmem:[#allocation1] sm:$0x1] %v5_v0 }
   0x9   :  { %v10_v1 = vld [vmem:[#allocation1] sm:$0x1]  }
   0xa   :  { %v22_v2 = vld [vmem:[#allocation1] sm:$0x1]   ;;  %11 = vrot.lane.b32.xlu0 %v10_v1, %s39_s0 }
   0xb   :  { %23 = vrot.lane.b32.xlu1 %v22_v2, %s40_s8  ;;  %v7_v3 = vld [vmem:[#allocation1] sm:$0x1]  }
   0xc   :  { %v16_v4 = vld [vmem:[#allocation1] sm:$0x1]   ;;  %9 = vst.msk [vmem:[#allocation0] sm:$0x1] %vm8_vm0, %v7_v3  }
   0xe   :  { %17 = vrot.lane.b32.xlu0 %v16_v4, %s41_s9 }
  0x7c   :  { %v12_v5 = vpop.permute.xlu0 %11  }
  0x7d   :  { %v24_v6 = vpop.permute.xlu1 %23   ;;  %15 = vst.msk [vmem:[#allocation0 + $0x1] sm:$0x1] %vm8_vm0, %v12_v5  }
  0x7e   :  { %27 = vst.msk [vmem:[#allocation0 + $0x3] sm:$0x1] %vm8_vm0, %v24_v6  }
  0x80   :  { %v18_v7 = vpop.permute.xlu0 %17  }
  0x81   :  { %21 = vst.msk [vmem:[#allocation0 + $0x2] sm:$0x1] %vm8_vm0, %v18_v7  }
  0x88   :  { %v32_v8 = vld [vmem:[#allocation0] sm:$0xf] }
  0x89   :  { %35 = vst [vmem:[%s59_s1] sm:$0xf] %v32_v8 }

// kernel: tile.18
= control target key start
LH: loop header
LB: loop body
LE: loop exit
PB: predicated region body
PF: predicated region fallthrough
CT: control target
= control target key end

     0   :  { %s22_s0 = inlined_call_operand.vmem [shape: f32[32], index: 0, kind: input, shape index: {}]   ;;  %s23_s1 = inlined_call_operand.vmem [shape: f32[4,32], index: 1, kind: output, shape index: {}]  }
   0x1   :  { %v4_v0 = vld [vmem:[%s22_s0] ss:$0 sm:$0xff] }
   0x2   :  { %5 = vst [vmem:[%s23_s1] sm:$0xf] %v4_v0 }

// kernel: tile.19
= control target key start
LH: loop header
LB: loop body
LE: loop exit
PB: predicated region body
PF: predicated region fallthrough
CT: control target
= control target key end

     0   :  { %vm8_vm0 = vcmask 261120   ;;  %s40_s8 = smov 32   ;;  %s41_s9 = smov 64   ;;  %vm14_vm1 = vcmask 1048320   ;;  %vm20_vm2 = vcmask 785920   ;;  %vm26_vm3 = vcmask 523520   ;;  %s58_s0 = inlined_call_operand.vmem [shape: f32[4,32], index: 0, kind: input, shape index: {}]   ;;  %s59_s1 = inlined_call_operand.vmem [shape: f32[1,128], index: 1, kind: output, shape index: {}]  }
   0x1   :  { %v5_v0 = vld [vmem:[%s58_s0] sm:$0xf]  ;;  %s39_s0 = smov 96  }
   0x2   :  { %6 = vst [vmem:[#allocation1] sm:$0xf] %v5_v0 }
   0x9   :  { %v11_v1 = vld [vmem:[#allocation1 + $0x3] sm:$0x1]   ;;  %v23_v2 = vld [vmem:[#allocation1 + $0x1] sm:$0x1]   ;;  %v7_v3 = vld [vmem:[#allocation1] sm:$0x1]  }
   0xa   :  { %12 = vrot.lane.b32.xlu0 %v11_v1, %s39_s0  ;;  %24 = vrot.lane.b32.xlu1 %v23_v2, %s40_s8  ;;  %v17_v4 = vld [vmem:[#allocation1 + $0x2] sm:$0x1]   ;;  %9 = vst.msk [vmem:[#allocation0] sm:$0x1] %vm8_vm0, %v7_v3  }
   0xe   :  { %18 = vrot.lane.b32.xlu0 %v17_v4, %s41_s9 }
  0x7c   :  { %v13_v5 = vpop.permute.xlu0 %12   ;;  %v25_v6 = vpop.permute.xlu1 %24  }
  0x7d   :  { %15 = vst.msk [vmem:[#allocation0] sm:$0x1] %vm14_vm1, %v13_v5  }
  0x80   :  { %v19_v7 = vpop.permute.xlu0 %18  }
  0x81   :  { %21 = vst.msk [vmem:[#allocation0] sm:$0x1] %vm20_vm2, %v19_v7  }
  0x82   :  { %27 = vst.msk [vmem:[#allocation0] sm:$0x1] %vm26_vm3, %v25_v6  }
  0x89   :  { %v32_v8 = vld [vmem:[#allocation0] sm:$0x1] }
  0x8a   :  { %35 = vst [vmem:[%s59_s1] sm:$0x1] %v32_v8 }

// kernel: up_forward.4
= control target key start
LH: loop header
LB: loop body
LE: loop exit
PB: predicated region body
PF: predicated region fallthrough
CT: control target
= control target key end

     0   :  { %vm96_vm0 = vcmask 1043456   ;;  %vm71_vm1 = vcmask 64512   ;;  %vm271_vm2 = vcmask 1040384   ;;  %s443_s1 = inlined_call_operand.vmem [shape: bf16[8,128], index: 1, kind: input, shape index: {}]   ;;  %s444_s0 = inlined_call_operand.vmem [shape: bf16[128,8], index: 0, kind: input, shape index: {}]   ;;  %s445_s2 = inlined_call_operand.vmem [shape: f32[128,128], index: 2, kind: output, shape index: {0}]   ;;  %s446_s3 = inlined_call_operand.vmem [shape: f32[1,2,128], index: 3, kind: output, shape index: {1}]  }
   0x1   :  { %v30_v0 = vld [vmem:[%s443_s1] sm:$0xf]  ;;  %v330_v3 = vld [vmem:[%s444_s0 + $0x8] sm:$0xff]   ;;  %v331_v4 = vld [vmem:[%s444_s0 + $0x10] sm:$0xff]  }
   0x2   :  { %327 = vmatprep.subr.msk.bf16.mxu0 %vm96_vm0, %v30_v0  ;;  %v98_v1 = vsel %vm96_vm0, %v30_v0, 0  ;;  %v329_v2 = vld [vmem:[%s444_s0] sm:$0xff]   ;;  %328 = vmatprep.subr.msk.bf16.mxu1 %vm96_vm0, %v30_v0  ;;  %v334_v6 = vld [vmem:[%s444_s0 + $0x28] sm:$0xff]   ;;  %v335_v7 = vld [vmem:[%s444_s0 + $0x30] sm:$0xff]  }
   0x3   :  { %308 = vmatpush3.bf16.msra.mxu0 %v98_v1  ;;  %326 = vmatpush3.bf16.msra.mxu1 %v98_v1  ;;  %v333_v5 = vld [vmem:[%s444_s0 + $0x20] sm:$0xff]   ;;  %v332_v8 = vld [vmem:[%s444_s0 + $0x18] sm:$0xff]  }
   0x4   :  { %309 = vmatprep.mubr.msk.bf16.mxu0 %vm71_vm1, %v329_v2  ;;  %317 = vmatprep.mubr.msk.bf16.mxu1 %vm71_vm1, %v333_v5  ;;  %v336_v9 = vld [vmem:[%s444_s0 + $0x38] sm:$0xff]  }
   0x6   :  { %310 = vmatmul.mubr.msk.bf16.vlgmr.msra.gmra.mxu0 %vm71_vm1, %v330_v3  ;;  %318 = vmatmul.mubr.msk.bf16.vlgmr.msra.gmra.mxu1 %vm71_vm1, %v334_v6 }
   0x7   :  { %313 = vmatprep.mubr.msk.bf16.mxu0 %vm71_vm1, %v331_v4  ;;  %321 = vmatprep.mubr.msk.bf16.mxu1 %vm71_vm1, %v335_v7 }
   0xe   :  { %314 = vmatmul.mubr.msk.bf16.gmra.mxu0 %vm71_vm1, %v332_v8  ;;  %322 = vmatmul.mubr.msk.bf16.gmra.mxu1 %vm71_vm1, %v336_v9 }
  0xc6   :  { %v311_v10 = vpop.f32.mrf.mxu0  ;;  %v319_v12 = vpop.f32.mrf.mxu1 }
  0xc7   :  { %199 = vst [vmem:[%s445_s2 + $0x10] sm:$0xff] %v311_v10  ;;  %207 = vst [vmem:[%s445_s2 + $0x50] sm:$0xff] %v319_v12  ;;  %v236_v21 = vmul.f32 %v311_v10, %v311_v10  ;;  %v244_v53 = vmul.f32 %v319_v12, %v319_v12 }
  0xc8   :  { %v134_v11 = vpop.f32.mrf.mxu0  ;;  %v166_v14 = vpop.f32.mrf.mxu1 }
  0xc9   :  { %197 = vst [vmem:[%s445_s2] sm:$0xff] %v134_v11  ;;  %205 = vst [vmem:[%s445_s2 + $0x40] sm:$0xff] %v166_v14  ;;  %v234_v16 = vmul.f32 %v134_v11, %v134_v11  ;;  %v242_v47 = vmul.f32 %v166_v14, %v166_v14 }
  0xca   :  { %v312_v13 = vpop.f32.mrf.mxu0  ;;  %v320_v19 = vpop.f32.mrf.mxu1 }
  0xcb   :  { %200 = vst [vmem:[%s445_s2 + $0x18] sm:$0xff] %v312_v13  ;;  %208 = vst [vmem:[%s445_s2 + $0x58] sm:$0xff] %v320_v19  ;;  %v237_v26 = vmul.f32 %v312_v13, %v312_v13  ;;  %v245_v56 = vmul.f32 %v320_v19, %v320_v19 }
  0xcc   :  { %v137_v15 = vpop.f32.mrf.mxu0  ;;  %v169_v24 = vpop.f32.mrf.mxu1 }
  0xcd   :  { %198 = vst [vmem:[%s445_s2 + $0x8] sm:$0xff] %v137_v15  ;;  %v213_v17 = vadd.f32 %v137_v15, %v134_v11  ;;  %v235_v18 = vmul.f32 %v137_v15, %v137_v15  ;;  %206 = vst [vmem:[%s445_s2 + $0x48] sm:$0xff] %v169_v24  ;;  %v243_v51 = vmul.f32 %v169_v24, %v169_v24 }
  0xce   :  { %v315_v20 = vpop.f32.mrf.mxu0  ;;  %v323_v29 = vpop.f32.mrf.mxu1 }
  0xcf   :  { %v214_v22 = vadd.f32 %v311_v10, %v213_v17  ;;  %v250_v23 = vadd.f32 %v235_v18, %v234_v16  ;;  %203 = vst [vmem:[%s445_s2 + $0x30] sm:$0xff] %v315_v20  ;;  %211 = vst [vmem:[%s445_s2 + $0x70] sm:$0xff] %v323_v29  ;;  %v240_v40 = vmul.f32 %v315_v20, %v315_v20 }
  0xd0   :  { %v150_v25 = vpop.f32.mrf.mxu0  ;;  %v182_v34 = vpop.f32.mrf.mxu1  ;;  %v248_v1 = vmul.f32 %v323_v29, %v323_v29 }
  0xd1   :  { %v251_v27 = vadd.f32 %v250_v23, %v236_v21  ;;  %201 = vst [vmem:[%s445_s2 + $0x20] sm:$0xff] %v150_v25  ;;  %v215_v28 = vadd.f32 %v312_v13, %v214_v22  ;;  %v238_v32 = vmul.f32 %v150_v25, %v150_v25  ;;  %209 = vst [vmem:[%s445_s2 + $0x60] sm:$0xff] %v182_v34 }
  0xd2   :  { %v316_v30 = vpop.f32.mrf.mxu0  ;;  %v324_v39 = vpop.f32.mrf.mxu1  ;;  %v246_v60 = vmul.f32 %v182_v34, %v182_v34 }
  0xd3   :  { %v216_v31 = vadd.f32 %v215_v28, %v150_v25  ;;  %v252_v33 = vadd.f32 %v251_v27, %v237_v26  ;;  %204 = vst [vmem:[%s445_s2 + $0x38] sm:$0xff] %v316_v30  ;;  %212 = vst [vmem:[%s445_s2 + $0x78] sm:$0xff] %v324_v39  ;;  %v241_v44 = vmul.f32 %v316_v30, %v316_v30 }
  0xd4   :  { %v153_v35 = vpop.f32.mrf.mxu0  ;;  %v185_v43 = vpop.f32.mrf.mxu1  ;;  %v249_v4 = vmul.f32 %v324_v39, %v324_v39 }
  0xd5   :  { %v253_v36 = vadd.f32 %v252_v33, %v238_v32  ;;  %202 = vst [vmem:[%s445_s2 + $0x28] sm:$0xff] %v153_v35  ;;  %v217_v37 = vadd.f32 %v216_v31, %v153_v35  ;;  %v239_v38 = vmul.f32 %v153_v35, %v153_v35  ;;  %210 = vst [vmem:[%s445_s2 + $0x68] sm:$0xff] %v185_v43 }
  0xd6   :  { %v247_v0 = vmul.f32 %v185_v43, %v185_v43 }
  0xd7   :  { %v218_v41 = vadd.f32 %v315_v20, %v217_v37  ;;  %v254_v42 = vadd.f32 %v253_v36, %v239_v38 }
  0xd9   :  { %v219_v45 = vadd.f32 %v316_v30, %v218_v41  ;;  %v255_v46 = vadd.f32 %v254_v42, %v240_v40 }
  0xdb   :  { %v256_v48 = vadd.f32 %v255_v46, %v241_v44  ;;  %v220_v49 = vadd.f32 %v219_v45, %v166_v14 }
  0xdd   :  { %v221_v50 = vadd.f32 %v220_v49, %v169_v24  ;;  %v257_v52 = vadd.f32 %v256_v48, %v242_v47 }
  0xdf   :  { %v222_v54 = vadd.f32 %v319_v12, %v221_v50  ;;  %v258_v55 = vadd.f32 %v257_v52, %v243_v51 }
  0xe1   :  { %v259_v57 = vadd.f32 %v258_v55, %v244_v53  ;;  %v223_v58 = vadd.f32 %v320_v19, %v222_v54 }
  0xe3   :  { %v224_v59 = vadd.f32 %v223_v58, %v182_v34  ;;  %v260_v61 = vadd.f32 %v259_v57, %v245_v56 }
  0xe5   :  { %v261_v62 = vadd.f32 %v260_v61, %v246_v60  ;;  %v225_v63 = vadd.f32 %v224_v59, %v185_v43 }
  0xe7   :  { %v226_v2 = vadd.f32 %v323_v29, %v225_v63  ;;  %v262_v3 = vadd.f32 %v261_v62, %v247_v0 }
  0xe9   :  { %v227_v5 = vadd.f32 %v324_v39, %v226_v2  ;;  %v263_v6 = vadd.f32 %v262_v3, %v248_v1 }
  0xeb   :  { %v228_v7 = vrot.slane %v227_v5, 4  ;;  %v264_v8 = vadd.f32 %v263_v6, %v249_v4 }
  0xed   :  { %v229_v9 = vadd.f32 %v228_v7, %v227_v5  ;;  %v265_v10 = vrot.slane %v264_v8, 4 }
  0xef   :  { %v230_v11 = vrot.slane %v229_v9, 2  ;;  %v266_v12 = vadd.f32 %v265_v10, %v264_v8 }
  0xf1   :  { %v231_v13 = vadd.f32 %v230_v11, %v229_v9  ;;  %v267_v14 = vrot.slane %v266_v12, 2 }
  0xf3   :  { %v232_v15 = vrot.slane %v231_v13, 1  ;;  %v268_v16 = vadd.f32 %v267_v14, %v266_v12 }
  0xf5   :  { %v269_v17 = vrot.slane %v268_v16, 1  ;;  %v233_v18 = vadd.f32 %v232_v15, %v231_v13 }
  0xf7   :  { %v270_v19 = vadd.f32 %v269_v17, %v268_v16 }
  0xf9   :  { %v272_v20 = vsel %vm271_vm2, %v233_v18, %v270_v19 }
  0xfa   :  { %273 = vst [vmem:[%s446_s3] sm:$0x3] %v272_v20 }

// kernel: up_forward.5
= control target key start
LH: loop header
LB: loop body
LE: loop exit
PB: predicated region body
PF: predicated region fallthrough
CT: control target
= control target key end

     0   :  { %s391_s0 = inlined_call_operand.vmem [shape: f32[128,128], index: 0, kind: input, shape index: {}]   ;;  %s392_s1 = inlined_call_operand.vmem [shape: f32[1,128], index: 1, kind: input, shape index: {}]   ;;  %s393_s2 = inlined_call_operand.vmem [shape: f32[1,128], index: 2, kind: input, shape index: {}]   ;;  %s394_s3 = inlined_call_operand.vmem [shape: bf16[128,128], index: 3, kind: output, shape index: {}]  }
   0x1   :  { %v14_v0 = vld [vmem:[%s391_s0] sm:$0xff]  ;;  %v15_v1 = vld [vmem:[%s391_s0 + $0x8] sm:$0xff]  ;;  %v16_v6 = vld [vmem:[%s391_s0 + $0x10] sm:$0xff] }
   0x2   :  { %v286_v2 = vld [vmem:[%s392_s1] ss:$0 sm:$0xff]  ;;  %v17_v7 = vld [vmem:[%s391_s0 + $0x18] sm:$0xff]  ;;  %v19_v11 = vld [vmem:[%s391_s0 + $0x28] sm:$0xff] }
   0x3   :  { %v37_v3 = vmul.f32 %v286_v2, %v14_v0  ;;  %v38_v4 = vmul.f32 %v286_v2, %v15_v1  ;;  %v293_v5 = vld [vmem:[%s393_s2] ss:$0 sm:$0xff]  ;;  %v39_v8 = vmul.f32 %v286_v2, %v16_v6  ;;  %v40_v9 = vmul.f32 %v286_v2, %v17_v7  ;;  %v20_v12 = vld [vmem:[%s391_s0 + $0x30] sm:$0xff]  ;;  %v21_v17 = vld [vmem:[%s391_s0 + $0x38] sm:$0xff] }
   0x4   :  { %v18_v10 = vld [vmem:[%s391_s0 + $0x20] sm:$0xff]  ;;  %v42_v16 = vmul.f32 %v286_v2, %v19_v11  ;;  %v43_v20 = vmul.f32 %v286_v2, %v20_v12  ;;  %v44_v21 = vmul.f32 %v286_v2, %v21_v17  ;;  %v23_v27 = vld [vmem:[%s391_s0 + $0x48] sm:$0xff]  ;;  %v24_v32 = vld [vmem:[%s391_s0 + $0x50] sm:$0xff] }
   0x5   :  { %v60_v13 = vadd.f32 %v293_v5, %v37_v3  ;;  %v61_v14 = vadd.f32 %v293_v5, %v38_v4  ;;  %v41_v15 = vmul.f32 %v286_v2, %v18_v10  ;;  %v62_v18 = vadd.f32 %v293_v5, %v39_v8  ;;  %v22_v22 = vld [vmem:[%s391_s0 + $0x40] sm:$0xff]  ;;  %v25_v33 = vld [vmem:[%s391_s0 + $0x58] sm:$0xff]  ;;  %v27_v39 = vld [vmem:[%s391_s0 + $0x68] sm:$0xff] }
   0x6   :  { %v63_v19 = vadd.f32 %v293_v5, %v40_v9  ;;  %v65_v26 = vadd.f32 %v293_v5, %v42_v16  ;;  %v66_v30 = vadd.f32 %v293_v5, %v43_v20  ;;  %v67_v31 = vadd.f32 %v293_v5, %v44_v21  ;;  %v26_v38 = vld [vmem:[%s391_s0 + $0x60] sm:$0xff]  ;;  %v28_v44 = vld [vmem:[%s391_s0 + $0x70] sm:$0xff]  ;;  %v29_v49 = vld [vmem:[%s391_s0 + $0x78] sm:$0xff] }
   0x7   :  { %v76_v23 = vmax.f32 %v60_v13, 0.0  ;;  %v77_v24 = vmax.f32 %v61_v14, 0.0  ;;  %v64_v25 = vadd.f32 %v293_v5, %v41_v15  ;;  %v78_v28 = vmax.f32 %v62_v18, 0.0 }
   0x8   :  { %v79_v29 = vmax.f32 %v63_v19, 0.0  ;;  %v81_v36 = vmax.f32 %v65_v26, 0.0  ;;  %v45_v37 = vmul.f32 %v286_v2, %v22_v22  ;;  %v82_v41 = vmax.f32 %v66_v30, 0.0 }
   0x9   :  { %v213_v34 = vpack.c.bf16 %v77_v24, %v76_v23  ;;  %v80_v35 = vmax.f32 %v64_v25, 0.0  ;;  %v83_v42 = vmax.f32 %v67_v31, 0.0  ;;  %v46_v43 = vmul.f32 %v286_v2, %v23_v27 }
   0xa   :  { %v218_v40 = vpack.c.bf16 %v79_v29, %v78_v28  ;;  %v68_v46 = vadd.f32 %v293_v5, %v45_v37  ;;  %v47_v47 = vmul.f32 %v286_v2, %v24_v32  ;;  %v48_v48 = vmul.f32 %v286_v2, %v25_v33 }
   0xb   :  { %214 = vst [vmem:[%s394_s3] sm:$0xff] %v213_v34   ;;  %v223_v45 = vpack.c.bf16 %v81_v36, %v80_v35  ;;  %v228_v50 = vpack.c.bf16 %v83_v42, %v82_v41  ;;  %v69_v51 = vadd.f32 %v293_v5, %v46_v43  ;;  %v49_v52 = vmul.f32 %v286_v2, %v26_v38 }
   0xc   :  { %250 = vst [vmem:[%s394_s3 + $0x8] sm:$0xff] %v218_v40   ;;  %v50_v53 = vmul.f32 %v286_v2, %v27_v39  ;;  %v84_v54 = vmax.f32 %v68_v46, 0.0  ;;  %v70_v55 = vadd.f32 %v293_v5, %v47_v47  ;;  %v71_v56 = vadd.f32 %v293_v5, %v48_v48 }
   0xd   :  { %251 = vst [vmem:[%s394_s3 + $0x10] sm:$0xff] %v223_v45   ;;  %v51_v57 = vmul.f32 %v286_v2, %v28_v44  ;;  %252 = vst [vmem:[%s394_s3 + $0x18] sm:$0xff] %v228_v50   ;;  %v85_v58 = vmax.f32 %v69_v51, 0.0  ;;  %v72_v59 = vadd.f32 %v293_v5, %v49_v52  ;;  %v52_v61 = vmul.f32 %v286_v2, %v29_v49 }
   0xe   :  { %v73_v60 = vadd.f32 %v293_v5, %v50_v53  ;;  %v86_v62 = vmax.f32 %v70_v55, 0.0  ;;  %v87_v63 = vmax.f32 %v71_v56, 0.0 }
   0xf   :  { %v74_v0 = vadd.f32 %v293_v5, %v51_v57  ;;  %v233_v1 = vpack.c.bf16 %v85_v58, %v84_v54  ;;  %v88_v3 = vmax.f32 %v72_v59, 0.0  ;;  %v75_v6 = vadd.f32 %v293_v5, %v52_v61 }
  0x10   :  { %v89_v4 = vmax.f32 %v73_v60, 0.0  ;;  %v238_v7 = vpack.c.bf16 %v87_v63, %v86_v62 }
  0x11   :  { %v90_v8 = vmax.f32 %v74_v0, 0.0  ;;  %253 = vst [vmem:[%s394_s3 + $0x20] sm:$0xff] %v233_v1   ;;  %v91_v10 = vmax.f32 %v75_v6, 0.0 }
  0x12   :  { %v243_v9 = vpack.c.bf16 %v89_v4, %v88_v3  ;;  %254 = vst [vmem:[%s394_s3 + $0x28] sm:$0xff] %v238_v7  }
  0x13   :  { %v248_v2 = vpack.c.bf16 %v91_v10, %v90_v8 }
  0x14   :  { %255 = vst [vmem:[%s394_s3 + $0x30] sm:$0xff] %v243_v9  }
  0x15   :  { %256 = vst [vmem:[%s394_s3 + $0x38] sm:$0xff] %v248_v2  }

// kernel: up_forward.7
= control target key start
LH: loop header
LB: loop body
LE: loop exit
PB: predicated region body
PF: predicated region fallthrough
CT: control target
= control target key end

     0   :  { %s453_s12 = smov 0   ;;  %s612_s0 = inlined_call_operand.vmem [shape: f32[512,128], index: 0, kind: input, shape index: {}]   ;;  %s613_s1 = inlined_call_operand.vmem [shape: f32[1,128], index: 1, kind: input, shape index: {}]   ;;  %s614_s2 = inlined_call_operand.vmem [shape: f32[1,128], index: 2, kind: input, shape index: {}]   ;;  %s615_s3 = inlined_call_operand.vmem [shape: f32[512,128], index: 3, kind: output, shape index: {}]  }
   0x1 LB: > { %s404_s13 = sadd.s32 4294967295, %s431_s12   ;;  %p408_p0 = scmp.ge.s32.totalorder %s431_s12, 1  ;;  %s431_s12 = sphi %s453_s12, %s13_s12  }
   0x2   : > { %p138_p1 = scmp.lt.s32.totalorder %s431_s12, 3 }
   0x4   : > { %p139_p2 = pnand %p408_p0, %p138_p1 }
   0x5   : > { %s409_s14 = sshll.u32 (!%p139_p2), %s404_s13, 5 }
   0x6   : > { %142 = sbr.rel (%p139_p2) target bundleno = 44 (0x2c), region = 32  ;;  %p163_p3 = scmp.lt.s32.totalorder (!%p139_p2), %s409_s14, 63 }
   0xb   : > { %s617_s14 = smov (!%p163_p3, %s409_s14), 63  ;;  %v464_v0 = vld [vmem:[%s613_s1] ss:$0 sm:$0xff] }
   0xc   : > { %s410_s15 = sshll.u32 %s617_s14, 3  ;;  %v474_v1 = vld [vmem:[%s614_s2] ss:$0 sm:$0xff] }
   0xd   : > { %s469_s20 = scalar_lea.vmem %s612_s0, %s410_s15  ;;  %s497_s25 = scalar_lea.vmem %s615_s3, %s410_s15 }
   0xe   : > { %v174_v2 = vld [vmem:[%s469_s20] sm:$0xff]  ;;  %v175_v3 = vld [vmem:[%s469_s20 + $0x8] sm:$0xff]  ;;  %v176_v4 = vld [vmem:[%s469_s20 + $0x10] sm:$0xff] }
   0xf   : > { %v213_v5 = vmul.f32 %v464_v0, %v174_v2  ;;  %v214_v6 = vmul.f32 %v464_v0, %v175_v3  ;;  %v215_v7 = vmul.f32 %v464_v0, %v176_v4  ;;  %v177_v8 = vld [vmem:[%s469_s20 + $0x18] sm:$0xff]  ;;  %v178_v9 = vld [vmem:[%s469_s20 + $0x20] sm:$0xff]  ;;  %v179_v10 = vld [vmem:[%s469_s20 + $0x28] sm:$0xff] }
  0x10   : > { %v216_v11 = vmul.f32 %v464_v0, %v177_v8  ;;  %v217_v12 = vmul.f32 %v464_v0, %v178_v9  ;;  %v218_v13 = vmul.f32 %v464_v0, %v179_v10  ;;  %v180_v14 = vld [vmem:[%s469_s20 + $0x30] sm:$0xff]  ;;  %v181_v15 = vld [vmem:[%s469_s20 + $0x38] sm:$0xff]  ;;  %v182_v24 = vld [vmem:[%s469_s20 + $0x40] sm:$0xff] }
  0x11   : > { %v252_v16 = vadd.f32 %v474_v1, %v213_v5  ;;  %v253_v17 = vadd.f32 %v474_v1, %v214_v6  ;;  %v254_v18 = vadd.f32 %v474_v1, %v215_v7  ;;  %v219_v19 = vmul.f32 %v464_v0, %v180_v14  ;;  %v183_v25 = vld [vmem:[%s469_s20 + $0x48] sm:$0xff]  ;;  %v184_v26 = vld [vmem:[%s469_s20 + $0x50] sm:$0xff]  ;;  %v185_v31 = vld [vmem:[%s469_s20 + $0x58] sm:$0xff] }
  0x12   : > { %v255_v20 = vadd.f32 %v474_v1, %v216_v11  ;;  %v256_v21 = vadd.f32 %v474_v1, %v217_v12  ;;  %v257_v22 = vadd.f32 %v474_v1, %v218_v13  ;;  %v220_v23 = vmul.f32 %v464_v0, %v181_v15  ;;  %v186_v32 = vld [vmem:[%s469_s20 + $0x60] sm:$0xff]  ;;  %v187_v33 = vld [vmem:[%s469_s20 + $0x68] sm:$0xff]  ;;  %v188_v38 = vld [vmem:[%s469_s20 + $0x70] sm:$0xff] }
  0x13   : > { %v284_v27 = vmax.f32 %v252_v16, 0.0  ;;  %v285_v28 = vmax.f32 %v253_v17, 0.0  ;;  %v286_v29 = vmax.f32 %v254_v18, 0.0  ;;  %v258_v30 = vadd.f32 %v474_v1, %v219_v19  ;;  %v189_v43 = vld [vmem:[%s469_s20 + $0x78] sm:$0xff]  ;;  %v190_v56 = vld [vmem:[%s469_s20 + $0x80] sm:$0xff]  ;;  %v191_v57 = vld [vmem:[%s469_s20 + $0x88] sm:$0xff] }
  0x14   : > { %v287_v34 = vmax.f32 %v255_v20, 0.0  ;;  %v288_v35 = vmax.f32 %v256_v21, 0.0  ;;  %v289_v36 = vmax.f32 %v257_v22, 0.0  ;;  %v259_v37 = vadd.f32 %v474_v1, %v220_v23  ;;  %v192_v58 = vld [vmem:[%s469_s20 + $0x90] sm:$0xff]  ;;  %v193_v63 = vld [vmem:[%s469_s20 + $0x98] sm:$0xff]  ;;  %v194_v2 = vld [vmem:[%s469_s20 + $0xa0] sm:$0xff] }
  0x15   : > { %316 = vst [vmem:[%s497_s25] sm:$0xff] %v284_v27  ;;  %317 = vst [vmem:[%s497_s25 + $0x8] sm:$0xff] %v285_v28  ;;  %v290_v39 = vmax.f32 %v258_v30, 0.0  ;;  %v221_v40 = vmul.f32 %v464_v0, %v182_v24  ;;  %v222_v41 = vmul.f32 %v464_v0, %v183_v25  ;;  %v223_v42 = vmul.f32 %v464_v0, %v184_v26  ;;  %v195_v3 = vld [vmem:[%s469_s20 + $0xa8] sm:$0xff]  ;;  %v196_v8 = vld [vmem:[%s469_s20 + $0xb0] sm:$0xff] }
  0x16   : > { %318 = vst [vmem:[%s497_s25 + $0x10] sm:$0xff] %v286_v29  ;;  %319 = vst [vmem:[%s497_s25 + $0x18] sm:$0xff] %v287_v34  ;;  %v291_v44 = vmax.f32 %v259_v37, 0.0  ;;  %v224_v45 = vmul.f32 %v464_v0, %v185_v31  ;;  %v225_v46 = vmul.f32 %v464_v0, %v186_v32  ;;  %v226_v47 = vmul.f32 %v464_v0, %v187_v33  ;;  %v197_v13 = vld [vmem:[%s469_s20 + $0xb8] sm:$0xff]  ;;  %v198_v26 = vld [vmem:[%s469_s20 + $0xc0] sm:$0xff] }
  0x17   : > { %320 = vst [vmem:[%s497_s25 + $0x20] sm:$0xff] %v288_v35  ;;  %321 = vst [vmem:[%s497_s25 + $0x28] sm:$0xff] %v289_v36  ;;  %v260_v48 = vadd.f32 %v474_v1, %v221_v40  ;;  %v261_v49 = vadd.f32 %v474_v1, %v222_v41  ;;  %v262_v50 = vadd.f32 %v474_v1, %v223_v42  ;;  %v199_v27 = vld [vmem:[%s469_s20 + $0xc8] sm:$0xff]  ;;  %v200_v28 = vld [vmem:[%s469_s20 + $0xd0] sm:$0xff] }
  0x18   : > { %322 = vst [vmem:[%s497_s25 + $0x30] sm:$0xff] %v290_v39  ;;  %v227_v51 = vmul.f32 %v464_v0, %v188_v38  ;;  %323 = vst [vmem:[%s497_s25 + $0x38] sm:$0xff] %v291_v44  ;;  %v263_v52 = vadd.f32 %v474_v1, %v224_v45  ;;  %v264_v53 = vadd.f32 %v474_v1, %v225_v46  ;;  %v201_v33 = vld [vmem:[%s469_s20 + $0xd8] sm:$0xff]  ;;  %v202_v34 = vld [vmem:[%s469_s20 + $0xe0] sm:$0xff] }
  0x19   : > { %v265_v54 = vadd.f32 %v474_v1, %v226_v47  ;;  %v228_v55 = vmul.f32 %v464_v0, %v189_v43  ;;  %v292_v59 = vmax.f32 %v260_v48, 0.0  ;;  %v293_v60 = vmax.f32 %v261_v49, 0.0  ;;  %v203_v35 = vld [vmem:[%s469_s20 + $0xe8] sm:$0xff]  ;;  %v204_v40 = vld [vmem:[%s469_s20 + $0xf0] sm:$0xff]  ;;  %v205_v45 = vld [vmem:[%s469_s20 + $0xf8] sm:$0xff] }
  0x1a   : > { %v294_v61 = vmax.f32 %v262_v50, 0.0  ;;  %v266_v62 = vadd.f32 %v474_v1, %v227_v51  ;;  %v295_v4 = vmax.f32 %v263_v52, 0.0  ;;  %v296_v5 = vmax.f32 %v264_v53, 0.0 }
  0x1b   : > { %v297_v6 = vmax.f32 %v265_v54, 0.0  ;;  %v267_v7 = vadd.f32 %v474_v1, %v228_v55  ;;  %324 = vst [vmem:[%s497_s25 + $0x40] sm:$0xff] %v292_v59  ;;  %325 = vst [vmem:[%s497_s25 + $0x48] sm:$0xff] %v293_v60  ;;  %v229_v10 = vmul.f32 %v464_v0, %v190_v56  ;;  %v230_v11 = vmul.f32 %v464_v0, %v191_v57 }
  0x1c   : > { %326 = vst [vmem:[%s497_s25 + $0x50] sm:$0xff] %v294_v61  ;;  %v298_v9 = vmax.f32 %v266_v62, 0.0  ;;  %v231_v12 = vmul.f32 %v464_v0, %v192_v58  ;;  %327 = vst [vmem:[%s497_s25 + $0x58] sm:$0xff] %v295_v4  ;;  %v232_v15 = vmul.f32 %v464_v0, %v193_v63  ;;  %v233_v16 = vmul.f32 %v464_v0, %v194_v2 }
  0x1d   : > { %328 = vst [vmem:[%s497_s25 + $0x60] sm:$0xff] %v296_v5  ;;  %329 = vst [vmem:[%s497_s25 + $0x68] sm:$0xff] %v297_v6  ;;  %v299_v14 = vmax.f32 %v267_v7, 0.0  ;;  %v234_v17 = vmul.f32 %v464_v0, %v195_v3  ;;  %v268_v18 = vadd.f32 %v474_v1, %v229_v10  ;;  %v269_v19 = vadd.f32 %v474_v1, %v230_v11 }
  0x1e   : > { %330 = vst [vmem:[%s497_s25 + $0x70] sm:$0xff] %v298_v9  ;;  %v270_v20 = vadd.f32 %v474_v1, %v231_v12  ;;  %v235_v21 = vmul.f32 %v464_v0, %v196_v8  ;;  %v271_v22 = vadd.f32 %v474_v1, %v232_v15  ;;  %v272_v23 = vadd.f32 %v474_v1, %v233_v16 }
  0x1f   : > { %331 = vst [vmem:[%s497_s25 + $0x78] sm:$0xff] %v299_v14  ;;  %v273_v24 = vadd.f32 %v474_v1, %v234_v17  ;;  %v236_v25 = vmul.f32 %v464_v0, %v197_v13  ;;  %v300_v29 = vmax.f32 %v268_v18, 0.0  ;;  %v301_v30 = vmax.f32 %v269_v19, 0.0 }
  0x20   : > { %v302_v31 = vmax.f32 %v270_v20, 0.0  ;;  %v274_v32 = vadd.f32 %v474_v1, %v235_v21  ;;  %v303_v36 = vmax.f32 %v271_v22, 0.0  ;;  %v304_v37 = vmax.f32 %v272_v23, 0.0 }
  0x21   : > { %v305_v38 = vmax.f32 %v273_v24, 0.0  ;;  %v275_v39 = vadd.f32 %v474_v1, %v236_v25  ;;  %332 = vst [vmem:[%s497_s25 + $0x80] sm:$0xff] %v300_v29  ;;  %333 = vst [vmem:[%s497_s25 + $0x88] sm:$0xff] %v301_v30  ;;  %v237_v42 = vmul.f32 %v464_v0, %v198_v26  ;;  %v238_v43 = vmul.f32 %v464_v0, %v199_v27 }
  0x22   : > { %334 = vst [vmem:[%s497_s25 + $0x90] sm:$0xff] %v302_v31  ;;  %v306_v41 = vmax.f32 %v274_v32, 0.0  ;;  %v239_v44 = vmul.f32 %v464_v0, %v200_v28  ;;  %335 = vst [vmem:[%s497_s25 + $0x98] sm:$0xff] %v303_v36  ;;  %v240_v47 = vmul.f32 %v464_v0, %v201_v33  ;;  %v241_v48 = vmul.f32 %v464_v0, %v202_v34 }
  0x23   : > { %336 = vst [vmem:[%s497_s25 + $0xa0] sm:$0xff] %v304_v37  ;;  %337 = vst [vmem:[%s497_s25 + $0xa8] sm:$0xff] %v305_v38  ;;  %v307_v46 = vmax.f32 %v275_v39, 0.0  ;;  %v242_v49 = vmul.f32 %v464_v0, %v203_v35  ;;  %v276_v50 = vadd.f32 %v474_v1, %v237_v42  ;;  %v277_v51 = vadd.f32 %v474_v1, %v238_v43 }
  0x24   : > { %338 = vst [vmem:[%s497_s25 + $0xb0] sm:$0xff] %v306_v41  ;;  %v278_v52 = vadd.f32 %v474_v1, %v239_v44  ;;  %v243_v53 = vmul.f32 %v464_v0, %v204_v40  ;;  %v279_v54 = vadd.f32 %v474_v1, %v240_v47  ;;  %v280_v55 = vadd.f32 %v474_v1, %v241_v48 }
  0x25   : > { %339 = vst [vmem:[%s497_s25 + $0xb8] sm:$0xff] %v307_v46  ;;  %v281_v56 = vadd.f32 %v474_v1, %v242_v49  ;;  %v244_v57 = vmul.f32 %v464_v0, %v205_v45  ;;  %v308_v58 = vmax.f32 %v276_v50, 0.0  ;;  %v309_v59 = vmax.f32 %v277_v51, 0.0 }
  0x26   : > { %v310_v60 = vmax.f32 %v278_v52, 0.0  ;;  %v282_v61 = vadd.f32 %v474_v1, %v243_v53  ;;  %v311_v62 = vmax.f32 %v279_v54, 0.0  ;;  %v312_v63 = vmax.f32 %v280_v55, 0.0 }
  0x27   : > { %v313_v2 = vmax.f32 %v281_v56, 0.0  ;;  %v283_v3 = vadd.f32 %v474_v1, %v244_v57  ;;  %340 = vst [vmem:[%s497_s25 + $0xc0] sm:$0xff] %v308_v58  ;;  %341 = vst [vmem:[%s497_s25 + $0xc8] sm:$0xff] %v309_v59 }
  0x28   : > { %342 = vst [vmem:[%s497_s25 + $0xd0] sm:$0xff] %v310_v60  ;;  %v314_v4 = vmax.f32 %v282_v61, 0.0  ;;  %343 = vst [vmem:[%s497_s25 + $0xd8] sm:$0xff] %v311_v62 }
  0x29   : > { %344 = vst [vmem:[%s497_s25 + $0xe0] sm:$0xff] %v312_v63  ;;  %345 = vst [vmem:[%s497_s25 + $0xe8] sm:$0xff] %v313_v2  ;;  %v315_v0 = vmax.f32 %v283_v3, 0.0 }
  0x2a   : > { %346 = vst [vmem:[%s497_s25 + $0xf0] sm:$0xff] %v314_v4 }
  0x2b   : > { %347 = vst [vmem:[%s497_s25 + $0xf8] sm:$0xff] %v315_v0 }
  0x2c PF: > { %s13_s12 = sadd.s32 1, %s431_s12  }
  0x2d   : > { %p10_p4 = scmp.ge.s32.totalorder %s13_s12, 4  }
  0x2f   :  { %12 = sbr.rel (!%p10_p4) target bundleno = 1 (0x1), region = 62 }

// kernel: up_forward.6
= control target key start
LH: loop header
LB: loop body
LE: loop exit
PB: predicated region body
PF: predicated region fallthrough
CT: control target
= control target key end

     0   :  { %s3716_s12 = smov 0   ;;  %s4908_s0 = inlined_call_operand.vmem [shape: bf16[4,10,18,36], index: 0, kind: input, shape index: {}]   ;;  %s4909_s1 = inlined_call_operand.vmem [shape: bf16[9,36,128], index: 1, kind: input, shape index: {}]   ;;  %s4910_s2 = inlined_call_operand.vmem [shape: f32[4,128,128], index: 2, kind: output, shape index: {0}]   ;;  %s4911_s3 = inlined_call_operand.vmem [shape: f32[4,2,128], index: 3, kind: output, shape index: {1}]  }
   0x1 LB: > { %s2972_s13 = sadd.s32 4294967295, %s3694_s12   ;;  %p2976_p0 = scmp.ge.s32.totalorder %s3694_s12, 1  ;;  %s3694_s12 = sphi %s3716_s12, %s14_s12  }
   0x2   : > { %p140_p1 = scmp.lt.s32.totalorder %s3694_s12, 5 }
   0x4   : > { %p141_p2 = pnand %p2976_p0, %p140_p1 }
   0x6   : > { %144 = sbr.rel (%p141_p2) target bundleno = 411 (0x19b), region = 28 }
   0xb   : > { %v3637_v0 = vld [vmem:[%s4909_s1 + $0x24] ss:$0 sps:$4 sm:$0x33]   ;;  %vm477_vm0 = vcmask 1041408   ;;  %v3638_v1 = vld [vmem:[%s4909_s1 + $0x1c] sm:$0xff]   ;;  %p168_p3 = scmp.lt.s32.totalorder %s2972_s13, 3 }
   0xc   : > { %3619 = vmatprep.subr.msk.bf16.mxu1 %vm477_vm0, %v3637_v0  ;;  %3618 = vmatprep.subr.msk.bf16.mxu0 %vm477_vm0, %v3637_v0  ;;  %v479_v2 = vsel %vm477_vm0, %v3637_v0, 0  ;;  %v3639_v3 = vld [vmem:[%s4909_s1 + $0x14] sm:$0xff]   ;;  %v3640_v4 = vld [vmem:[%s4909_s1 + $0x10] ss:$0 sps:$4 sm:$0x33]   ;;  %vm452_vm3 = vcmask 293888  }
   0xd   : > { %3615 = vmatpush3.bf16.msra.mxu1 %v479_v2  ;;  %3415 = vmatpush3.bf16.msra.mxu0 %v479_v2  ;;  %s4963_s13 = smov (!%p168_p3, %s2972_s13), 3  ;;  %vm212_vm1 = vsmask.f32 3328  ;;  %v3641_v5 = vld [vmem:[%s4909_s1 + $0x38] ss:$0 sps:$4 sm:$0x33]  }
   0xe   : > { %3613 = vmatprep.subr.bf16.mxu1 %v3638_v1  ;;  %3416 = vmatprep.subr.bf16.mxu0 %v3638_v1  ;;  %s3628_s20 = smul.u32 120, %s4963_s13  ;;  %vm213_vm2 = vsmask.f32 7440  ;;  %v3774_v17 = vsel %vm477_vm0, %v3640_v4, 0  ;;  %v3796_v36 = vsel %vm477_vm0, %v3641_v5, 0  ;;  %vm781_vm5 = vcmask 1042432  }
   0xf   : > { %vm3791_vm4 = vmor %vm212_vm1, %vm213_vm2  ;;  %vm782_vm6 = vcmask 1046532   ;;  %s2980_s26 = sshll.u32 %s4963_s13, 1  ;;  %vm2883_vm8 = vcmask 1040384  }
  0x10   : > { %s3748_s27 = scalar_lea.vmem %s4908_s0, %s3628_s20  ;;  %vm3936_vm7 = vmor %vm781_vm5, %vm782_vm6  ;;  %s181_s30 = scalar_lea.vmem %s4911_s3, %s2980_s26 }
  0x11   : > { %3616 = vmatpush3.bf16.msra.mxu1 %v3638_v1  ;;  %3417 = vmatpush3.bf16.msra.mxu0 %v3638_v1  ;;  %v3751_v6 = vld [vmem:[%s3748_s27] sm:$0xf]  ;;  %v3754_v7 = vld [vmem:[%s3748_s27 + $0x4] sm:$0xf]  ;;  %v3757_v8 = vld [vmem:[%s3748_s27 + $0x8] sm:$0x1] }
  0x12   : > { %3614 = vmatprep.subr.bf16.mxu1 %v3639_v3  ;;  %3418 = vmatprep.subr.bf16.mxu0 %v3639_v3  ;;  %v216_v9 = vshrl.u32 %v3751_v6, 16  ;;  %v219_v10 = vshll.u32 %v3751_v6, 16  ;;  %v225_v11 = vshll.u32 %v3754_v7, 16  ;;  %v229_v12 = vshrl.u32 %v3754_v7, 16  ;;  %v3764_v13 = vld [vmem:[%s3748_s27 + $0x30] sm:$0xf] }
  0x13   : > { %v235_v14 = vshll.u32 %v3757_v8, 16  ;;  %v3768_v15 = vld [vmem:[%s3748_s27 + $0x34] sm:$0xf]  ;;  %v3771_v16 = vld [vmem:[%s3748_s27 + $0x38] sm:$0x1]  ;;  %v312_v23 = vshrl.u32 %v3764_v13, 16 }
  0x14   : > { %v218_v18 = vrot.slane %v216_v9, 4  ;;  %v221_v19 = vrot.slane %v219_v10, 5  ;;  %v227_v20 = vrot.slane %v225_v11, 5  ;;  %v231_v21 = vrot.slane %v229_v12, 4  ;;  %v3784_v30 = vld [vmem:[%s3748_s27 + $0xc] sm:$0xf] }
  0x15   : > { %3617 = vmatpush3.bf16.msra.mxu1 %v3639_v3  ;;  %3419 = vmatpush3.bf16.msra.mxu0 %v3639_v3  ;;  %v237_v22 = vrot.slane %v235_v14, 5  ;;  %v315_v24 = vshll.u32 %v3764_v13, 16  ;;  %v321_v25 = vshll.u32 %v3768_v15, 16  ;;  %v325_v28 = vshrl.u32 %v3768_v15, 16  ;;  %v3787_v31 = vld [vmem:[%s3748_s27 + $0x10] sm:$0xf] }
  0x16   : > { %3620 = vmatprep.subr.msk.bf16.mxu1 %vm477_vm0, %v3640_v4  ;;  %3621 = vmatprep.subr.msk.bf16.mxu0 %vm477_vm0, %v3641_v5  ;;  %v222_v26 = vor.u32 %v221_v19, %v218_v18  ;;  %v232_v27 = vor.u32 %v231_v21, %v227_v20  ;;  %v331_v29 = vshll.u32 %v3771_v16, 16  ;;  %v314_v33 = vrot.slane %v312_v23, 4  ;;  %v3799_v42 = vld [vmem:[%s3748_s27 + $0x14] sm:$0x1]  ;;  %v3810_v54 = vld [vmem:[%s3748_s27 + $0x3c] sm:$0xf] }
  0x17   : > { %v317_v34 = vrot.slane %v315_v24, 5  ;;  %v323_v35 = vrot.slane %v321_v25, 5  ;;  %v327_v39 = vrot.slane %v325_v28, 4  ;;  %v240_v43 = vshrl.u32 %v3784_v30, 16  ;;  %v3814_v59 = vld [vmem:[%s3748_s27 + $0x40] sm:$0xf] }
  0x18   : > { %v223_v37 = vrot.slane %v222_v26, 4  ;;  %v233_v38 = vrot.slane %v232_v27, 4  ;;  %v333_v40 = vrot.slane %v331_v29, 5  ;;  %v243_v44 = vshll.u32 %v3784_v30, 16  ;;  %v3822_v0 = vld [vmem:[%s3748_s27 + $0x44] sm:$0x1] }
  0x19   : > { %v318_v41 = vor.u32 %v317_v34, %v314_v33  ;;  %v249_v45 = vshll.u32 %v3787_v31, 16  ;;  %v328_v48 = vor.u32 %v327_v39, %v323_v35  ;;  %v253_v49 = vshrl.u32 %v3787_v31, 16  ;;  %v3828_v5 = vld [vmem:[%s3748_s27 + $0x18] sm:$0xf]  ;;  %v3833_v14 = vld [vmem:[%s3748_s27 + $0x1c] sm:$0xf] }
  0x1a   : > { %v228_v46 = vsel %vm3791_vm4, %v223_v37, %v227_v20  ;;  %v238_v47 = vsel %vm3791_vm4, %v233_v38, %v237_v22  ;;  %v242_v52 = vrot.slane %v240_v43, 4  ;;  %v245_v53 = vrot.slane %v243_v44, 5  ;;  %v3838_v22 = vld [vmem:[%s3748_s27 + $0x20] sm:$0x1]  ;;  %v3845_v27 = vld [vmem:[%s3748_s27 + $0x48] sm:$0xf] }
  0x1b   : > { %v2986_v50 = vcombine.low %v228_v46, %v238_v47  ;;  %v319_v51 = vrot.slane %v318_v41, 4  ;;  %v329_v55 = vrot.slane %v328_v48, 4  ;;  %v251_v56 = vrot.slane %v249_v45, 5  ;;  %v3643_v37 = vld [vmem:[%s4909_s1 + $0x30] sm:$0xff]  }
  0x1c   : > { %v255_v57 = vrot.slane %v253_v49, 4  ;;  %v259_v58 = vshll.u32 %v3799_v42, 16  ;;  %v789_v60 = vrot.slane %v3757_v8, 5  ;;  %v246_v62 = vor.u32 %v245_v53, %v242_v52  ;;  %v3861_v49 = vld [vmem:[%s3748_s27 + $0x50] sm:$0x1] }
  0x1d   : > { %3420 = vmatprep.mubr.msk.bf16.mxu0 %vm452_vm3, %v2986_v50  ;;  %v324_v61 = vsel %vm3791_vm4, %v319_v51, %v323_v35  ;;  %v793_v63 = vrot.slane %v3787_v31, 5  ;;  %v334_v1 = vsel %vm3791_vm4, %v329_v55, %v333_v40  ;;  %v336_v4 = vshrl.u32 %v3810_v54, 16  ;;  %v3851_v35 = vld [vmem:[%s3748_s27 + $0x4c] sm:$0xf] }
  0x1e   : > { %v256_v2 = vor.u32 %v255_v57, %v251_v56  ;;  %v261_v3 = vrot.slane %v259_v58, 5  ;;  %v2990_v9 = vcombine.low %v324_v61, %v334_v1  ;;  %v247_v10 = vrot.slane %v246_v62, 4  ;;  %v3642_v58 = vld [vmem:[%s4909_s1 + $0x8] sm:$0xff]  }
  0x1f   : > { %v339_v11 = vshll.u32 %v3810_v54, 16  ;;  %v345_v12 = vshll.u32 %v3814_v59, 16  ;;  %v338_v19 = vrot.slane %v336_v4, 4  ;;  %v349_v20 = vshrl.u32 %v3814_v59, 16 }
  0x20   : > { %v257_v18 = vrot.slane %v256_v2, 4  ;;  %v355_v21 = vshll.u32 %v3822_v0, 16  ;;  %3428 = vmatprep.mubr.msk.bf16.mxu1 %vm452_vm3, %v2990_v9  ;;  %v252_v23 = vsel %vm3791_vm4, %v247_v10, %v251_v56  ;;  %v264_v26 = vshrl.u32 %v3828_v5, 16  ;;  %v3873_v2 = vld [vmem:[%s3748_s27 + $0x24] sm:$0xf] }
  0x21   : > { %v341_v24 = vrot.slane %v339_v11, 5  ;;  %v347_v25 = vrot.slane %v345_v12, 5  ;;  %v351_v29 = vrot.slane %v349_v20, 4  ;;  %v267_v34 = vshll.u32 %v3828_v5, 16  ;;  %v3882_v11 = vld [vmem:[%s3748_s27 + $0x28] sm:$0xf] }
  0x22   : > { %v262_v28 = vsel %vm3791_vm4, %v257_v18, %v261_v3  ;;  %v357_v33 = vrot.slane %v355_v21, 5  ;;  %v266_v40 = vrot.slane %v264_v26, 4  ;;  %v273_v41 = vshll.u32 %v3833_v14, 16  ;;  %v3886_v21 = vld [vmem:[%s3748_s27 + $0x2c] sm:$0x1] }
  0x23   : > { %v2987_v38 = vcombine.low %v252_v23, %v262_v28  ;;  %v342_v39 = vor.u32 %v341_v24, %v338_v19  ;;  %v352_v43 = vor.u32 %v351_v29, %v347_v25  ;;  %v269_v44 = vrot.slane %v267_v34, 5  ;;  %v3889_v23 = vld [vmem:[%s3748_s27 + $0x54] sm:$0xf]  ;;  %v3897_v29 = vld [vmem:[%s4909_s1 + $0x60] ss:$0 sps:$4 sm:$0x33]  }
  0x24   : > { %v277_v45 = vshrl.u32 %v3833_v14, 16  ;;  %v283_v46 = vshll.u32 %v3838_v22, 16  ;;  %v275_v48 = vrot.slane %v273_v41, 5  ;;  %v360_v50 = vshrl.u32 %v3845_v27, 16 }
  0x25   : > { %3421 = vmatmul.mubr.msk.bf16.vlgmr.msra.gmra.mxu0 %vm452_vm3, %v2987_v38  ;;  %v343_v47 = vrot.slane %v342_v39, 4  ;;  %v363_v51 = vshll.u32 %v3845_v27, 16  ;;  %v353_v52 = vrot.slane %v352_v43, 4  ;;  %v270_v53 = vor.u32 %v269_v44, %v266_v40  ;;  %v3903_v40 = vld [vmem:[%s3748_s27 + $0x58] sm:$0xf] }
  0x26   : > { %3459 = vmatpush3.bf16.msra.mxu0 %v3796_v36  ;;  %v279_v55 = vrot.slane %v277_v45, 4  ;;  %v285_v56 = vrot.slane %v283_v46, 5  ;;  %v362_v61 = vrot.slane %v360_v50, 4  ;;  %v369_v1 = vshll.u32 %v3851_v35, 16  ;;  %v3645_v36 = vld [vmem:[%s4909_s1 + $0x28] sm:$0xff]  }
  0x27   : > { %v348_v57 = vsel %vm3791_vm4, %v343_v47, %v347_v25  ;;  %v365_v62 = vrot.slane %v363_v51, 5  ;;  %3460 = vmatprep.subr.bf16.mxu0 %v3643_v37  ;;  %v358_v3 = vsel %vm3791_vm4, %v353_v52, %v357_v33  ;;  %v271_v4 = vrot.slane %v270_v53, 4 }
  0x28   : > { %v280_v9 = vor.u32 %v279_v55, %v275_v48  ;;  %v373_v10 = vshrl.u32 %v3851_v35, 16  ;;  %v2991_v12 = vcombine.low %v348_v57, %v358_v3  ;;  %v371_v19 = vrot.slane %v369_v1, 5  ;;  %v757_v1 = vld [vmem:[%s3748_s27] sm:$0xe] }
  0x29   : > { %v366_v18 = vor.u32 %v365_v62, %v362_v61  ;;  %v379_v20 = vshll.u32 %v3861_v49, 16  ;;  %v276_v24 = vsel %vm3791_vm4, %v271_v4, %v275_v48  ;;  %v288_v28 = vshrl.u32 %v3873_v2, 16 }
  0x2a   : > { %v281_v25 = vrot.slane %v280_v9, 4  ;;  %v375_v26 = vrot.slane %v373_v10, 4  ;;  %3461 = vmatpush3.bf16.msra.mxu0 %v3643_v37  ;;  %3429 = vmatmul.mubr.msk.bf16.vlgmr.msra.gmra.mxu1 %vm452_vm3, %v2991_v12  ;;  %v291_v38 = vshll.u32 %v3873_v2, 16  ;;  %v297_v39 = vshll.u32 %v3882_v11, 16  ;;  %v3644_v37 = vld [vmem:[%s4909_s1] sm:$0xff]  }
  0x2b   : > { %v367_v33 = vrot.slane %v366_v18, 4  ;;  %v381_v34 = vrot.slane %v379_v20, 5  ;;  %3462 = vmatprep.subr.bf16.mxu0 %v3645_v36  ;;  %3437 = vmatpush3.bf16.msra.mxu1 %v3774_v17  ;;  %v290_v44 = vrot.slane %v288_v28, 4  ;;  %v301_v45 = vshrl.u32 %v3882_v11, 16  ;;  %v3916_v17 = vld [vmem:[%s3748_s27 + $0x5c] sm:$0x1] }
  0x2c   : > { %v286_v41 = vsel %vm3791_vm4, %v281_v25, %v285_v56  ;;  %v376_v43 = vor.u32 %v375_v26, %v371_v19  ;;  %3438 = vmatprep.subr.bf16.mxu1 %v3642_v58  ;;  %v293_v48 = vrot.slane %v291_v38, 5  ;;  %v299_v50 = vrot.slane %v297_v39, 5  ;;  %v3647_v20 = vld [vmem:[%s4909_s1 + $0x4c] ss:$0 sps:$4 sm:$0x33]  }
  0x2d   : > { %v2988_v46 = vcombine.low %v276_v24, %v286_v41  ;;  %v372_v47 = vsel %vm3791_vm4, %v367_v33, %v371_v19  ;;  %v303_v52 = vrot.slane %v301_v45, 4  ;;  %v307_v53 = vshll.u32 %v3886_v21, 16  ;;  %v758_v39 = vld [vmem:[%s3748_s27 + $0xc] sm:$0xe] }
  0x2e   : > { %v377_v51 = vrot.slane %v376_v43, 4  ;;  %v384_v55 = vshrl.u32 %v3889_v23, 16  ;;  %3463 = vmatpush3.bf16.msra.mxu0 %v3645_v36  ;;  %v294_v56 = vor.u32 %v293_v48, %v290_v44  ;;  %v387_v57 = vshll.u32 %v3889_v23, 16 }
  0x2f   : > { %3424 = vmatprep.mubr.msk.bf16.mxu0 %vm452_vm3, %v2988_v46  ;;  %v393_v61 = vshll.u32 %v3903_v40, 16  ;;  %v397_v62 = vshrl.u32 %v3903_v40, 16  ;;  %3623 = vmatprep.subr.msk.bf16.mxu0 %vm477_vm0, %v3897_v29  ;;  %v304_v4 = vor.u32 %v303_v52, %v299_v50  ;;  %v309_v9 = vrot.slane %v307_v53, 5  ;;  %v759_v53 = vld [vmem:[%s3748_s27 + $0x18] sm:$0xe] }
  0x30   : > { %3439 = vmatpush3.bf16.msra.mxu1 %v3642_v58  ;;  %v382_v3 = vsel %vm3791_vm4, %v377_v51, %v381_v34  ;;  %v386_v36 = vrot.slane %v384_v55, 4  ;;  %v295_v12 = vrot.slane %v294_v56, 4  ;;  %v389_v18 = vrot.slane %v387_v57, 5 }
  0x31   : > { %v2992_v10 = vcombine.low %v372_v47, %v382_v3  ;;  %v395_v19 = vrot.slane %v393_v61, 5  ;;  %3440 = vmatprep.subr.bf16.mxu1 %v3644_v37  ;;  %v305_v24 = vrot.slane %v304_v4, 4  ;;  %v399_v25 = vrot.slane %v397_v62, 4  ;;  %v760_v3 = vld [vmem:[%s3748_s27 + $0x24] sm:$0xe] }
  0x32   : > { %v403_v58 = vshll.u32 %v3916_v17, 16  ;;  %v300_v26 = vsel %vm3791_vm4, %v295_v12, %v299_v50  ;;  %v390_v28 = vor.u32 %v389_v18, %v386_v36  ;;  %v3024_v34 = vrot.slane %v757_v1, 9  ;;  %v761_v4 = vld [vmem:[%s3748_s27 + $0x30] sm:$0xe] }
  0x33   : > { %3432 = vmatprep.mubr.msk.bf16.mxu1 %vm452_vm3, %v2992_v10  ;;  %v786_v38 = vrot.slane %v3754_v7, 5  ;;  %v796_v41 = vrot.slane %v3799_v42, 5  ;;  %v310_v43 = vsel %vm3791_vm4, %v305_v24, %v309_v9  ;;  %v400_v44 = vor.u32 %v399_v25, %v395_v19 }
  0x34   : > { %v405_v45 = vrot.slane %v403_v58, 5  ;;  %3441 = vmatpush3.bf16.msra.mxu1 %v3644_v37  ;;  %v2989_v46 = vcombine.low %v300_v26, %v310_v43  ;;  %v391_v47 = vrot.slane %v390_v28, 4  ;;  %v3025_v52 = vrot.slane %v758_v39, 9 }
  0x35   : > { %v787_v48 = vsel %vm3936_vm7, %v3024_v34, %v786_v38  ;;  %v788_v50 = vrot.slane %v786_v38, 4  ;;  %3622 = vmatprep.subr.msk.bf16.mxu1 %vm477_vm0, %v3647_v20  ;;  %v401_v51 = vrot.slane %v400_v44, 4  ;;  %v795_v42 = vrot.slane %v793_v63, 4 }
  0x36   : > { %3425 = vmatmul.mubr.msk.bf16.gmra.mxu0 %vm452_vm3, %v2989_v46  ;;  %v396_v37 = vsel %vm3791_vm4, %v391_v47, %v395_v19  ;;  %v3005_v55 = vcombine.low %v3751_v6, %v3754_v7  ;;  %v794_v62 = vsel %vm3936_vm7, %v3025_v52, %v793_v63  ;;  %v3026_v7 = vrot.slane %v759_v53, 9  ;;  %v762_v19 = vld [vmem:[%s3748_s27 + $0x3c] sm:$0xe] }
  0x37   : > { %v790_v56 = vsel %vm3936_vm7, %v788_v50, %v789_v60  ;;  %v406_v57 = vsel %vm3791_vm4, %v401_v51, %v405_v45  ;;  %v797_v1 = vsel %vm3936_vm7, %v795_v42, %v796_v41  ;;  %v800_v8 = vrot.slane %v3833_v14, 5  ;;  %v3652_v45 = vld [vmem:[%s4909_s1 + $0x44] sm:$0xff]   ;;  %v3096_v50 = vld [vmem:[%s3748_s27 + $0xc] sm:$0xf] }
  0x38   : > { %v3037_v61 = vcombine.low %v787_v48, %v790_v56  ;;  %v2993_v6 = vcombine.low %v396_v37, %v406_v57  ;;  %v3038_v60 = vcombine.low %v794_v62, %v797_v1  ;;  %v803_v9 = vrot.slane %v3838_v22, 5  ;;  %v4012_v48 = vld [vmem:[%s3748_s27 + $0x54] sm:$0xe]  ;;  %v4025_v37 = vld [vmem:[%s3748_s27 + $0x10] sm:$0xf] }
  0x39   : > { %v807_v36 = vrot.slane %v3882_v11, 5  ;;  %v801_v63 = vsel %vm3936_vm7, %v3026_v7, %v800_v8  ;;  %v802_v10 = vrot.slane %v800_v8, 4  ;;  %v3027_v12 = vrot.slane %v760_v3, 9  ;;  %v4033_v62 = vld [vmem:[%s3748_s27 + $0x14] sm:$0x1] }
  0x3a   : > { %3464 = vmatprep.mubr.msk.bf16.mxu0 %vm452_vm3, %v3037_v61  ;;  %3433 = vmatmul.mubr.msk.bf16.gmra.mxu1 %vm452_vm3, %v2993_v6  ;;  %v810_v18 = vrot.slane %v3886_v21, 5  ;;  %v817_v24 = vrot.slane %v3771_v16, 5  ;;  %v3028_v58 = vrot.slane %v761_v4, 9  ;;  %v814_v22 = vrot.slane %v3768_v15, 5  ;;  %v3653_v21 = vld [vmem:[%s4909_s1 + $0x58] sm:$0xff]  }
  0x3b   : > { %3442 = vmatprep.mubr.msk.bf16.mxu1 %vm452_vm3, %v3005_v55  ;;  %v809_v25 = vrot.slane %v807_v36, 4  ;;  %v3006_v26 = vcombine.low %v3784_v30, %v3787_v31  ;;  %v1529_v28 = vsel %vm477_vm0, %v3897_v29, 0  ;;  %v804_v34 = vsel %vm3936_vm7, %v802_v10, %v803_v9  ;;  %v763_v30 = vld [vmem:[%s3748_s27 + $0x48] sm:$0xe]  ;;  %v3099_v1 = vld [vmem:[%s3748_s27 + $0x18] sm:$0xf] }
  0x3c   : > { %v821_v16 = vrot.slane %v3814_v59, 5  ;;  %v1128_v38 = vsel %vm477_vm0, %v3647_v20, 0  ;;  %v3039_v39 = vcombine.low %v801_v63, %v804_v34  ;;  %v816_v41 = vrot.slane %v814_v22, 4  ;;  %v4040_v4 = vld [vmem:[%s3748_s27 + $0x1c] sm:$0xf] }
  0x3d   : > { %v3029_v43 = vrot.slane %v762_v19, 9  ;;  %v3007_v31 = vcombine.low %v3828_v5, %v3833_v14  ;;  %v808_v29 = vsel %vm3936_vm7, %v3027_v12, %v807_v36  ;;  %v811_v44 = vsel %vm3936_vm7, %v809_v25, %v810_v18  ;;  %v4051_v63 = vld [vmem:[%s3748_s27 + $0x20] sm:$0x1] }
  0x3e   : > { %3465 = vmatmul.mubr.msk.bf16.vlgmr.msra.gmra.mxu0 %vm452_vm3, %v3038_v60  ;;  %v815_v20 = vsel %vm3936_vm7, %v3028_v58, %v814_v22  ;;  %v818_v5 = vsel %vm3936_vm7, %v816_v41, %v817_v24  ;;  %v823_v14 = vrot.slane %v821_v16, 4  ;;  %v824_v46 = vrot.slane %v3822_v0, 5  ;;  %v3658_v0 = vld [vmem:[%s4909_s1 + $0x50] sm:$0xff]   ;;  %v3656_v10 = vld [vmem:[%s4909_s1 + $0x3c] sm:$0xff]  }
  0x3f   : > { %3503 = vmatpush3.bf16.msra.mxu0 %v1529_v28  ;;  %3468 = vmatprep.mubr.msk.bf16.mxu0 %vm452_vm3, %v3039_v39  ;;  %v828_v47 = vrot.slane %v3851_v35, 5  ;;  %v3008_v51 = vcombine.low %v3873_v2, %v3882_v11  ;;  %v3009_v52 = vcombine.low %v3764_v13, %v3768_v15  ;;  %v3010_v42 = vcombine.low %v3810_v54, %v3814_v59  ;;  %v4069_v28 = vld [vmem:[%s4909_s1 + $0x88] ss:$0 sps:$4 sm:$0x33]   ;;  %v3102_v39 = vld [vmem:[%s3748_s27 + $0x24] sm:$0xf] }
  0x40   : > { %3504 = vmatprep.subr.bf16.mxu0 %v3653_v21  ;;  %v3030_v53 = vrot.slane %v763_v30, 9  ;;  %v3040_v55 = vcombine.low %v808_v29, %v811_v44  ;;  %v4029_v56 = vsel %vm3936_vm7, %v3029_v43, %v821_v16  ;;  %v831_v61 = vrot.slane %v3861_v49, 5 }
  0x41   : > { %v830_v57 = vrot.slane %v828_v47, 4  ;;  %v3041_v3 = vcombine.low %v815_v20, %v818_v5  ;;  %v3011_v6 = vcombine.low %v3845_v27, %v3851_v35  ;;  %v1268_v7 = vshrl.u32 %v3096_v50, 16 }
  0x42   : > { %3443 = vmatmul.mubr.msk.bf16.vlgmr.msra.gmra.mxu1 %vm452_vm3, %v3006_v26  ;;  %v1271_v8 = vshll.u32 %v3096_v50, 16  ;;  %v4045_v60 = vsel %vm3936_vm7, %v823_v14, %v824_v46  ;;  %v835_v49 = vrot.slane %v3903_v40, 5  ;;  %v1277_v9 = vshll.u32 %v4025_v37, 16 }
  0x43   : > { %3481 = vmatpush3.bf16.msra.mxu1 %v1128_v38  ;;  %3446 = vmatprep.mubr.msk.bf16.mxu1 %vm452_vm3, %v3007_v31  ;;  %v1281_v36 = vshrl.u32 %v4025_v37, 16  ;;  %v4058_v12 = vsel %vm3936_vm7, %v3030_v53, %v828_v47  ;;  %v3031_v18 = vrot.slane %v4012_v48, 9  ;;  %v838_v19 = vrot.slane %v3916_v17, 5  ;;  %v4076_v17 = vld [vmem:[%s4909_s1 + $0x74] ss:$0 sps:$4 sm:$0x33]  }
  0x44   : > { %3482 = vmatprep.subr.bf16.mxu1 %v3652_v45  ;;  %3505 = vmatpush3.bf16.msra.mxu0 %v3653_v21  ;;  %v1270_v24 = vrot.slane %v1268_v7, 4  ;;  %v832_v25 = vsel %vm3936_vm7, %v830_v57, %v831_v61  ;;  %v1273_v58 = vrot.slane %v1271_v8, 5  ;;  %v4064_v22 = vrot.slane %v1277_v9, 5  ;;  %v4093_v48 = vld [vmem:[%s3748_s27 + $0x28] sm:$0xf] }
  0x45   : > { %3506 = vmatprep.subr.bf16.mxu0 %v3658_v0  ;;  %v1283_v26 = vrot.slane %v1281_v36, 4  ;;  %v1287_v34 = vshll.u32 %v4033_v62, 16  ;;  %v1292_v21 = vshrl.u32 %v3099_v1, 16  ;;  %v1295_v16 = vshll.u32 %v3099_v1, 16  ;;  %v3105_v57 = vld [vmem:[%s3748_s27 + $0x30] sm:$0xf] }
  0x46   : > { %3469 = vmatmul.mubr.msk.bf16.gmra.mxu0 %vm452_vm3, %v3040_v55  ;;  %v1301_v38 = vshll.u32 %v4040_v4, 16  ;;  %v837_v41 = vrot.slane %v835_v49, 4  ;;  %v1274_v43 = vor.u32 %v1273_v58, %v1270_v24  ;;  %v1305_v31 = vshrl.u32 %v4040_v4, 16  ;;  %v4100_v55 = vld [vmem:[%s3748_s27 + $0x2c] sm:$0x1] }
  0x47   : > { %3483 = vmatpush3.bf16.msra.mxu1 %v3652_v45  ;;  %3472 = vmatprep.mubr.msk.bf16.mxu0 %vm452_vm3, %v3041_v3  ;;  %v1284_v30 = vor.u32 %v1283_v26, %v4064_v22  ;;  %v1294_v29 = vrot.slane %v1292_v21, 4  ;;  %v1297_v44 = vrot.slane %v1295_v16, 5  ;;  %v1311_v5 = vshll.u32 %v4051_v63, 16  ;;  %v4112_v1 = vld [vmem:[%s3748_s27 + $0x34] sm:$0xf] }
  0x48   : > { %3484 = vmatprep.subr.bf16.mxu1 %v3656_v10  ;;  %3507 = vmatpush3.bf16.msra.mxu0 %v3658_v0  ;;  %v4083_v20 = vrot.slane %v1301_v38, 5  ;;  %v3042_v45 = vcombine.low %v4029_v56, %v4045_v60  ;;  %v3012_v14 = vcombine.low %v3889_v23, %v3903_v40  ;;  %v1275_v46 = vrot.slane %v1274_v43, 4  ;;  %v3667_v40 = vld [vmem:[%s4909_s1 + $0x80] sm:$0xff]  }
  0x49   : > { %v1307_v47 = vrot.slane %v1305_v31, 4  ;;  %3625 = vmatprep.subr.msk.bf16.mxu0 %vm477_vm0, %v4069_v28  ;;  %v1285_v50 = vrot.slane %v1284_v30, 4  ;;  %v1289_v53 = vrot.slane %v1287_v34, 5  ;;  %v1298_v0 = vor.u32 %v1297_v44, %v1294_v29  ;;  %v4135_v34 = vld [vmem:[%s3748_s27 + $0x38] sm:$0x1] }
  0x4a   : > { %3447 = vmatmul.mubr.msk.bf16.gmra.mxu1 %vm452_vm3, %v3008_v51  ;;  %v1316_v56 = vshrl.u32 %v3102_v39, 16  ;;  %v3043_v61 = vcombine.low %v4058_v12, %v832_v25  ;;  %v836_v2 = vsel %vm3936_vm7, %v3031_v18, %v835_v49  ;;  %v1319_v51 = vshll.u32 %v3102_v39, 16  ;;  %v3108_v18 = vld [vmem:[%s3748_s27 + $0x3c] sm:$0xf]  ;;  %v4144_v31 = vld [vmem:[%s3748_s27 + $0x44] sm:$0x1] }
  0x4b   : > { %3450 = vmatprep.mubr.msk.bf16.mxu1 %vm452_vm3, %v3009_v52  ;;  %3485 = vmatpush3.bf16.msra.mxu1 %v3656_v10  ;;  %v1308_v11 = vor.u32 %v1307_v47, %v4083_v20  ;;  %v839_v3 = vsel %vm3936_vm7, %v837_v41, %v838_v19  ;;  %v1313_v13 = vrot.slane %v1311_v5, 5  ;;  %v1325_v52 = vshll.u32 %v4093_v48, 16 }
  0x4c   : > { %3624 = vmatprep.subr.msk.bf16.mxu1 %vm477_vm0, %v4076_v17  ;;  %v1318_v15 = vrot.slane %v1316_v56, 4  ;;  %v1280_v7 = vsel %vm3791_vm4, %v1275_v46, %v4064_v22  ;;  %v1299_v8 = vrot.slane %v1298_v0, 4  ;;  %v1321_v60 = vrot.slane %v1319_v51, 5  ;;  %v4132_v22 = vld [vmem:[%s3748_s27 + $0x40] sm:$0xf]  ;;  %v3660_v56 = vld [vmem:[%s3748_s27 + $0xc] sm:$0xff]  }
  0x4d   : > { %v1329_v49 = vshrl.u32 %v4093_v48, 16  ;;  %v1290_v9 = vsel %vm3791_vm4, %v1285_v50, %v1289_v53  ;;  %v4126_v36 = vrot.slane %v1325_v52, 5  ;;  %v1340_v10 = vshrl.u32 %v3105_v57, 16  ;;  %v3111_v0 = vld [vmem:[%s3748_s27 + $0x48] sm:$0xf] }
  0x4e   : > { %3473 = vmatmul.mubr.msk.bf16.gmra.mxu0 %vm452_vm3, %v3042_v45  ;;  %v1343_v12 = vshll.u32 %v3105_v57, 16  ;;  %v1309_v19 = vrot.slane %v1308_v11, 4  ;;  %v1322_v24 = vor.u32 %v1321_v60, %v1318_v15  ;;  %v1335_v58 = vshll.u32 %v4100_v55, 16 }
  0x4f   : > { %3476 = vmatprep.mubr.msk.bf16.mxu0 %vm452_vm3, %v3043_v61  ;;  %v1331_v25 = vrot.slane %v1329_v49, 4  ;;  %v3044_v26 = vcombine.low %v836_v2, %v839_v3  ;;  %v1342_v21 = vrot.slane %v1340_v10, 4  ;;  %v1349_v38 = vshll.u32 %v4112_v1, 16  ;;  %v4167_v61 = vld [vmem:[%s3748_s27 + $0x4c] sm:$0xf] }
  0x50   : > { %v1345_v16 = vrot.slane %v1343_v12, 5  ;;  %v3125_v39 = vcombine.low %v1280_v7, %v1290_v9  ;;  %v1304_v41 = vsel %vm3791_vm4, %v1299_v8, %v4083_v20  ;;  %v1353_v30 = vshrl.u32 %v4112_v1, 16  ;;  %v3114_v3 = vld [vmem:[%s3748_s27 + $0x54] sm:$0xf]  ;;  %v4181_v8 = vld [vmem:[%s3748_s27 + $0x58] sm:$0xf] }
  0x51   : > { %v1332_v43 = vor.u32 %v1331_v25, %v4126_v36  ;;  %v1323_v29 = vrot.slane %v1322_v24, 4  ;;  %v4150_v44 = vrot.slane %v1349_v38, 5  ;;  %v1364_v5 = vshrl.u32 %v3108_v18, 16  ;;  %v4184_v49 = vld [vmem:[%s3748_s27 + $0x50] sm:$0x1] }
  0x52   : > { %3451 = vmatmul.mubr.msk.bf16.gmra.mxu1 %vm452_vm3, %v3010_v42  ;;  %v1367_v45 = vshll.u32 %v3108_v18, 16  ;;  %v1314_v20 = vsel %vm3791_vm4, %v1309_v19, %v1313_v13  ;;  %v1337_v47 = vrot.slane %v1335_v58, 5  ;;  %v1355_v54 = vrot.slane %v1353_v30, 4  ;;  %v4190_v25 = vld [vmem:[%s3748_s27 + $0x5c] sm:$0x1] }
  0x53   : > { %3454 = vmatprep.mubr.msk.bf16.mxu1 %vm452_vm3, %v3011_v6  ;;  %v1333_v46 = vrot.slane %v1332_v43, 4  ;;  %v1346_v59 = vor.u32 %v1345_v16, %v1342_v21  ;;  %v1366_v42 = vrot.slane %v1364_v5, 4  ;;  %v1373_v53 = vshll.u32 %v4132_v22, 16  ;;  %v3117_v38 = vld [vmem:[%s3748_s27 + $0x60] sm:$0xf] }
  0x54   : > { %v1369_v50 = vrot.slane %v1367_v45, 5  ;;  %v2020_v27 = vsel %vm477_vm0, %v4069_v28, 0  ;;  %v1356_v35 = vor.u32 %v1355_v54, %v4150_v44  ;;  %v1359_v6 = vshll.u32 %v4135_v34, 16  ;;  %v4212_v54 = vld [vmem:[%s3748_s27 + $0x64] sm:$0xf] }
  0x55   : > { %v1377_v57 = vshrl.u32 %v4132_v22, 16  ;;  %v3126_v2 = vcombine.low %v1304_v41, %v1314_v20  ;;  %v1328_v11 = vsel %vm3791_vm4, %v1323_v29, %v4126_v36  ;;  %v4173_v51 = vrot.slane %v1373_v53, 5 }
  0x56   : > { %3477 = vmatmul.mubr.msk.bf16.gmra.mxu0 %vm452_vm3, %v3044_v26  ;;  %v1383_v28 = vshll.u32 %v4144_v31, 16  ;;  %v1338_v13 = vsel %vm3791_vm4, %v1333_v46, %v1337_v47  ;;  %v1370_v15 = vor.u32 %v1369_v50, %v1366_v42  ;;  %v1388_v7 = vshrl.u32 %v3111_v0, 16 }
  0x57   : > { %3508 = vmatprep.mubr.msk.bf16.mxu0 %vm452_vm3, %v3125_v39  ;;  %v1379_v52 = vrot.slane %v1377_v57, 4  ;;  %v1347_v60 = vrot.slane %v1346_v59, 4  ;;  %v1391_v9 = vshll.u32 %v3111_v0, 16  ;;  %v1397_v36 = vshll.u32 %v4167_v61, 16  ;;  %v3664_v0 = vld [vmem:[%s3748_s27 + $0x24] sm:$0xff]  }
  0x58   : > { %v1401_v10 = vshrl.u32 %v4167_v61, 16  ;;  %v1357_v12 = vrot.slane %v1356_v35, 4  ;;  %v1361_v18 = vrot.slane %v1359_v6, 5  ;;  %v1390_v24 = vrot.slane %v1388_v7, 4 }
  0x59   : > { %v1380_v19 = vor.u32 %v1379_v52, %v4173_v51  ;;  %v3127_v58 = vcombine.low %v1328_v11, %v1338_v13  ;;  %v1385_v26 = vrot.slane %v1383_v28, 5  ;;  %v1393_v21 = vrot.slane %v1391_v9, 5  ;;  %v3672_v28 = vld [vmem:[%s4909_s1 + $0x78] sm:$0xff]  }
  0x5a   : > { %3455 = vmatmul.mubr.msk.bf16.gmra.mxu1 %vm452_vm3, %v3012_v14  ;;  %v4196_v16 = vrot.slane %v1397_v36, 5  ;;  %v1371_v39 = vrot.slane %v1370_v15, 4  ;;  %v1403_v43 = vrot.slane %v1401_v10, 4  ;;  %v1412_v30 = vshrl.u32 %v3114_v3, 16  ;;  %v3670_v36 = vld [vmem:[%s4909_s1 + $0x64] sm:$0xff]  }
  0x5b   : > { %3486 = vmatprep.mubr.msk.bf16.mxu1 %vm452_vm3, %v3660_v56  ;;  %v1381_v41 = vrot.slane %v1380_v19, 4  ;;  %v1352_v23 = vsel %vm3791_vm4, %v1347_v60, %v4150_v44  ;;  %v1415_v14 = vshll.u32 %v3114_v3, 16  ;;  %v1421_v29 = vshll.u32 %v4181_v8, 16  ;;  %v3662_v44 = vld [vmem:[%s3748_s27 + $0x18] sm:$0xff]   ;;  %v3666_v56 = vld [vmem:[%s4909_s1 + $0x6c] sm:$0xff]  }
  0x5c   : > { %v1425_v5 = vshrl.u32 %v4181_v8, 16  ;;  %v1362_v45 = vsel %vm3791_vm4, %v1357_v12, %v1361_v18  ;;  %v1394_v20 = vor.u32 %v1393_v21, %v1390_v24  ;;  %v1407_v46 = vshll.u32 %v4184_v49, 16  ;;  %v4243_v12 = vld [vmem:[%s3748_s27 + $0x68] sm:$0x1] }
  0x5d   : > { %v1414_v47 = vrot.slane %v1412_v30, 4  ;;  %v1404_v59 = vor.u32 %v1403_v43, %v4196_v16  ;;  %v1417_v42 = vrot.slane %v1415_v14, 5  ;;  %v4217_v50 = vrot.slane %v1421_v29, 5  ;;  %v3144_v30 = vld [vmem:[%s3748_s27 + $0xc] sm:$0xe] }
  0x5e   : > { %3509 = vmatmul.mubr.msk.bf16.vlgmr.msra.gmra.mxu0 %vm452_vm3, %v3126_v2  ;;  %v1431_v53 = vshll.u32 %v4190_v25, 16  ;;  %v1376_v35 = vsel %vm3791_vm4, %v1371_v39, %v4173_v51  ;;  %v1386_v6 = vsel %vm3791_vm4, %v1381_v41, %v1385_v26  ;;  %v1427_v57 = vrot.slane %v1425_v5, 4  ;;  %v4250_v39 = vld [vmem:[%s4909_s1 + $0xb0] ss:$0 sps:$4 sm:$0x33]   ;;  %v3668_v41 = vld [vmem:[%s3748_s27 + $0x3c] sm:$0xff]  }
  0x5f   : > { %3547 = vmatpush3.bf16.msra.mxu0 %v2020_v27  ;;  %3512 = vmatprep.mubr.msk.bf16.mxu0 %vm452_vm3, %v3127_v58  ;;  %v1436_v2 = vshrl.u32 %v3117_v38, 16  ;;  %v1802_v11 = vsel %vm477_vm0, %v4076_v17, 0  ;;  %v1418_v27 = vor.u32 %v1417_v42, %v1414_v47  ;;  %v1439_v3 = vshll.u32 %v3117_v38, 16  ;;  %v3665_v38 = vld [vmem:[%s3748_s27 + $0x30] sm:$0xff]  }
  0x60   : > { %3548 = vmatprep.subr.bf16.mxu0 %v3667_v40  ;;  %v1445_v13 = vshll.u32 %v4212_v54, 16  ;;  %v3128_v15 = vcombine.low %v1352_v23, %v1362_v45  ;;  %v1409_v51 = vrot.slane %v1407_v46, 5  ;;  %v1428_v52 = vor.u32 %v1427_v57, %v4217_v50  ;;  %v4265_v5 = vld [vmem:[%s4909_s1 + $0x9c] ss:$0 sps:$4 sm:$0x33]  }
  0x61   : > { %v1449_v7 = vshrl.u32 %v4212_v54, 16  ;;  %v3129_v60 = vcombine.low %v1376_v35, %v1386_v6  ;;  %v1395_v17 = vrot.slane %v1394_v20, 4  ;;  %v1405_v9 = vrot.slane %v1404_v59, 4  ;;  %v3669_v35 = vld [vmem:[%s3748_s27 + $0x48] sm:$0xff]   ;;  %v3671_v6 = vld [vmem:[%s3748_s27 + $0x54] sm:$0xff]  }
  0x62   : > { %3487 = vmatmul.mubr.msk.bf16.vlgmr.msra.gmra.mxu1 %vm452_vm3, %v3662_v44  ;;  %v1433_v10 = vrot.slane %v1431_v53, 5  ;;  %v1438_v18 = vrot.slane %v1436_v2, 4  ;;  %v1441_v19 = vrot.slane %v1439_v3, 5  ;;  %v1447_v24 = vrot.slane %v1445_v13, 5  ;;  %v3146_v2 = vld [vmem:[%s3748_s27 + $0x24] sm:$0xe] }
  0x63   : > { %3525 = vmatpush3.bf16.msra.mxu1 %v1802_v11  ;;  %3490 = vmatprep.mubr.msk.bf16.mxu1 %vm452_vm3, %v3664_v0  ;;  %v1451_v58 = vrot.slane %v1449_v7, 4  ;;  %v1419_v26 = vrot.slane %v1418_v27, 4  ;;  %v1429_v21 = vrot.slane %v1428_v52, 4  ;;  %v1400_v43 = vsel %vm3791_vm4, %v1395_v17, %v4196_v16  ;;  %v3145_v0 = vld [vmem:[%s3748_s27 + $0x18] sm:$0xe] }
  0x64   : > { %3526 = vmatprep.subr.bf16.mxu1 %v3666_v56  ;;  %3549 = vmatpush3.bf16.msra.mxu0 %v3667_v40  ;;  %v1410_v23 = vsel %vm3791_vm4, %v1405_v9, %v1409_v51  ;;  %v1442_v40 = vor.u32 %v1441_v19, %v1438_v18  ;;  %v1455_v29 = vshll.u32 %v4243_v12, 16  ;;  %v1678_v20 = vrot.slane %v4025_v37, 5  ;;  %v3147_v3 = vld [vmem:[%s3748_s27 + $0x30] sm:$0xe]  ;;  %v3148_v52 = vld [vmem:[%s3748_s27 + $0x3c] sm:$0xe] }
  0x65   : > { %3550 = vmatprep.subr.bf16.mxu0 %v3672_v28  ;;  %v1452_v14 = vor.u32 %v1451_v58, %v1447_v24  ;;  %v1424_v16 = vsel %vm3791_vm4, %v1419_v26, %v4217_v50  ;;  %v1434_v45 = vsel %vm3791_vm4, %v1429_v21, %v1433_v10  ;;  %v3130_v46 = vcombine.low %v1400_v43, %v1410_v23  ;;  %v3149_v17 = vld [vmem:[%s3748_s27 + $0x48] sm:$0xe]  ;;  %v3673_v43 = vld [vmem:[%s3748_s27 + $0x60] sm:$0xff]  }
  0x66   : > { %3513 = vmatmul.mubr.msk.bf16.gmra.mxu0 %vm452_vm3, %v3128_v15  ;;  %v3152_v47 = vrot.slane %v3144_v30, 9  ;;  %v3131_v44 = vcombine.low %v1424_v16, %v1434_v45  ;;  %v1443_v59 = vrot.slane %v1442_v40, 4  ;;  %v1457_v50 = vrot.slane %v1455_v29, 5  ;;  %v3150_v40 = vld [vmem:[%s3748_s27 + $0x54] sm:$0xe] }
  0x67   : > { %3527 = vmatpush3.bf16.msra.mxu1 %v3666_v56  ;;  %3516 = vmatprep.mubr.msk.bf16.mxu0 %vm452_vm3, %v3129_v60  ;;  %v1453_v42 = vrot.slane %v1452_v14, 4  ;;  %v1680_v53 = vrot.slane %v1678_v20, 4  ;;  %v1681_v37 = vrot.slane %v4033_v62, 5  ;;  %v1685_v56 = vrot.slane %v4040_v4, 5  ;;  %v3151_v16 = vld [vmem:[%s3748_s27 + $0x60] sm:$0xe] }
  0x68   : > { %3528 = vmatprep.subr.bf16.mxu1 %v3670_v36  ;;  %3551 = vmatpush3.bf16.msra.mxu0 %v3672_v28  ;;  %v1448_v57 = vsel %vm3791_vm4, %v1443_v59, %v1447_v24  ;;  %v1692_v11 = vrot.slane %v4093_v48, 5  ;;  %v1679_v4 = vsel %vm3936_vm7, %v3152_v47, %v1678_v20  ;;  %v3153_v28 = vrot.slane %v3145_v0, 9 }
  0x69   : > { %3627 = vmatprep.subr.msk.bf16.mxu0 %vm477_vm0, %v4250_v39  ;;  %v1458_v62 = vsel %vm3791_vm4, %v1453_v42, %v1457_v50  ;;  %v1682_v27 = vsel %vm3936_vm7, %v1680_v53, %v1681_v37  ;;  %v1699_v13 = vrot.slane %v4112_v1, 5  ;;  %v1687_v15 = vrot.slane %v1685_v56, 4  ;;  %v3674_v1 = vld [vmem:[%s3748_s27 + $0x18] sm:$0xff]   ;;  %v3676_v53 = vld [vmem:[%s3748_s27 + $0x24] sm:$0xff]  }
  0x6a   : > { %3491 = vmatmul.mubr.msk.bf16.gmra.mxu1 %vm452_vm3, %v3665_v38  ;;  %v1688_v51 = vrot.slane %v4051_v63, 5  ;;  %v1706_v7 = vrot.slane %v4132_v22, 5  ;;  %v3132_v48 = vcombine.low %v1448_v57, %v1458_v62  ;;  %v3154_v60 = vrot.slane %v3146_v2, 9  ;;  %v3678_v57 = vld [vmem:[%s3748_s27 + $0x30] sm:$0xff]  }
  0x6b   : > { %3494 = vmatprep.mubr.msk.bf16.mxu1 %vm452_vm3, %v3668_v41  ;;  %3529 = vmatpush3.bf16.msra.mxu1 %v3670_v36  ;;  %v1713_v9 = vrot.slane %v4167_v61, 5  ;;  %v3165_v36 = vcombine.low %v1679_v4, %v1682_v27  ;;  %v1694_v10 = vrot.slane %v1692_v11, 4  ;;  %v1695_v63 = vrot.slane %v4100_v55, 5  ;;  %v3224_v61 = vld [vmem:[%s3748_s27 + $0x18] sm:$0xf] }
  0x6c   : > { %3626 = vmatprep.subr.msk.bf16.mxu1 %vm477_vm0, %v4265_v5  ;;  %v3155_v18 = vrot.slane %v3147_v3, 9  ;;  %v4309_v22 = vsel %vm3936_vm7, %v3153_v28, %v1685_v56  ;;  %v1701_v19 = vrot.slane %v1699_v13, 4  ;;  %v1702_v24 = vrot.slane %v4135_v34, 5  ;;  %v4319_v41 = vld [vmem:[%s3748_s27 + $0x1c] sm:$0xf] }
  0x6d   : > { %v3156_v58 = vrot.slane %v3148_v52, 9  ;;  %v4315_v26 = vsel %vm3936_vm7, %v1687_v15, %v1688_v51  ;;  %v1708_v21 = vrot.slane %v1706_v7, 4  ;;  %v1709_v38 = vrot.slane %v4144_v31, 5  ;;  %v3227_v28 = vld [vmem:[%s3748_s27 + $0x24] sm:$0xf] }
  0x6e   : > { %3517 = vmatmul.mubr.msk.bf16.gmra.mxu0 %vm452_vm3, %v3130_v46  ;;  %v3157_v55 = vrot.slane %v3149_v17, 9  ;;  %v4325_v30 = vsel %vm3936_vm7, %v3154_v60, %v1692_v11  ;;  %v1715_v34 = vrot.slane %v1713_v9, 4  ;;  %v1716_v23 = vrot.slane %v4184_v49, 5  ;;  %v4390_v51 = vld [vmem:[%s3748_s27 + $0x20] sm:$0x1] }
  0x6f   : > { %3520 = vmatprep.mubr.msk.bf16.mxu0 %vm452_vm3, %v3131_v44  ;;  %v1720_v14 = vrot.slane %v4181_v8, 5  ;;  %v4333_v31 = vsel %vm3936_vm7, %v1694_v10, %v1695_v63  ;;  %v4337_v29 = vsel %vm3936_vm7, %v3155_v18, %v1699_v13  ;;  %v2160_v45 = vshrl.u32 %v3224_v61, 16  ;;  %v4393_v52 = vld [vmem:[%s3748_s27 + $0x28] sm:$0xf] }
  0x70   : > { %v2163_v20 = vshll.u32 %v3224_v61, 16  ;;  %v4342_v49 = vsel %vm3936_vm7, %v1701_v19, %v1702_v24  ;;  %v4346_v8 = vsel %vm3936_vm7, %v3156_v58, %v1706_v7  ;;  %v2169_v46 = vshll.u32 %v4319_v41, 16 }
  0x71   : > { %v2173_v47 = vshrl.u32 %v4319_v41, 16  ;;  %v4352_v44 = vsel %vm3936_vm7, %v1708_v21, %v1709_v38  ;;  %v4356_v59 = vsel %vm3936_vm7, %v3157_v55, %v1713_v9  ;;  %v3158_v42 = vrot.slane %v3150_v40, 9  ;;  %v4410_v9 = vld [vmem:[%s3748_s27 + $0x34] sm:$0xf]  ;;  %v3686_v21 = vld [vmem:[%s4909_s1 + $0xa0] sm:$0xff]  }
  0x72   : > { %3495 = vmatmul.mubr.msk.bf16.gmra.mxu1 %vm452_vm3, %v3669_v35  ;;  %v1723_v50 = vrot.slane %v4190_v25, 5  ;;  %v4363_v37 = vsel %vm3936_vm7, %v1715_v34, %v1716_v23  ;;  %v1722_v0 = vrot.slane %v1720_v14, 4  ;;  %v3159_v56 = vrot.slane %v3151_v16, 9  ;;  %v3684_v34 = vld [vmem:[%s4909_s1 + $0x8c] sm:$0xff]  }
  0x73   : > { %3498 = vmatprep.mubr.msk.bf16.mxu1 %vm452_vm3, %v3671_v6  ;;  %v1727_v35 = vrot.slane %v4212_v54, 5  ;;  %v2421_v6 = vsel %vm477_vm0, %v4265_v5, 0  ;;  %v2694_v25 = vsel %vm477_vm0, %v4250_v39, 0  ;;  %v2162_v62 = vrot.slane %v2160_v45, 4  ;;  %v3681_v54 = vld [vmem:[%s4909_s1 + $0xa8] sm:$0xff]  }
  0x74   : > { %v2165_v2 = vrot.slane %v2163_v20, 5  ;;  %v3166_v11 = vcombine.low %v4309_v22, %v4315_v26  ;;  %v3167_v4 = vcombine.low %v4325_v30, %v4333_v31  ;;  %v4379_v5 = vrot.slane %v2169_v46, 5  ;;  %v3680_v22 = vld [vmem:[%s4909_s1 + $0x94] sm:$0xff]   ;;  %v3679_v26 = vld [vmem:[%s3748_s27 + $0x3c] sm:$0xff]   ;;  %v3682_v30 = vld [vmem:[%s3748_s27 + $0x48] sm:$0xff]  }
  0x75   : > { %v2175_v27 = vrot.slane %v2173_v47, 4  ;;  %v3168_v39 = vcombine.low %v4337_v29, %v4342_v49  ;;  %v3169_v3 = vcombine.low %v4346_v8, %v4352_v44  ;;  %v3170_v13 = vcombine.low %v4356_v59, %v4363_v37  ;;  %v4441_v16 = vld [vmem:[%s3748_s27 + $0x2c] sm:$0x1] }
  0x76   : > { %3521 = vmatmul.mubr.msk.bf16.gmra.mxu0 %vm452_vm3, %v3132_v48  ;;  %v1730_v15 = vrot.slane %v4243_v12, 5  ;;  %v4398_v7 = vsel %vm3936_vm7, %v3158_v42, %v1720_v14  ;;  %v4402_v48 = vsel %vm3936_vm7, %v1722_v0, %v1723_v50  ;;  %v4406_v60 = vsel %vm3936_vm7, %v3159_v56, %v1727_v35  ;;  %v3230_v12 = vld [vmem:[%s3748_s27 + $0x30] sm:$0xf]  ;;  %v3233_v42 = vld [vmem:[%s3748_s27 + $0x3c] sm:$0xf] }
  0x77   : > { %3552 = vmatprep.mubr.msk.bf16.mxu0 %vm452_vm3, %v3674_v1  ;;  %v1729_v17 = vrot.slane %v1727_v35, 4  ;;  %v3272_v1 = vld [vmem:[%s3748_s27 + $0x18] sm:$0xe]  ;;  %v2570_v10 = vrot.slane %v4319_v41, 5  ;;  %v2184_v63 = vshrl.u32 %v3227_v28, 16  ;;  %v2187_v18 = vshll.u32 %v3227_v28, 16 }
  0x78   : > { %v2176_v19 = vor.u32 %v2175_v27, %v4379_v5  ;;  %v2179_v24 = vshll.u32 %v4390_v51, 16  ;;  %v2193_v58 = vshll.u32 %v4393_v52, 16  ;;  %v2197_v61 = vshrl.u32 %v4393_v52, 16  ;;  %v3273_v35 = vld [vmem:[%s3748_s27 + $0x24] sm:$0xe] }
  0x79   : > { %v2208_v38 = vshrl.u32 %v3230_v12, 16  ;;  %v2211_v55 = vshll.u32 %v3230_v12, 16  ;;  %v2217_v41 = vshll.u32 %v4410_v9, 16  ;;  %v3171_v23 = vcombine.low %v4398_v7, %v4402_v48  ;;  %v4477_v12 = vld [vmem:[%s3748_s27 + $0x40] sm:$0xf] }
  0x7a   : > { %3499 = vmatmul.mubr.msk.bf16.gmra.mxu1 %vm452_vm3, %v3673_v43  ;;  %v2221_v43 = vshrl.u32 %v4410_v9, 16  ;;  %v4437_v40 = vsel %vm3936_vm7, %v1729_v17, %v1730_v15  ;;  %v3280_v14 = vrot.slane %v3272_v1, 9  ;;  %v2573_v31 = vrot.slane %v4390_v51, 5 }
  0x7b   : > { %3530 = vmatprep.mubr.msk.bf16.mxu1 %vm452_vm3, %v3165_v36  ;;  %v2166_v36 = vor.u32 %v2165_v2, %v2162_v62  ;;  %v2572_v20 = vrot.slane %v2570_v10, 4  ;;  %v2186_v46 = vrot.slane %v2184_v63, 4  ;;  %v2189_v47 = vrot.slane %v2187_v18, 5 }
  0x7c   : > { %v4447_v50 = vrot.slane %v2176_v19, 4  ;;  %v4451_v0 = vrot.slane %v2193_v58, 5  ;;  %v2199_v56 = vrot.slane %v2197_v61, 4  ;;  %v4457_v62 = vrot.slane %v2217_v41, 5  ;;  %v3236_v41 = vld [vmem:[%s3748_s27 + $0x48] sm:$0xf] }
  0x7d   : > { %v4444_v45 = vrot.slane %v2166_v36, 4  ;;  %v2223_v2 = vrot.slane %v2221_v43, 4  ;;  %v2235_v27 = vshll.u32 %v3233_v42, 16  ;;  %v4473_v15 = vsel %vm3936_vm7, %v2572_v20, %v2573_v31  ;;  %v4506_v20 = vld [vmem:[%s3748_s27 + $0x4c] sm:$0xf] }
  0x7e   : > { %3553 = vmatmul.mubr.msk.bf16.vlgmr.msra.gmra.mxu0 %vm452_vm3, %v3676_v53  ;;  %v4449_v53 = vrot.slane %v2179_v24, 5  ;;  %v2190_v51 = vor.u32 %v2189_v47, %v2186_v46  ;;  %v2203_v17 = vshll.u32 %v4441_v16, 16  ;;  %v2200_v36 = vor.u32 %v2199_v56, %v4451_v0  ;;  %v3274_v24 = vld [vmem:[%s3748_s27 + $0x30] sm:$0xe] }
  0x7f   : > { %3591 = vmatpush3.bf16.msra.mxu0 %v2694_v25  ;;  %3556 = vmatprep.mubr.msk.bf16.mxu0 %vm452_vm3, %v3678_v57  ;;  %v2210_v25 = vrot.slane %v2208_v38, 4  ;;  %v2213_v57 = vrot.slane %v2211_v55, 5  ;;  %v2172_v28 = vsel %vm3791_vm4, %v4444_v45, %v4379_v5  ;;  %v3281_v1 = vrot.slane %v3273_v35, 9  ;;  %v4580_v45 = vld [vmem:[%s3748_s27 + $0x58] sm:$0xf] }
  0x80   : > { %3592 = vmatprep.subr.bf16.mxu0 %v3681_v54  ;;  %v2182_v18 = vsel %vm3791_vm4, %v4447_v50, %v4449_v53  ;;  %v2224_v19 = vor.u32 %v2223_v2, %v4457_v62  ;;  %v2584_v58 = vrot.slane %v4410_v9, 5  ;;  %v2245_v38 = vshrl.u32 %v4477_v12, 16  ;;  %v3685_v9 = vld [vmem:[%s3748_s27 + $0x60] sm:$0xff]   ;;  %v3275_v53 = vld [vmem:[%s3748_s27 + $0x3c] sm:$0xe] }
  0x81   : > { %v2191_v49 = vrot.slane %v2190_v51, 4  ;;  %v2580_v55 = vrot.slane %v4441_v16, 5  ;;  %v2201_v43 = vrot.slane %v2200_v36, 4  ;;  %v3282_v31 = vrot.slane %v3274_v24, 9  ;;  %v4515_v16 = vld [vmem:[%s3748_s27 + $0x44] sm:$0x1] }
  0x82   : > { %3531 = vmatmul.mubr.msk.bf16.vlgmr.msra.gmra.mxu1 %vm452_vm3, %v3166_v11  ;;  %v3172_v11 = vcombine.low %v4406_v60, %v4437_v40  ;;  %v2225_v44 = vrot.slane %v2224_v19, 4  ;;  %v2247_v50 = vrot.slane %v2245_v38, 4  ;;  %v2256_v56 = vshrl.u32 %v3236_v41, 16  ;;  %v3241_v40 = vld [vmem:[%s3748_s27 + $0x5c] sm:$0x1] }
  0x83   : > { %3569 = vmatpush3.bf16.msra.mxu1 %v2421_v6  ;;  %3534 = vmatprep.mubr.msk.bf16.mxu1 %vm452_vm3, %v3167_v4  ;;  %v4455_v6 = vld [vmem:[%s3748_s27 + $0x38] sm:$0x1]  ;;  %v4464_v4 = vsel %vm3936_vm7, %v3280_v14, %v2570_v10  ;;  %v2577_v10 = vrot.slane %v4393_v52, 5  ;;  %v2259_v35 = vshll.u32 %v3236_v41, 16  ;;  %v2251_v36 = vshll.u32 %v4515_v16, 16 }
  0x84   : > { %3570 = vmatprep.subr.bf16.mxu1 %v3680_v22  ;;  %3593 = vmatpush3.bf16.msra.mxu0 %v3681_v54  ;;  %v2232_v54 = vshrl.u32 %v3233_v42, 16  ;;  %v2227_v63 = vshll.u32 %v4455_v6, 16  ;;  %v3683_v52 = vld [vmem:[%s3748_s27 + $0x54] sm:$0xff]   ;;  %v3293_v29 = vcombine.low %v4464_v4, %v4473_v15  ;;  %v2258_v59 = vrot.slane %v2256_v56, 4 }
  0x85   : > { %3594 = vmatprep.subr.bf16.mxu0 %v3686_v21  ;;  %v4512_v46 = vsel %vm3936_vm7, %v3281_v1, %v2577_v10  ;;  %v3687_v1 = vld [vmem:[%s3748_s27 + $0x6c] sm:$0xff]   ;;  %v2261_v37 = vrot.slane %v2259_v35, 5  ;;  %v3253_v24 = vcombine.low %v2172_v28, %v2182_v18  ;;  %v2598_v5 = vrot.slane %v4506_v20, 5 }
  0x86   : > { %3557 = vmatmul.mubr.msk.bf16.gmra.mxu0 %vm452_vm3, %v3679_v26  ;;  %v2234_v61 = vrot.slane %v2232_v54, 4  ;;  %v2237_v26 = vrot.slane %v2235_v27, 5  ;;  %v2229_v14 = vrot.slane %v2227_v63, 5  ;;  %v4534_v27 = vsel %vm3936_vm7, %v3282_v31, %v2584_v58 }
  0x87   : > { %3571 = vmatpush3.bf16.msra.mxu1 %v3680_v22  ;;  %3560 = vmatprep.mubr.msk.bf16.mxu0 %vm452_vm3, %v3682_v30  ;;  %v2214_v22 = vor.u32 %v2213_v57, %v2210_v25  ;;  %v2579_v30 = vrot.slane %v2577_v10, 4  ;;  %v2269_v25 = vshrl.u32 %v4506_v20, 16  ;;  %v2196_v57 = vsel %vm3791_vm4, %v2191_v49, %v4451_v0  ;;  %v3242_v49 = vld [vmem:[%s3748_s27 + $0x60] sm:$0xf] }
  0x88   : > { %3572 = vmatprep.subr.bf16.mxu1 %v3684_v34  ;;  %3595 = vmatpush3.bf16.msra.mxu0 %v3686_v21  ;;  %v2241_v21 = vshll.u32 %v4477_v12, 16  ;;  %v2238_v47 = vor.u32 %v2237_v26, %v2234_v61  ;;  %v3283_v63 = vrot.slane %v3275_v53, 9  ;;  %v2253_v26 = vrot.slane %v2251_v36, 5 }
  0x89   : > { %v2215_v8 = vrot.slane %v2214_v22, 4  ;;  %v4530_v54 = vsel %vm3936_vm7, %v2579_v30, %v2580_v55  ;;  %v2591_v22 = vrot.slane %v4477_v12, 5  ;;  %v3276_v12 = vld [vmem:[%s3748_s27 + $0x48] sm:$0xe]  ;;  %v4598_v30 = vld [vmem:[%s3748_s27 + $0x64] sm:$0xf] }
  0x8a   : > { %3535 = vmatmul.mubr.msk.bf16.gmra.mxu1 %vm452_vm3, %v3168_v39  ;;  %v2205_v39 = vrot.slane %v2203_v17, 5  ;;  %v4517_v42 = vrot.slane %v2241_v21, 5  ;;  %v2230_v17 = vsel %vm3791_vm4, %v2225_v44, %v2229_v14  ;;  %v4551_v10 = vrot.slane %v2238_v47, 4 }
  0x8b   : > { %3538 = vmatprep.mubr.msk.bf16.mxu1 %vm452_vm3, %v3169_v3  ;;  %3573 = vmatpush3.bf16.msra.mxu1 %v3684_v34  ;;  %v2586_v3 = vrot.slane %v2584_v58, 4  ;;  %v2587_v34 = vrot.slane %v4455_v6, 5  ;;  %v2265_v6 = vshll.u32 %v4506_v20, 16  ;;  %v2220_v51 = vsel %vm3791_vm4, %v2215_v8, %v4457_v62 }
  0x8c   : > { %v2206_v2 = vsel %vm3791_vm4, %v2201_v43, %v2205_v39  ;;  %v2248_v62 = vor.u32 %v2247_v50, %v4517_v42  ;;  %v3294_v7 = vcombine.low %v4512_v46, %v4530_v54  ;;  %v4575_v61 = vcombine.low %v2220_v51, %v2230_v17  ;;  %v3244_v17 = vld [vmem:[%s3748_s27 + $0x68] sm:$0x1] }
  0x8d   : > { %v4543_v0 = vsel %vm3936_vm7, %v2586_v3, %v2587_v34  ;;  %v4559_v19 = vrot.slane %v2265_v6, 5  ;;  %v4566_v58 = vcombine.low %v2196_v57, %v2206_v2  ;;  %v2594_v21 = vrot.slane %v4515_v16, 5 }
  0x8e   : > { %3561 = vmatmul.mubr.msk.bf16.gmra.mxu0 %vm452_vm3, %v3683_v52  ;;  %v3295_v48 = vcombine.low %v4534_v27, %v4543_v0  ;;  %v3239_v52 = vld [vmem:[%s3748_s27 + $0x54] sm:$0xf]  ;;  %v2244_v28 = vsel %vm3791_vm4, %v4551_v10, %v4517_v42  ;;  %v2249_v18 = vrot.slane %v2248_v62, 4  ;;  %v4589_v38 = vsel %vm3936_vm7, %v3283_v63, %v2591_v22  ;;  %v3278_v63 = vld [vmem:[%s3748_s27 + $0x60] sm:$0xe] }
  0x8f   : > { %3564 = vmatprep.mubr.msk.bf16.mxu0 %vm452_vm3, %v3685_v9  ;;  %v2593_v9 = vrot.slane %v2591_v22, 4  ;;  %v2262_v39 = vor.u32 %v2261_v37, %v2258_v59  ;;  %v3284_v43 = vrot.slane %v3276_v12, 9  ;;  %v2280_v14 = vshrl.u32 %v3239_v52, 16  ;;  %v3245_v59 = vld [vmem:[%s3748_s27 + $0x6c] sm:$0xf] }
  0x90   : > { %v2283_v31 = vshll.u32 %v3239_v52, 16  ;;  %v2289_v20 = vshll.u32 %v4580_v45, 16  ;;  %v2293_v8 = vshrl.u32 %v4580_v45, 16  ;;  %v2600_v44 = vrot.slane %v2598_v5, 4 }
  0x91   : > { %v2304_v34 = vshrl.u32 %v3242_v49, 16  ;;  %v2307_v4 = vshll.u32 %v3242_v49, 16  ;;  %v2254_v15 = vsel %vm3791_vm4, %v2249_v18, %v2253_v26  ;;  %v2313_v46 = vshll.u32 %v4598_v30, 16 }
  0x92   : > { %3539 = vmatmul.mubr.msk.bf16.gmra.mxu1 %vm452_vm3, %v3170_v13  ;;  %v2271_v13 = vrot.slane %v2269_v25, 4  ;;  %v2317_v16 = vshrl.u32 %v4598_v30, 16  ;;  %v2263_v47 = vrot.slane %v2262_v39, 4  ;;  %v2599_v60 = vsel %vm3936_vm7, %v3284_v43, %v2598_v5  ;;  %v3277_v25 = vld [vmem:[%s3748_s27 + $0x54] sm:$0xe] }
  0x93   : > { %3542 = vmatprep.mubr.msk.bf16.mxu1 %vm452_vm3, %v3171_v23  ;;  %v3238_v23 = vld [vmem:[%s3748_s27 + $0x50] sm:$0x1]  ;;  %v2285_v53 = vrot.slane %v2283_v31, 5  ;;  %v4616_v56 = vrot.slane %v2289_v20, 5  ;;  %v2295_v35 = vrot.slane %v2293_v8, 4  ;;  %v2605_v57 = vrot.slane %v4580_v45, 5 }
  0x94   : > { %v2272_v55 = vor.u32 %v2271_v13, %v4559_v19  ;;  %v2275_v41 = vshll.u32 %v3238_v23, 16  ;;  %v2601_v3 = vrot.slane %v3238_v23, 5  ;;  %v2306_v2 = vrot.slane %v2304_v34, 4  ;;  %v3246_v23 = vld [vmem:[%s3748_s27 + $0x70] sm:$0xf] }
  0x95   : > { %v2309_v54 = vrot.slane %v2307_v4, 5  ;;  %v3256_v27 = vcombine.low %v2244_v28, %v2254_v15  ;;  %v4625_v0 = vrot.slane %v2313_v46, 5  ;;  %v2319_v36 = vrot.slane %v2317_v16, 4 }
  0x96   : > { %3565 = vmatmul.mubr.msk.bf16.gmra.mxu0 %vm452_vm3, %v3687_v1  ;;  %v2273_v42 = vrot.slane %v2272_v55, 4  ;;  %v2277_v50 = vrot.slane %v2275_v41, 5  ;;  %v2602_v6 = vsel %vm3936_vm7, %v2600_v44, %v2601_v3  ;;  %v2268_v1 = vsel %vm3791_vm4, %v2263_v47, %v4559_v19  ;;  %v3247_v3 = vld [vmem:[%s3748_s27 + $0x74] sm:$0x1] }
  0x97   : > { %3596 = vmatprep.mubr.msk.bf16.mxu0 %vm452_vm3, %v3293_v29  ;;  %v2595_v29 = vsel %vm3936_vm7, %v2593_v9, %v2594_v21  ;;  %v2299_v62 = vshll.u32 %v3241_v40, 16  ;;  %v2612_v22 = vrot.slane %v4598_v30, 5  ;;  %v3297_v37 = vcombine.low %v2599_v60, %v2602_v6 }
  0x98   : > { %v3296_v51 = vcombine.low %v4589_v38, %v2595_v29  ;;  %v2278_v10 = vsel %vm3791_vm4, %v2273_v42, %v2277_v50  ;;  %v2607_v12 = vrot.slane %v2605_v57, 4  ;;  %v2310_v52 = vor.u32 %v2309_v54, %v2306_v2  ;;  %v3279_v29 = vld [vmem:[%s3748_s27 + $0x6c] sm:$0xe]  ;;  %s3314_s27 = sshll.u32 %s4963_s13, 7 }
  0x99   : > { %v2323_v26 = vshll.u32 %v3244_v17, 16  ;;  %v2320_v19 = vor.u32 %v2319_v36, %v4625_v0  ;;  %v3286_v21 = vrot.slane %v3278_v63, 9  ;;  %v2328_v5 = vshrl.u32 %v3245_v59, 16  ;;  %s4834_s25 = scalar_lea.vmem %s4910_s2, %s3314_s27 }
  0x9a   : > { %3543 = vmatmul.mubr.msk.bf16.gmra.mxu1 %vm452_vm3, %v3172_v11  ;;  %v2282_v11 = vrot.slane %v2280_v14, 4  ;;  %v2331_v45 = vshll.u32 %v3245_v59, 16  ;;  %v2614_v28 = vrot.slane %v2612_v22, 4  ;;  %v2615_v18 = vrot.slane %v3244_v17, 5 }
  0x9b   : > { %3574 = vmatprep.mubr.msk.bf16.mxu1 %vm452_vm3, %v3253_v24  ;;  %v2296_v24 = vor.u32 %v2295_v35, %v4616_v56  ;;  %v2337_v38 = vshll.u32 %v3246_v23, 16  ;;  %v2341_v9 = vshrl.u32 %v3246_v23, 16  ;;  %v3257_v49 = vcombine.low %v2268_v1, %v2278_v10 }
  0x9c   : > { %v2286_v13 = vor.u32 %v2285_v53, %v2282_v11  ;;  %v2301_v41 = vrot.slane %v2299_v62, 5  ;;  %v2311_v30 = vrot.slane %v2310_v52, 4  ;;  %v2325_v14 = vrot.slane %v2323_v26, 5 }
  0x9d   : > { %v2297_v55 = vrot.slane %v2296_v24, 4  ;;  %v2613_v31 = vsel %vm3936_vm7, %v3286_v21, %v2612_v22  ;;  %v2330_v20 = vrot.slane %v2328_v5, 4  ;;  %v2333_v8 = vrot.slane %v2331_v45, 5 }
  0x9e   : > { %3597 = vmatmul.mubr.msk.bf16.vlgmr.msra.gmra.mxu0 %vm452_vm3, %v3294_v7  ;;  %v3285_v7 = vrot.slane %v3277_v25, 9  ;;  %v2287_v39 = vrot.slane %v2286_v13, 4  ;;  %v2616_v44 = vsel %vm3936_vm7, %v2614_v28, %v2615_v18  ;;  %v2339_v34 = vrot.slane %v2337_v38, 5 }
  0x9f   : > { %3600 = vmatprep.mubr.msk.bf16.mxu0 %vm452_vm3, %v3295_v48  ;;  %v2608_v48 = vrot.slane %v3241_v40, 5  ;;  %v2343_v4 = vrot.slane %v2341_v9, 4  ;;  %v2619_v15 = vrot.slane %v3246_v23, 5  ;;  %v2302_v16 = vsel %vm3791_vm4, %v2297_v55, %v2301_v41 }
  0xa0   : > { %v2292_v46 = vsel %vm3791_vm4, %v2287_v39, %v4616_v56  ;;  %v2316_v42 = vsel %vm3791_vm4, %v2311_v30, %v4625_v0  ;;  %v3299_v60 = vcombine.low %v2613_v31, %v2616_v44  ;;  %v2334_v40 = vor.u32 %v2333_v8, %v2330_v20 }
  0xa1   : > { %v2609_v43 = vsel %vm3936_vm7, %v2607_v12, %v2608_v48  ;;  %v2347_v11 = vshll.u32 %v3247_v3, 16  ;;  %v2344_v53 = vor.u32 %v2343_v4, %v2339_v34  ;;  %v3287_v56 = vrot.slane %v3279_v29, 9 }
  0xa2   : > { %3575 = vmatmul.mubr.msk.bf16.vlgmr.msra.gmra.mxu1 %vm452_vm3, %v4566_v58  ;;  %v2606_v58 = vsel %vm3936_vm7, %v3285_v7, %v2605_v57  ;;  %v2621_v35 = vrot.slane %v2619_v15, 4  ;;  %v2622_v6 = vrot.slane %v3247_v3, 5  ;;  %v3258_v25 = vcombine.low %v2292_v46, %v2302_v16 }
  0xa3   : > { %3578 = vmatprep.mubr.msk.bf16.mxu1 %vm452_vm3, %v4575_v61  ;;  %v2321_v61 = vrot.slane %v2320_v19, 4  ;;  %v3298_v47 = vcombine.low %v2606_v58, %v2609_v43  ;;  %v2349_v2 = vrot.slane %v2347_v11, 5  ;;  %v2335_v54 = vrot.slane %v2334_v40, 4 }
  0xa4   : > { %v2623_v17 = vsel %vm3936_vm7, %v2621_v35, %v2622_v6 }
  0xa5   : > { %v2326_v50 = vsel %vm3791_vm4, %v2321_v61, %v2325_v14  ;;  %v2340_v36 = vsel %vm3791_vm4, %v2335_v54, %v2339_v34 }
  0xa6   : > { %3601 = vmatmul.mubr.msk.bf16.gmra.mxu0 %vm452_vm3, %v3296_v51  ;;  %v3259_v57 = vcombine.low %v2316_v42, %v2326_v50  ;;  %v2620_v51 = vsel %vm3936_vm7, %v3287_v56, %v2619_v15 }
  0xa7   : > { %3604 = vmatprep.mubr.msk.bf16.mxu0 %vm452_vm3, %v3297_v37  ;;  %v3300_v0 = vcombine.low %v2620_v51, %v2623_v17 }
  0xaa   : > { %3579 = vmatmul.mubr.msk.bf16.gmra.mxu1 %vm452_vm3, %v3256_v27  ;;  %v2345_v27 = vrot.slane %v2344_v53, 4 }
  0xab   : > { %3582 = vmatprep.mubr.msk.bf16.mxu1 %vm452_vm3, %v3257_v49 }
  0xac   : > { %v2350_v1 = vsel %vm3791_vm4, %v2345_v27, %v2349_v2 }
  0xad   : > { %v3260_v10 = vcombine.low %v2340_v36, %v2350_v1 }
  0xae   : > { %3605 = vmatmul.mubr.msk.bf16.gmra.mxu0 %vm452_vm3, %v3298_v47 }
  0xaf   : > { %3608 = vmatprep.mubr.msk.bf16.mxu0 %vm452_vm3, %v3299_v60 }
  0xb2   : > { %3583 = vmatmul.mubr.msk.bf16.gmra.mxu1 %vm452_vm3, %v3258_v25 }
  0xb3   : > { %3586 = vmatprep.mubr.msk.bf16.mxu1 %vm452_vm3, %v3259_v57 }
  0xb6   : > { %3609 = vmatmul.mubr.msk.bf16.gmra.mxu0 %vm452_vm3, %v3300_v0 }
  0xba   : > { %3587 = vmatmul.mubr.msk.bf16.gmra.mxu1 %vm452_vm3, %v3260_v10 }
  0xe5   : > { %v3422_v62 = vpop.f32.mrf.mxu0 }
  0xe7   : > { %v515_v33 = vpop.f32.mrf.mxu0 }
  0xe9   : > { %v3423_v59 = vpop.f32.mrf.mxu0 }
  0xea   : > { %v3430_v63 = vpop.f32.mrf.mxu1 }
  0xeb   : > { %v518_v13 = vpop.f32.mrf.mxu0 }
  0xec   : > { %v547_v22 = vpop.f32.mrf.mxu1 }
  0xee   : > { %v3431_v37 = vpop.f32.mrf.mxu1 }
  0xf0   : > { %v550_v24 = vpop.f32.mrf.mxu1 }
  0xf6   : > { %v3426_v7 = vpop.f32.mrf.mxu0 }
  0xf8   : > { %v531_v23 = vpop.f32.mrf.mxu0 }
  0xfa   : > { %v3434_v12 = vpop.f32.mrf.mxu1  ;;  %v3427_v48 = vpop.f32.mrf.mxu0 }
  0xfc   : > { %v563_v52 = vpop.f32.mrf.mxu1  ;;  %v534_v32 = vpop.f32.mrf.mxu0 }
  0xfe   : > { %v3435_v26 = vpop.f32.mrf.mxu1  ;;  %v3466_v19 = vpop.f32.mrf.mxu0 }
 0x100   : > { %v4681_v21 = vpop.f32.mrf.mxu1  ;;  %v946_v5 = vpop.f32.mrf.mxu0 }
 0x102   : > { %v3444_v45 = vpop.f32.mrf.mxu1  ;;  %v3467_v28 = vpop.f32.mrf.mxu0 }
 0x103   : > { %v703_v18 = vadd.f32 %v3444_v45, %v3422_v62 }
 0x104   : > { %v694_v38 = vpop.f32.mrf.mxu1  ;;  %v949_v9 = vpop.f32.mrf.mxu0 }
 0x105   : > { %v4683_v49 = vadd.f32 %v3466_v19, %v703_v18  ;;  %v695_v39 = vadd.f32 %v694_v38, %v515_v33 }
 0x106   : > { %v3445_v55 = vpop.f32.mrf.mxu1  ;;  %v3470_v41 = vpop.f32.mrf.mxu0 }
 0x107   : > { %v4685_v58 = vadd.f32 %v946_v5, %v695_v39  ;;  %v706_v43 = vadd.f32 %v3445_v55, %v3423_v59 }
 0x108   : > { %v697_v30 = vpop.f32.mrf.mxu1  ;;  %v962_v14 = vpop.f32.mrf.mxu0 }
 0x109   : > { %v4687_v61 = vadd.f32 %v3467_v28, %v706_v43  ;;  %v698_v31 = vadd.f32 %v697_v30, %v518_v13 }
 0x10a   : > { %v3448_v20 = vpop.f32.mrf.mxu1  ;;  %v3471_v8 = vpop.f32.mrf.mxu0 }
 0x10b   : > { %v4689_v44 = vadd.f32 %v949_v9, %v698_v31  ;;  %v719_v3 = vadd.f32 %v3448_v20, %v3426_v7 }
 0x10c   : > { %v710_v34 = vpop.f32.mrf.mxu1  ;;  %v965_v4 = vpop.f32.mrf.mxu0 }
 0x10d   : > { %v4691_v15 = vadd.f32 %v3470_v41, %v719_v3  ;;  %v711_v29 = vadd.f32 %v710_v34, %v531_v23 }
 0x10e   : > { %v3449_v46 = vpop.f32.mrf.mxu1  ;;  %v3474_v16 = vpop.f32.mrf.mxu0 }
 0x10f   : > { %v4693_v47 = vadd.f32 %v962_v14, %v711_v29  ;;  %v722_v42 = vadd.f32 %v3449_v46, %v3427_v48 }
 0x110   : > { %v713_v50 = vpop.f32.mrf.mxu1  ;;  %v978_v60 = vpop.f32.mrf.mxu0 }
 0x111   : > { %v4695_v40 = vadd.f32 %v3471_v8, %v722_v42  ;;  %v714_v11 = vadd.f32 %v713_v50, %v534_v32 }
 0x112   : > { %v3452_v53 = vpop.f32.mrf.mxu1  ;;  %v3475_v56 = vpop.f32.mrf.mxu0 }
 0x113   : > { %v4697_v35 = vadd.f32 %v965_v4, %v714_v11  ;;  %v735_v6 = vadd.f32 %v3452_v53, %v3430_v63 }
 0x114   : > { %v726_v25 = vpop.f32.mrf.mxu1  ;;  %v981_v57 = vpop.f32.mrf.mxu0 }
 0x115   : > { %v4699_v2 = vadd.f32 %v3474_v16, %v735_v6  ;;  %v727_v54 = vadd.f32 %v726_v25, %v547_v22 }
 0x116   : > { %v3453_v27 = vpop.f32.mrf.mxu1  ;;  %v3478_v51 = vpop.f32.mrf.mxu0 }
 0x117   : > { %v4701_v17 = vadd.f32 %v978_v60, %v727_v54  ;;  %v738_v0 = vadd.f32 %v3453_v27, %v3431_v37 }
 0x118   : > { %v729_v36 = vpop.f32.mrf.mxu1  ;;  %v994_v1 = vpop.f32.mrf.mxu0 }
 0x119   : > { %v4703_v10 = vadd.f32 %v3475_v56, %v738_v0  ;;  %v730_v62 = vadd.f32 %v729_v36, %v550_v24 }
 0x11a   : > { %v3456_v33 = vpop.f32.mrf.mxu1  ;;  %v3479_v59 = vpop.f32.mrf.mxu0 }
 0x11b   : > { %v4705_v13 = vadd.f32 %v981_v57, %v730_v62  ;;  %v751_v63 = vadd.f32 %v3456_v33, %v3434_v12 }
 0x11c   : > { %v742_v7 = vpop.f32.mrf.mxu1  ;;  %v997_v23 = vpop.f32.mrf.mxu0 }
 0x11d   : > { %v4707_v48 = vadd.f32 %v3478_v51, %v751_v63  ;;  %v743_v22 = vadd.f32 %v742_v7, %v563_v52 }
 0x11e   : > { %v3457_v32 = vpop.f32.mrf.mxu1  ;;  %v4709_v19 = vpop.f32.mrf.mxu0 }
 0x11f   : > { %v4711_v5 = vadd.f32 %v994_v1, %v743_v22  ;;  %v754_v37 = vadd.f32 %v3457_v32, %v3435_v26 }
 0x120   : > { %v745_v45 = vpop.f32.mrf.mxu1  ;;  %v4713_v28 = vpop.f32.mrf.mxu0 }
 0x121   : > { %4916 = vst [vmem:[#allocation2_spill] sm:$0xff] %v4711_v5  ;;  %v4715_v24 = vadd.f32 %v3479_v59, %v754_v37  ;;  %v746_v18 = vadd.f32 %v745_v45, %v4681_v21 }
 0x122   : > { %v3488_v38 = vpop.f32.mrf.mxu1  ;;  %v4718_v12 = vpop.f32.mrf.mxu0 }
 0x123   : > { %4917 = vst [vmem:[#allocation3_spill] sm:$0xff] %v4715_v24  ;;  %v4720_v9 = vadd.f32 %v997_v23, %v746_v18 }
 0x124   : > { %v1164_v39 = vpop.f32.mrf.mxu1  ;;  %v4722_v52 = vpop.f32.mrf.mxu0 }
 0x125   : > { %4918 = vst [vmem:[#allocation4_spill] sm:$0xff] %v4720_v9 }
 0x126   : > { %v3489_v55 = vpop.f32.mrf.mxu1  ;;  %v4724_v41 = vpop.f32.mrf.mxu0 }
 0x128   : > { %v1167_v43 = vpop.f32.mrf.mxu1  ;;  %v4726_v26 = vpop.f32.mrf.mxu0 }
 0x12a   : > { %v3492_v30 = vpop.f32.mrf.mxu1  ;;  %v4728_v14 = vpop.f32.mrf.mxu0 }
 0x12c   : > { %v1180_v31 = vpop.f32.mrf.mxu1  ;;  %v4730_v20 = vpop.f32.mrf.mxu0 }
 0x12e   : > { %v4732_v21 = vpop.f32.mrf.mxu1  ;;  %v4734_v8 = vpop.f32.mrf.mxu0 }
 0x130   : > { %v4736_v3 = vpop.f32.mrf.mxu1  ;;  %v4738_v34 = vpop.f32.mrf.mxu0 }
 0x132   : > { %v4740_v4 = vpop.f32.mrf.mxu1  ;;  %v4742_v29 = vpop.f32.mrf.mxu0 }
 0x134   : > { %v4744_v46 = vpop.f32.mrf.mxu1  ;;  %v4746_v16 = vpop.f32.mrf.mxu0 }
 0x136   : > { %v4748_v42 = vpop.f32.mrf.mxu1  ;;  %v4750_v50 = vpop.f32.mrf.mxu0 }
 0x138   : > { %v4752_v60 = vpop.f32.mrf.mxu1  ;;  %v4754_v11 = vpop.f32.mrf.mxu0 }
 0x139   : > { %4919 = vst [vmem:[#allocation5_spill] sm:$0xff] %v4754_v11 }
 0x13a   : > { %v4756_v53 = vpop.f32.mrf.mxu1  ;;  %v4758_v56 = vpop.f32.mrf.mxu0 }
 0x13b   : > { %4920 = vst [vmem:[#allocation6_spill] sm:$0xff] %v4758_v56 }
 0x13c   : > { %v4760_v6 = vpop.f32.mrf.mxu1  ;;  %v4762_v25 = vpop.f32.mrf.mxu0 }
 0x13d   : > { %4921 = vst [vmem:[#allocation7_spill] sm:$0xff] %v4760_v6  ;;  %4922 = vst [vmem:[#allocation8_spill] sm:$0xff] %v4762_v25 }
 0x13e   : > { %v4764_v57 = vpop.f32.mrf.mxu1  ;;  %v3554_v54 = vpop.f32.mrf.mxu0 }
 0x13f   : > { %4923 = vst [vmem:[#allocation9_spill] sm:$0xff] %v4764_v57 }
 0x140   : > { %v4766_v27 = vpop.f32.mrf.mxu1  ;;  %v2056_v51 = vpop.f32.mrf.mxu0 }
 0x141   : > { %4924 = vst [vmem:[#allocation10_spill] sm:$0xff] %v4766_v27 }
 0x142   : > { %v3532_v0 = vpop.f32.mrf.mxu1  ;;  %v3555_v36 = vpop.f32.mrf.mxu0 }
 0x144   : > { %v1838_v1 = vpop.f32.mrf.mxu1  ;;  %v4768_v62 = vpop.f32.mrf.mxu0 }
 0x146   : > { %v3533_v33 = vpop.f32.mrf.mxu1  ;;  %v4770_v59 = vpop.f32.mrf.mxu0 }
 0x148   : > { %v1841_v63 = vpop.f32.mrf.mxu1  ;;  %v4772_v7 = vpop.f32.mrf.mxu0 }
 0x14a   : > { %v3536_v23 = vpop.f32.mrf.mxu1  ;;  %v4774_v22 = vpop.f32.mrf.mxu0 }
 0x14b   : > { %4925 = vst [vmem:[#allocation11_spill] sm:$0xff] %v4774_v22 }
 0x14c   : > { %v1854_v32 = vpop.f32.mrf.mxu1  ;;  %v4776_v37 = vpop.f32.mrf.mxu0 }
 0x14d   : > { %4926 = vst [vmem:[#allocation12_spill] sm:$0xff] %v4776_v37  ;;  %v1229_v37 = vadd.f32 %v3488_v38, %v4683_v49  ;;  %v1228_v38 = vadd.f32 %v1167_v43, %v4689_v44 }
 0x14e   : > { %v4778_v45 = vpop.f32.mrf.mxu1  ;;  %v4780_v18 = vpop.f32.mrf.mxu0 }
 0x14f   : > { %4927 = vst [vmem:[#allocation13_spill] sm:$0xff] %v4780_v18 }
 0x150   : > { %v4782_v25 = vpop.f32.mrf.mxu1  ;;  %v4784_v27 = vpop.f32.mrf.mxu0 }
 0x151   : > { %4928 = vst [vmem:[#allocation14_spill] sm:$0xff] %v4784_v27  ;;  %v1227_v27 = vadd.f32 %v1164_v39, %v4685_v58 }
 0x152   : > { %v4786_v9 = vpop.f32.mrf.mxu1  ;;  %v4788_v56 = vpop.f32.mrf.mxu0 }
 0x153   : > { %4929 = vst [vmem:[#allocation15_spill] sm:$0xff] %v4786_v9  ;;  %4930 = vst [vmem:[#allocation16_spill] sm:$0xff] %v4788_v56  ;;  %v1630_v56 = vadd.f32 %v4709_v19, %v1229_v37  ;;  %v1628_v49 = vadd.f32 %v4713_v28, %v1227_v27 }
 0x154   : > { %v4790_v11 = vpop.f32.mrf.mxu1  ;;  %v4792_v57 = vpop.f32.mrf.mxu0 }
 0x155   : > { %4931 = vst [vmem:[#allocation17_spill] sm:$0xff] %v4790_v11  ;;  %4932 = vst [vmem:[#allocation18_spill] sm:$0xff] %v4792_v57  ;;  %v1230_v57 = vadd.f32 %v3489_v55, %v4687_v61  ;;  %v1901_v19 = vadd.f32 %v1838_v1, %v1628_v49  ;;  %v1231_v61 = vadd.f32 %v1180_v31, %v4693_v47 }
 0x156   : > { %v4794_v22 = vpop.f32.mrf.mxu1  ;;  %v4796_v24 = vpop.f32.mrf.mxu0  ;;  %v1234_v47 = vadd.f32 %v4732_v21, %v4695_v40  ;;  %v1235_v40 = vadd.f32 %v4744_v46, %v4701_v17  ;;  %v1241_v17 = vadd.f32 %v4756_v53, %v4707_v48 }
 0x157   : > { %4933 = vst [vmem:[#allocation19_spill] sm:$0xff] %v4796_v24  ;;  %v1631_v39 = vadd.f32 %v4718_v12, %v1230_v57  ;;  %v2119_v27 = vadd.f32 %v2056_v51, %v1901_v19 }
 0x158   : > { %v4799_v6 = vpop.f32.mrf.mxu1  ;;  %v4801_v18 = vpop.f32.mrf.mxu0  ;;  %v1635_v1 = vadd.f32 %v4728_v14, %v1234_v47  ;;  %v1636_v14 = vadd.f32 %v4738_v34, %v1235_v40 }
 0x159   : > { %4934 = vst [vmem:[#allocation20_spill] sm:$0xff] %v4799_v6  ;;  %4935 = vst [vmem:[#allocation21_spill] sm:$0xff] %v4801_v18  ;;  %v1903_v18 = vadd.f32 %v3532_v0, %v1630_v56  ;;  %v1904_v28 = vadd.f32 %v3533_v33, %v1631_v39 }
 0x15a   : > { %v4804_v5 = vpop.f32.mrf.mxu1  ;;  %v4806_v9 = vpop.f32.mrf.mxu0  ;;  %v4939_v49 = vld [vmem:[#allocation15_spill] sm:$0xff] }
 0x15b   : > { %4936 = vst [vmem:[#allocation22_spill] sm:$0xff] %v4806_v9  ;;  %v1233_v9 = vadd.f32 %v3492_v30, %v4691_v15  ;;  %v1632_v15 = vadd.f32 %v4726_v26, %v1231_v61  ;;  %v1232_v30 = vadd.f32 %v4736_v3, %v4697_v35  ;;  %v1237_v26 = vadd.f32 %v4740_v4, %v4699_v2  ;;  %v4940_v61 = vld [vmem:[#allocation2_spill] sm:$0xff] }
 0x15c   : > { %v4810_v11 = vpop.f32.mrf.mxu1  ;;  %v4812_v24 = vpop.f32.mrf.mxu0  ;;  %v1238_v35 = vadd.f32 %v4748_v42, %v4703_v10  ;;  %v1236_v2 = vadd.f32 %v4752_v60, %v4705_v13 }
 0x15d   : > { %4937 = vst [vmem:[#allocation23_spill] sm:$0xff] %v4810_v11  ;;  %4938 = vst [vmem:[#allocation24_spill] sm:$0xff] %v4812_v24  ;;  %v1629_v24 = vadd.f32 %v4722_v52, %v1228_v38  ;;  %v2121_v11 = vadd.f32 %v3554_v54, %v1903_v18  ;;  %v1634_v56 = vadd.f32 %v4724_v41, %v1233_v9 }
 0x15e   : > { %v4816_v6 = vpop.f32.mrf.mxu1  ;;  %v3598_v58 = vpop.f32.mrf.mxu0  ;;  %v2122_v9 = vadd.f32 %v3555_v36, %v1904_v28  ;;  %v1905_v54 = vadd.f32 %v1854_v32, %v1632_v15  ;;  %v1633_v33 = vadd.f32 %v4730_v20, %v1232_v30  ;;  %v1908_v20 = vadd.f32 %v4778_v45, %v1635_v1  ;;  %v4942_v28 = vld [vmem:[#allocation3_spill] sm:$0xff] }
 0x15f   : > { %v1902_v0 = vadd.f32 %v1841_v63, %v1629_v24  ;;  %v1907_v41 = vadd.f32 %v3536_v23, %v1634_v56  ;;  %v1638_v63 = vadd.f32 %v4734_v8, %v1237_v26  ;;  %v1639_v48 = vadd.f32 %v4742_v29, %v1238_v35 }
 0x160   : > { %v4821_v55 = vpop.f32.mrf.mxu1  ;;  %v2730_v37 = vpop.f32.mrf.mxu0  ;;  %v1906_v13 = vadd.f32 %v4782_v25, %v1633_v33  ;;  %v2123_v53 = vadd.f32 %v4772_v7, %v1905_v54  ;;  %v1637_v18 = vadd.f32 %v4746_v16, %v1236_v2  ;;  %v1642_v8 = vadd.f32 %v4750_v50, %v1241_v17  ;;  %v4941_v7 = vld [vmem:[#allocation7_spill] sm:$0xff]  ;;  %v4945_v50 = vld [vmem:[#allocation12_spill] sm:$0xff] }
 0x161   : > { %v2120_v57 = vadd.f32 %v4768_v62, %v1902_v0  ;;  %v2125_v46 = vadd.f32 %v4770_v59, %v1907_v41  ;;  %v1911_v34 = vadd.f32 %v4939_v49, %v1638_v63  ;;  %v4944_v16 = vld [vmem:[#allocation11_spill] sm:$0xff]  ;;  %v4947_v41 = vld [vmem:[#allocation17_spill] sm:$0xff]  ;;  %v1912_v26 = vadd.f32 %v4794_v22, %v1639_v48  ;;  %v4949_v1 = vld [vmem:[#allocation20_spill] sm:$0xff] }
 0x162   : > { %v3576_v44 = vpop.f32.mrf.mxu1  ;;  %v3599_v43 = vpop.f32.mrf.mxu0  ;;  %v2126_v56 = vadd.f32 %v4944_v16, %v1908_v20  ;;  %v1910_v33 = vadd.f32 %v4949_v1, %v1637_v18  ;;  %v4953_v48 = vld [vmem:[#allocation14_spill] sm:$0xff] }
 0x163   : > { %v2522_v12 = vadd.f32 %v3576_v44, %v2121_v11  ;;  %v4943_v44 = vld [vmem:[#allocation9_spill] sm:$0xff] }
 0x164   : > { %v2457_v52 = vpop.f32.mrf.mxu1  ;;  %v2733_v31 = vpop.f32.mrf.mxu0 }
 0x165   : > { %v2795_v24 = vadd.f32 %v3598_v58, %v2522_v12  ;;  %v2520_v11 = vadd.f32 %v2457_v52, %v2119_v27  ;;  %v2124_v27 = vadd.f32 %v4945_v50, %v1906_v13  ;;  %v4951_v13 = vld [vmem:[#allocation4_spill] sm:$0xff] }
 0x166   : > { %v3577_v21 = vpop.f32.mrf.mxu1  ;;  %v3602_v3 = vpop.f32.mrf.mxu0 }
 0x167   : > { %2811 = vst [vmem:[%s4834_s25 + $0x10] sm:$0xff] %v2795_v24  ;;  %v2793_v51 = vadd.f32 %v2730_v37, %v2520_v11  ;;  %v2523_v36 = vadd.f32 %v3577_v21, %v2122_v9  ;;  %v1239_v37 = vadd.f32 %v4941_v7, %v4940_v61  ;;  %v2848_v15 = vmul.f32 %v2795_v24, %v2795_v24 }
 0x168   : > { %v2460_v10 = vpop.f32.mrf.mxu1  ;;  %v2746_v4 = vpop.f32.mrf.mxu0  ;;  %v1909_v11 = vadd.f32 %v4947_v41, %v1636_v14  ;;  %v4950_v14 = vld [vmem:[#allocation6_spill] sm:$0xff] }
 0x169   : > { %2809 = vst [vmem:[%s4834_s25] sm:$0xff] %v2793_v51  ;;  %v2796_v42 = vadd.f32 %v3599_v43, %v2523_v36  ;;  %v2521_v62 = vadd.f32 %v2460_v10, %v2120_v57  ;;  %v2846_v38 = vmul.f32 %v2793_v51, %v2793_v51  ;;  %v1242_v43 = vadd.f32 %v4943_v44, %v4942_v28  ;;  %v4948_v36 = vld [vmem:[#allocation5_spill] sm:$0xff] }
 0x16a   : > { %v3580_v60 = vpop.f32.mrf.mxu1  ;;  %v3603_v23 = vpop.f32.mrf.mxu0 }
 0x16b   : > { %2812 = vst [vmem:[%s4834_s25 + $0x18] sm:$0xff] %v2796_v42  ;;  %v2794_v59 = vadd.f32 %v2733_v31, %v2521_v62  ;;  %v2526_v32 = vadd.f32 %v3580_v60, %v2125_v46  ;;  %v4946_v31 = vld [vmem:[#allocation13_spill] sm:$0xff]  ;;  %v1643_v20 = vadd.f32 %v4950_v14, %v1242_v43  ;;  %v4952_v60 = vld [vmem:[#allocation10_spill] sm:$0xff] }
 0x16c   : > { %v2473_v58 = vpop.f32.mrf.mxu1  ;;  %v2749_v45 = vpop.f32.mrf.mxu0  ;;  %v2129_v9 = vadd.f32 %v4946_v31, %v1911_v34  ;;  %v4958_v31 = vld [vmem:[#allocation19_spill] sm:$0xff] }
 0x16d   : > { %2810 = vst [vmem:[%s4834_s25 + $0x8] sm:$0xff] %v2794_v59  ;;  %v2825_v25 = vadd.f32 %v2794_v59, %v2793_v51  ;;  %v2847_v39 = vmul.f32 %v2794_v59, %v2794_v59  ;;  %v2799_v19 = vadd.f32 %v3602_v3, %v2526_v32  ;;  %v2524_v29 = vadd.f32 %v2473_v58, %v2123_v53  ;;  %v4954_v59 = vld [vmem:[#allocation16_spill] sm:$0xff] }
 0x16e   : > { %v3581_v0 = vpop.f32.mrf.mxu1  ;;  %v3606_v12 = vpop.f32.mrf.mxu0  ;;  %v2849_v3 = vmul.f32 %v2796_v42, %v2796_v42  ;;  %v2127_v53 = vadd.f32 %v4953_v48, %v1909_v11  ;;  %v2130_v32 = vadd.f32 %v4954_v59, %v1912_v26  ;;  %v1916_v50 = vadd.f32 %v4816_v6, %v1643_v20  ;;  %v4961_v20 = vld [vmem:[#allocation24_spill] sm:$0xff] }
 0x16f   : > { %v2826_v47 = vadd.f32 %v2825_v25, %v2795_v24  ;;  %v2862_v30 = vadd.f32 %v2847_v39, %v2846_v38  ;;  %2815 = vst [vmem:[%s4834_s25 + $0x30] sm:$0xff] %v2799_v19  ;;  %v2797_v52 = vadd.f32 %v2746_v4, %v2524_v29  ;;  %v2527_v40 = vadd.f32 %v3581_v0, %v2126_v56  ;;  %v4956_v29 = vld [vmem:[#allocation23_spill] sm:$0xff] }
 0x170   : > { %v2476_v35 = vpop.f32.mrf.mxu1  ;;  %v2762_v21 = vpop.f32.mrf.mxu0  ;;  %v1640_v24 = vadd.f32 %v4948_v36, %v1239_v37  ;;  %v1915_v39 = vadd.f32 %v4804_v5, %v1642_v8  ;;  %v2852_v28 = vmul.f32 %v2799_v19, %v2799_v19 }
 0x171   : > { %v2863_v57 = vadd.f32 %v2862_v30, %v2848_v15  ;;  %2813 = vst [vmem:[%s4834_s25 + $0x20] sm:$0xff] %v2797_v52  ;;  %v2827_v54 = vadd.f32 %v2826_v47, %v2796_v42  ;;  %v2525_v51 = vadd.f32 %v2476_v35, %v2124_v27  ;;  %v2850_v2 = vmul.f32 %v2797_v52, %v2797_v52  ;;  %v4957_v30 = vld [vmem:[#allocation8_spill] sm:$0xff] }
 0x172   : > { %v2800_v17 = vadd.f32 %v3603_v23, %v2527_v40  ;;  %v3584_v10 = vpop.f32.mrf.mxu1  ;;  %v3607_v4 = vpop.f32.mrf.mxu0  ;;  %v1240_v42 = vadd.f32 %v4952_v60, %v4951_v13  ;;  %v1913_v61 = vadd.f32 %v4956_v29, %v1640_v24 }
 0x173   : > { %v2828_v46 = vadd.f32 %v2827_v54, %v2797_v52  ;;  %v2864_v22 = vadd.f32 %v2863_v57, %v2849_v3  ;;  %v2798_v62 = vadd.f32 %v2749_v45, %v2525_v51  ;;  %v2530_v63 = vadd.f32 %v3584_v10, %v2129_v9  ;;  %v4955_v45 = vld [vmem:[#allocation18_spill] sm:$0xff]  ;;  %v4959_v9 = vld [vmem:[#allocation21_spill] sm:$0xff] }
 0x174   : > { %2816 = vst [vmem:[%s4834_s25 + $0x38] sm:$0xff] %v2800_v17  ;;  %v2489_v18 = vpop.f32.mrf.mxu1  ;;  %v2765_v49 = vpop.f32.mrf.mxu0  ;;  %v2128_v25 = vadd.f32 %v4955_v45, %v1910_v33  ;;  %v2853_v27 = vmul.f32 %v2800_v17, %v2800_v17  ;;  %v1641_v52 = vadd.f32 %v4957_v30, %v1240_v42  ;;  %v2131_v41 = vadd.f32 %v4959_v9, %v1913_v61  ;;  %v4960_v3 = vld [vmem:[#allocation22_spill] sm:$0xff] }
 0x175   : > { %v2865_v23 = vadd.f32 %v2864_v22, %v2850_v2  ;;  %2814 = vst [vmem:[%s4834_s25 + $0x28] sm:$0xff] %v2798_v62  ;;  %v2829_v34 = vadd.f32 %v2828_v46, %v2798_v62  ;;  %v2851_v38 = vmul.f32 %v2798_v62, %v2798_v62  ;;  %v2803_v58 = vadd.f32 %v3606_v12, %v2530_v63 }
 0x176   : > { %v2528_v7 = vadd.f32 %v2489_v18, %v2127_v53  ;;  %v3585_v37 = vpop.f32.mrf.mxu1  ;;  %v3610_v56 = vpop.f32.mrf.mxu0  ;;  %v2134_v57 = vadd.f32 %v4960_v3, %v1916_v50  ;;  %v1914_v54 = vadd.f32 %v4821_v55, %v1641_v52 }
 0x177   : > { %v2830_v44 = vadd.f32 %v2829_v34, %v2799_v19  ;;  %v2866_v43 = vadd.f32 %v2865_v23, %v2851_v38  ;;  %2819 = vst [vmem:[%s4834_s25 + $0x50] sm:$0xff] %v2803_v58  ;;  %v2531_v16 = vadd.f32 %v3585_v37, %v2130_v32  ;;  %v2133_v19 = vadd.f32 %v4958_v31, %v1915_v39 }
 0x178   : > { %v2801_v0 = vadd.f32 %v2762_v21, %v2528_v7  ;;  %v2492_v12 = vpop.f32.mrf.mxu1  ;;  %v2778_v21 = vpop.f32.mrf.mxu0  ;;  %v2132_v55 = vadd.f32 %v4961_v20, %v1914_v54 }
 0x179   : > { %v2867_v15 = vadd.f32 %v2866_v43, %v2852_v28  ;;  %v2831_v47 = vadd.f32 %v2830_v44, %v2800_v17  ;;  %v2804_v5 = vadd.f32 %v3607_v4, %v2531_v16  ;;  %v2529_v8 = vadd.f32 %v2492_v12, %v2128_v25 }
 0x17a   : > { %2817 = vst [vmem:[%s4834_s25 + $0x40] sm:$0xff] %v2801_v0  ;;  %v3588_v11 = vpop.f32.mrf.mxu1  ;;  %v2854_v40 = vmul.f32 %v2801_v0, %v2801_v0  ;;  %v2856_v17 = vmul.f32 %v2803_v58, %v2803_v58  ;;  %v3611_v14 = vpop.f32.mrf.mxu0 }
 0x17b   : > { %v2832_v26 = vadd.f32 %v2831_v47, %v2801_v0  ;;  %v2868_v6 = vadd.f32 %v2867_v15, %v2853_v27  ;;  %2820 = vst [vmem:[%s4834_s25 + $0x58] sm:$0xff] %v2804_v5  ;;  %v2802_v35 = vadd.f32 %v2765_v49, %v2529_v8  ;;  %v2534_v51 = vadd.f32 %v3588_v11, %v2133_v19 }
 0x17c   : > { %v2505_v36 = vpop.f32.mrf.mxu1  ;;  %v2857_v60 = vmul.f32 %v2804_v5, %v2804_v5  ;;  %v2781_v23 = vpop.f32.mrf.mxu0 }
 0x17d   : > { %v2869_v24 = vadd.f32 %v2868_v6, %v2854_v40  ;;  %2818 = vst [vmem:[%s4834_s25 + $0x48] sm:$0xff] %v2802_v35  ;;  %v2833_v1 = vadd.f32 %v2832_v26, %v2802_v35  ;;  %v2855_v33 = vmul.f32 %v2802_v35, %v2802_v35  ;;  %v2532_v2 = vadd.f32 %v2505_v36, %v2131_v41 }
 0x17e   : > { %v2807_v10 = vadd.f32 %v3610_v56, %v2534_v51  ;;  %v3589_v4 = vpop.f32.mrf.mxu1 }
 0x17f   : > { %v2834_v46 = vadd.f32 %v2833_v1, %v2803_v58  ;;  %v2870_v22 = vadd.f32 %v2869_v24, %v2855_v33  ;;  %v2805_v62 = vadd.f32 %v2778_v21, %v2532_v2  ;;  %v2535_v63 = vadd.f32 %v3589_v4, %v2134_v57 }
 0x180   : > { %2823 = vst [vmem:[%s4834_s25 + $0x70] sm:$0xff] %v2807_v10  ;;  %v2508_v13 = vpop.f32.mrf.mxu1  ;;  %v2860_v25 = vmul.f32 %v2807_v10, %v2807_v10 }
 0x181   : > { %v2871_v42 = vadd.f32 %v2870_v22, %v2856_v17  ;;  %2821 = vst [vmem:[%s4834_s25 + $0x60] sm:$0xff] %v2805_v62  ;;  %v2835_v48 = vadd.f32 %v2834_v46, %v2804_v5  ;;  %v2808_v53 = vadd.f32 %v3611_v14, %v2535_v63  ;;  %v2533_v59 = vadd.f32 %v2508_v13, %v2132_v55 }
 0x182   : > { %v2858_v18 = vmul.f32 %v2805_v62, %v2805_v62 }
 0x183   : > { %v2836_v32 = vadd.f32 %v2835_v48, %v2805_v62  ;;  %v2872_v49 = vadd.f32 %v2871_v42, %v2857_v60  ;;  %2824 = vst [vmem:[%s4834_s25 + $0x78] sm:$0xff] %v2808_v53  ;;  %v2806_v34 = vadd.f32 %v2781_v23, %v2533_v59  ;;  %v2861_v61 = vmul.f32 %v2808_v53, %v2808_v53 }
 0x185   : > { %v2873_v38 = vadd.f32 %v2872_v49, %v2858_v18  ;;  %2822 = vst [vmem:[%s4834_s25 + $0x68] sm:$0xff] %v2806_v34  ;;  %v2837_v58 = vadd.f32 %v2836_v32, %v2806_v34  ;;  %v2859_v45 = vmul.f32 %v2806_v34, %v2806_v34 }
 0x187   : > { %v2838_v39 = vadd.f32 %v2837_v58, %v2807_v10  ;;  %v2874_v29 = vadd.f32 %v2873_v38, %v2859_v45 }
 0x189   : > { %v2839_v7 = vadd.f32 %v2838_v39, %v2808_v53  ;;  %v2875_v37 = vadd.f32 %v2874_v29, %v2860_v25 }
 0x18b   : > { %v2840_v28 = vrot.slane %v2839_v7, 4  ;;  %v2876_v44 = vadd.f32 %v2875_v37, %v2861_v61 }
 0x18d   : > { %v2841_v43 = vadd.f32 %v2840_v28, %v2839_v7  ;;  %v2877_v16 = vrot.slane %v2876_v44, 4 }
 0x18f   : > { %v2842_v56 = vrot.slane %v2841_v43, 2  ;;  %v2878_v50 = vadd.f32 %v2877_v16, %v2876_v44 }
 0x191   : > { %v2843_v27 = vadd.f32 %v2842_v56, %v2841_v43  ;;  %v2879_v0 = vrot.slane %v2878_v50, 2 }
 0x193   : > { %v2844_v12 = vrot.slane %v2843_v27, 1  ;;  %v2880_v15 = vadd.f32 %v2879_v0, %v2878_v50 }
 0x195   : > { %v2881_v47 = vrot.slane %v2880_v15, 1  ;;  %v2845_v5 = vadd.f32 %v2844_v12, %v2843_v27 }
 0x197   : > { %v2882_v8 = vadd.f32 %v2881_v47, %v2880_v15 }
 0x199   : > { %v2884_v30 = vsel %vm2883_vm8, %v2845_v5, %v2882_v8 }
 0x19a   : > { %2885 = vst [vmem:[%s181_s30] sm:$0x3] %v2884_v30 }
 0x19b PF: > { %s14_s12 = sadd.s32 1, %s3694_s12  }
 0x19c   : > { %p11_p4 = scmp.ge.s32.totalorder %s14_s12, 6  }
 0x19e   :  { %13 = sbr.rel (!%p11_p4) target bundleno = 1 (0x1), region = 80 }

</bundles_post_ra>
